<compile_context>
chip_gen: v7x
topology: tpu7x:2x2x1
jax: 0.10.0
libtpu: 0.0.40
codegen_flags: <defaults>
</compile_context>

<pallas_src>
import functools

import numpy as np
import jax
import jax.numpy as jnp
from jax.experimental import pallas as pl
from jax.experimental.pallas import tpu as pltpu

# Layer hyper-parameters fixed by the module definition.
_LAYERS = (
    dict(cin=1,   cout=64,  k=7, stride=1, pad=3),
    dict(cin=64,  cout=128, k=4, stride=2, pad=1),
    dict(cin=128, cout=256, k=4, stride=2, pad=1),
)
_LRELU_SLOPE = 0.2


def _round_up(x, m):
    return (x + m - 1) // m * m


def _out_hw(h, w, k, stride, pad):
    return (h + 2 * pad - k) // stride + 1, (w + 2 * pad - k) // stride + 1


def _leaky(x):
    return jnp.where(x > 0.0, x, _LRELU_SLOPE * x)


# ----------------------------------------------------------------------------
# Fused whole-network Pallas kernel (one grid step = one batch element)
# ----------------------------------------------------------------------------
def _encoder_kernel(p1_ref, w1_ref, g2_ref, w2_ref, g3_ref, w3_ref,
                    b1_ref, b2_ref, b3_ref, o_ref,
                    *, m2, m3, cin2, cin3, taps2, taps3):
    # ---- layer 1: 7x7 s1 p3 conv via pre-built im2col patches (scale folded) --
    h = jnp.dot(p1_ref[0], w1_ref[...], preferred_element_type=jnp.float32)   # (m1, 64) f32
    h1 = _leaky(h + b1_ref[...]).astype(jnp.bfloat16)                          # (m1, 64) bf16

    # ---- layer 2: 4x4 s2 p1 conv -------------------------------------------
    # Row-gather all 16 taps with one matmul against a constant one-hot matrix,
    # then accumulate per-tap matmuls: out = sum_t rows_t @ W2_t.
    rows2 = jnp.dot(g2_ref[...], h1,
                    preferred_element_type=jnp.float32).astype(jnp.bfloat16)   # (taps2*m2, 64)
    acc2 = jnp.dot(rows2[:m2, :], w2_ref[:cin2, :],
                   preferred_element_type=jnp.float32)                         # tap 0 init
    for t in range(1, taps2):
        acc2 += jnp.dot(rows2[t * m2:(t + 1) * m2, :],
                        w2_ref[t * cin2:(t + 1) * cin2, :],
                        preferred_element_type=jnp.float32)
    h2 = _leaky(acc2 + b2_ref[...]).astype(jnp.bfloat16)                       # (m2, 128) bf16

    # ---- layer 3: 4x4 s2 p1 conv -------------------------------------------
    rows3 = jnp.dot(g3_ref[...], h2,
                    preferred_element_type=jnp.float32).astype(jnp.bfloat16)   # (taps3*m3, 128)
    acc3 = jnp.dot(rows3[:m3, :], w3_ref[:cin3, :],
                   preferred_element_type=jnp.float32)                         # tap 0 init
    for t in range(1, taps3):
        acc3 += jnp.dot(rows3[t * m3:(t + 1) * m3, :],
                        w3_ref[t * cin3:(t + 1) * cin3, :],
                        preferred_element_type=jnp.float32)
    o_ref[0] = _leaky(acc3 + b3_ref[...])                                      # (m3, 256) f32


# ----------------------------------------------------------------------------
# Host-side helpers: layer-1 im2col and constant row-gather matrices
# ----------------------------------------------------------------------------
def _im2col_nhwc(x, k, stride, pad):
    n, h, w, c = x.shape
    xp = jnp.pad(x, ((0, 0), (pad, pad), (pad, pad), (0, 0)))
    oh, ow = _out_hw(h, w, k, stride, pad)
    cols = []
    for i in range(k):
        for j in range(k):
            cols.append(xp[:, i:i + stride * oh:stride, j:j + stride * ow:stride, :])
    # (n, oh, ow, k*k, c) -> (n, oh*ow, k*k*c); column ordering (i*k + j)*c + ci
    return jnp.stack(cols, axis=3).reshape(n, oh * ow, k * k * c)


def _gather_matrix(h_in, w_in, k, stride, pad):
    """One-hot matrix G of shape (k*k*M, h_in*w_in) so that (G @ act) stacks, per
    tap, the input rows each output position needs (all-zero rows for padding)."""
    oh, ow = _out_hw(h_in, w_in, k, stride, pad)
    m = oh * ow
    g = np.zeros((k * k * m, h_in * w_in), np.float32)
    for i in range(k):
        for j in range(k):
            t = i * k + j
            for oy in range(oh):
                for ox in range(ow):
                    y = oy * stride + i - pad
                    x = ox * stride + j - pad
                    if 0 <= y < h_in and 0 <= x < w_in:
                        g[t * m + oy * ow + ox, y * w_in + x] = 1.0
    return g


# ----------------------------------------------------------------------------
# Parameters (deterministic, synthetic) and kernel-ready preprocessing
# ----------------------------------------------------------------------------
def init_encoder_params(key):
    params = {}
    keys = jax.random.split(key, len(_LAYERS))
    for idx, (kk, cfg) in enumerate(zip(keys, _LAYERS), start=1):
        kw_, kb_ = jax.random.split(kk)
        w = 0.05 * jax.random.normal(kw_, (cfg["cout"], cfg["cin"], cfg["k"], cfg["k"]),
                                     dtype=jnp.float32)
        b = 0.01 * jax.random.normal(kb_, (cfg["cout"],), dtype=jnp.float32)
        eps = 1e-5
        gamma = jnp.ones((cfg["cout"],), jnp.float32)
        beta = jnp.zeros((cfg["cout"],), jnp.float32)
        mean = jnp.zeros((cfg["cout"],), jnp.float32)
        var = jnp.ones((cfg["cout"],), jnp.float32)
        scale = gamma / jnp.sqrt(var + eps)
        shift = beta - mean * scale
        params[f"down{idx}"] = dict(w=w, b=b, scale=scale, shift=shift)
    return params


def prepare_kernel_inputs(params, img_h, img_w):
    """Fold the BN scale into the (k*k*cin, cout) weight matrices (bf16), fold
    conv bias + BN shift into one per-channel vector, and build the constant
    one-hot gather matrices for the two stride-2 layers."""
    prep = {}
    for idx, cfg in enumerate(_LAYERS, start=1):
        p = params[f"down{idx}"]
        w2d = jnp.transpose(p["w"], (2, 3, 1, 0)).reshape(
            cfg["k"] * cfg["k"] * cfg["cin"], cfg["cout"])
        # fold BN scale into the matmul weights (done in f32, stored bf16)
        prep[f"w{idx}"] = (w2d * p["scale"][None, :]).astype(jnp.bfloat16)
        # fused shift: (conv + b) * scale + shift == conv*scale + (b*scale + shift)
        prep[f"b{idx}"] = (p["b"] * p["scale"] + p["shift"]).reshape(1, -1).astype(jnp.float32)

    # pad the layer-1 contraction dim (49) up to a 16-multiple for clean bf16 layout
    k1 = _LAYERS[0]["k"] ** 2 * _LAYERS[0]["cin"]
    k1p = _round_up(k1, 16)
    if k1p != k1:
        prep["w1"] = jnp.pad(prep["w1"], ((0, k1p - k1), (0, 0)))

    h1, w1_ = _out_hw(img_h, img_w, _LAYERS[0]["k"], _LAYERS[0]["stride"], _LAYERS[0]["pad"])
    h2, w2_ = _out_hw(h1, w1_, _LAYERS[1]["k"], _LAYERS[1]["stride"], _LAYERS[1]["pad"])
    prep["g2"] = jnp.asarray(
        _gather_matrix(h1, w1_, _LAYERS[1]["k"], _LAYERS[1]["stride"], _LAYERS[1]["pad"]),
        jnp.bfloat16)
    prep["g3"] = jnp.asarray(
        _gather_matrix(h2, w2_, _LAYERS[2]["k"], _LAYERS[2]["stride"], _LAYERS[2]["pad"]),
        jnp.bfloat16)
    return prep


# ----------------------------------------------------------------------------
# Forward pass (single fused pallas_call)
# ----------------------------------------------------------------------------
def encoder_forward(prep, x_nchw):
    n, _, img_h, img_w = x_nchw.shape
    c1, c2, c3 = (_LAYERS[0]["cout"], _LAYERS[1]["cout"], _LAYERS[2]["cout"])
    oh1, ow1 = _out_hw(img_h, img_w, _LAYERS[0]["k"], _LAYERS[0]["stride"], _LAYERS[0]["pad"])
    oh2, ow2 = _out_hw(oh1, ow1, _LAYERS[1]["k"], _LAYERS[1]["stride"], _LAYERS[1]["pad"])
    oh3, ow3 = _out_hw(oh2, ow2, _LAYERS[2]["k"], _LAYERS[2]["stride"], _LAYERS[2]["pad"])
    m1, m2, m3 = oh1 * ow1, oh2 * ow2, oh3 * ow3

    # layer-1 im2col in the wrapper (tiny: Cin=1, only depends on the raw input)
    x_nhwc = jnp.transpose(x_nchw, (0, 2, 3, 1))
    p1 = _im2col_nhwc(x_nhwc, _LAYERS[0]["k"], _LAYERS[0]["stride"], _LAYERS[0]["pad"])
    k1p = prep["w1"].shape[0]
    if k1p != p1.shape[-1]:
        p1 = jnp.pad(p1, ((0, 0), (0, 0), (0, k1p - p1.shape[-1])))
    p1 = p1.astype(jnp.bfloat16)

    kernel = functools.partial(
        _encoder_kernel, m2=m2, m3=m3,
        cin2=_LAYERS[1]["cin"], cin3=_LAYERS[2]["cin"],
        taps2=_LAYERS[1]["k"] ** 2, taps3=_LAYERS[2]["k"] ** 2)

    fixed2 = lambda b: (0, 0)
    out = pl.pallas_call(
        kernel,
        out_shape=jax.ShapeDtypeStruct((n, m3, c3), jnp.float32),
        grid=(n,),
        in_specs=[
            pl.BlockSpec((1, m1, k1p), lambda b: (b, 0, 0)),   # per-image layer-1 patches
            pl.BlockSpec(prep["w1"].shape, fixed2),
            pl.BlockSpec(prep["g2"].shape, fixed2),
            pl.BlockSpec(prep["w2"].shape, fixed2),
            pl.BlockSpec(prep["g3"].shape, fixed2),
            pl.BlockSpec(prep["w3"].shape, fixed2),
            pl.BlockSpec((1, c1), fixed2),
            pl.BlockSpec((1, c2), fixed2),
            pl.BlockSpec((1, c3), fixed2),
        ],
        out_specs=pl.BlockSpec((1, m3, c3), lambda b: (b, 0, 0)),
        compiler_params=pltpu.CompilerParams(dimension_semantics=("parallel",)),
    )(p1, prep["w1"], prep["g2"], prep["w2"], prep["g3"], prep["w3"],
      prep["b1"], prep["b2"], prep["b3"])

    out = out.reshape(n, oh3, ow3, c3)
    return jnp.transpose(out, (0, 3, 1, 2))          # NHWC -> NCHW


# ----------------------------------------------------------------------------
# Pure-JAX reference (same semantics) for correctness validation
# ----------------------------------------------------------------------------
def encoder_reference(params, x_nchw):
    x = jnp.transpose(x_nchw, (0, 2, 3, 1)).astype(jnp.float32)
    for idx, cfg in enumerate(_LAYERS, start=1):
        p = params[f"down{idx}"]
        w_hwio = jnp.transpose(p["w"], (2, 3, 1, 0))
        x = jax.lax.conv_general_dilated(
            x, w_hwio, window_strides=(cfg["stride"], cfg["stride"]),
            padding=((cfg["pad"], cfg["pad"]), (cfg["pad"], cfg["pad"])),
            dimension_numbers=("NHWC", "HWIO", "NHWC"),
            precision=jax.lax.Precision.HIGHEST)
        x = x + p["b"]
        x = x * p["scale"] + p["shift"]
        x = _leaky(x)
    return jnp.transpose(x, (0, 3, 1, 2))


if __name__ == "__main__":
    key = jax.random.PRNGKey(0)
    k_param, k_input = jax.random.split(key)

    params = init_encoder_params(k_param)
    x = jax.random.normal(k_input, (2, 1, 16, 16), dtype=jnp.float32)  # NCHW

    prep = prepare_kernel_inputs(params, 16, 16)
    out = jax.jit(encoder_forward)(prep, x)
    out = jax.block_until_ready(out)

    # 16 -(k7,s1,p3)-> 16 -(k4,s2,p1)-> 8 -(k4,s2,p1)-> 4
    assert out.shape == (2, 256, 4, 4), out.shape
    assert bool(jnp.all(jnp.isfinite(out)))

    ref = encoder_reference(params, x)
    max_err = float(jnp.max(jnp.abs(out - ref)))
    assert max_err < 5e-2, f"max abs err vs reference: {max_err}"
    print("KERNEL_OK")
</pallas_src>

<mosaic_0001>
module attributes {stable_mosaic.version = 11 : i64} {
  func.func @_encoder_kernel(%arg0: i32, %arg1: memref<1x256x64xbf16, #tpu.memory_space<vmem>>, %arg2: memref<64x64xbf16, #tpu.memory_space<vmem>>, %arg3: memref<1024x256xbf16, #tpu.memory_space<vmem>>, %arg4: memref<1024x128xbf16, #tpu.memory_space<vmem>>, %arg5: memref<256x64xbf16, #tpu.memory_space<vmem>>, %arg6: memref<2048x256xbf16, #tpu.memory_space<vmem>>, %arg7: memref<1x64xf32, #tpu.memory_space<vmem>>, %arg8: memref<1x128xf32, #tpu.memory_space<vmem>>, %arg9: memref<1x256xf32, #tpu.memory_space<vmem>>, %arg10: memref<1x16x256xf32, #tpu.memory_space<vmem>>) attributes {dimension_semantics = [#tpu.dimension_semantics<parallel>], iteration_bounds = array<i64: 2>, scalar_prefetch = 0 : i64, scratch_operands = 0 : i64, tpu.core_type = #tpu.core_type<tc>, window_params = [{transform_indices = @transform_0, window_bounds = array<i64: 1, 256, 64>}, {pipeline_mode = #tpu.pipeline_mode<synchronous>, transform_indices = @transform_1, window_bounds = array<i64: 64, 64>}, {pipeline_mode = #tpu.pipeline_mode<synchronous>, transform_indices = @transform_2, window_bounds = array<i64: 1024, 256>}, {pipeline_mode = #tpu.pipeline_mode<synchronous>, transform_indices = @transform_3, window_bounds = array<i64: 1024, 128>}, {pipeline_mode = #tpu.pipeline_mode<synchronous>, transform_indices = @transform_4, window_bounds = array<i64: 256, 64>}, {pipeline_mode = #tpu.pipeline_mode<synchronous>, transform_indices = @transform_5, window_bounds = array<i64: 2048, 256>}, {pipeline_mode = #tpu.pipeline_mode<synchronous>, transform_indices = @transform_6, window_bounds = array<i64: 1, 64>}, {pipeline_mode = #tpu.pipeline_mode<synchronous>, transform_indices = @transform_7, window_bounds = array<i64: 1, 128>}, {pipeline_mode = #tpu.pipeline_mode<synchronous>, transform_indices = @transform_8, window_bounds = array<i64: 1, 256>}, {transform_indices = @transform_9, window_bounds = array<i64: 1, 16, 256>}]} {
    %c0 = arith.constant 0 : index
    %c0_0 = arith.constant 0 : index
    %c0_1 = arith.constant 0 : index
    %0 = vector.load %arg1[%c0, %c0_0, %c0_1] : memref<1x256x64xbf16, #tpu.memory_space<vmem>>, vector<1x256x64xbf16>
    %1 = vector.shape_cast %0 : vector<1x256x64xbf16> to vector<256x64xbf16>
    %c0_2 = arith.constant 0 : index
    %c0_3 = arith.constant 0 : index
    %2 = vector.load %arg2[%c0_2, %c0_3] : memref<64x64xbf16, #tpu.memory_space<vmem>>, vector<64x64xbf16>
    %cst = arith.constant dense<0.000000e+00> : vector<256x64xf32>
    %3 = tpu.matmul %1, %2, %cst {dimension_numbers = #tpu.dot_dimension_numbers<[1], [0], [0], [1], [0, 0, 1, 1], [], []>} : vector<256x64xbf16>, vector<64x64xbf16>, vector<256x64xf32> -> vector<256x64xf32>
    %c0_4 = arith.constant 0 : index
    %c0_5 = arith.constant 0 : index
    %4 = vector.load %arg7[%c0_4, %c0_5] : memref<1x64xf32, #tpu.memory_space<vmem>>, vector<1x64xf32>
    %5 = vector.broadcast %4 : vector<1x64xf32> to vector<256x64xf32>
    %6 = arith.addf %3, %5 : vector<256x64xf32>
    %cst_6 = arith.constant 0.000000e+00 : f32
    %7 = vector.broadcast %cst_6 : f32 to vector<256x64xf32>
    %8 = arith.cmpf ogt, %6, %7 : vector<256x64xf32>
    %cst_7 = arith.constant 2.000000e-01 : f32
    %9 = vector.broadcast %cst_7 : f32 to vector<256x64xf32>
    %10 = arith.mulf %9, %6 : vector<256x64xf32>
    %11 = arith.select %8, %6, %10 : vector<256x64xi1>, vector<256x64xf32>
    %12 = arith.truncf %11 : vector<256x64xf32> to vector<256x64xbf16>
    %c0_8 = arith.constant 0 : index
    %c0_9 = arith.constant 0 : index
    %13 = vector.load %arg3[%c0_8, %c0_9] : memref<1024x256xbf16, #tpu.memory_space<vmem>>, vector<1024x256xbf16>
    %cst_10 = arith.constant dense<0.000000e+00> : vector<1024x64xf32>
    %14 = tpu.matmul %13, %12, %cst_10 {dimension_numbers = #tpu.dot_dimension_numbers<[1], [0], [0], [1], [0, 0, 1, 1], [], []>} : vector<1024x256xbf16>, vector<256x64xbf16>, vector<1024x64xf32> -> vector<1024x64xf32>
    %15 = arith.truncf %14 : vector<1024x64xf32> to vector<1024x64xbf16>
    %16 = vector.extract_strided_slice %15 {offsets = [0, 0], sizes = [64, 64], strides = [1, 1]} : vector<1024x64xbf16> to vector<64x64xbf16>
    %c0_11 = arith.constant 0 : index
    %c0_12 = arith.constant 0 : index
    %17 = vector.load %arg4[%c0_11, %c0_12] : memref<1024x128xbf16, #tpu.memory_space<vmem>>, vector<64x128xbf16>
    %cst_13 = arith.constant dense<0.000000e+00> : vector<64x128xf32>
    %18 = tpu.matmul %16, %17, %cst_13 {dimension_numbers = #tpu.dot_dimension_numbers<[1], [0], [0], [1], [0, 0, 1, 1], [], []>} : vector<64x64xbf16>, vector<64x128xbf16>, vector<64x128xf32> -> vector<64x128xf32>
    %19 = vector.extract_strided_slice %15 {offsets = [64, 0], sizes = [64, 64], strides = [1, 1]} : vector<1024x64xbf16> to vector<64x64xbf16>
    %c64 = arith.constant 64 : index
    %c0_14 = arith.constant 0 : index
    %20 = vector.load %arg4[%c64, %c0_14] : memref<1024x128xbf16, #tpu.memory_space<vmem>>, vector<64x128xbf16>
    %cst_15 = arith.constant dense<0.000000e+00> : vector<64x128xf32>
    %21 = tpu.matmul %19, %20, %cst_15 {dimension_numbers = #tpu.dot_dimension_numbers<[1], [0], [0], [1], [0, 0, 1, 1], [], []>} : vector<64x64xbf16>, vector<64x128xbf16>, vector<64x128xf32> -> vector<64x128xf32>
    %22 = arith.addf %18, %21 : vector<64x128xf32>
    %23 = vector.extract_strided_slice %15 {offsets = [128, 0], sizes = [64, 64], strides = [1, 1]} : vector<1024x64xbf16> to vector<64x64xbf16>
    %c128 = arith.constant 128 : index
    %c0_16 = arith.constant 0 : index
    %24 = vector.load %arg4[%c128, %c0_16] : memref<1024x128xbf16, #tpu.memory_space<vmem>>, vector<64x128xbf16>
    %cst_17 = arith.constant dense<0.000000e+00> : vector<64x128xf32>
    %25 = tpu.matmul %23, %24, %cst_17 {dimension_numbers = #tpu.dot_dimension_numbers<[1], [0], [0], [1], [0, 0, 1, 1], [], []>} : vector<64x64xbf16>, vector<64x128xbf16>, vector<64x128xf32> -> vector<64x128xf32>
    %26 = arith.addf %22, %25 : vector<64x128xf32>
    %27 = vector.extract_strided_slice %15 {offsets = [192, 0], sizes = [64, 64], strides = [1, 1]} : vector<1024x64xbf16> to vector<64x64xbf16>
    %c192 = arith.constant 192 : index
    %c0_18 = arith.constant 0 : index
    %28 = vector.load %arg4[%c192, %c0_18] : memref<1024x128xbf16, #tpu.memory_space<vmem>>, vector<64x128xbf16>
    %cst_19 = arith.constant dense<0.000000e+00> : vector<64x128xf32>
    %29 = tpu.matmul %27, %28, %cst_19 {dimension_numbers = #tpu.dot_dimension_numbers<[1], [0], [0], [1], [0, 0, 1, 1], [], []>} : vector<64x64xbf16>, vector<64x128xbf16>, vector<64x128xf32> -> vector<64x128xf32>
    %30 = arith.addf %26, %29 : vector<64x128xf32>
    %31 = vector.extract_strided_slice %15 {offsets = [256, 0], sizes = [64, 64], strides = [1, 1]} : vector<1024x64xbf16> to vector<64x64xbf16>
    %c256 = arith.constant 256 : index
    %c0_20 = arith.constant 0 : index
    %32 = vector.load %arg4[%c256, %c0_20] : memref<1024x128xbf16, #tpu.memory_space<vmem>>, vector<64x128xbf16>
    %cst_21 = arith.constant dense<0.000000e+00> : vector<64x128xf32>
    %33 = tpu.matmul %31, %32, %cst_21 {dimension_numbers = #tpu.dot_dimension_numbers<[1], [0], [0], [1], [0, 0, 1, 1], [], []>} : vector<64x64xbf16>, vector<64x128xbf16>, vector<64x128xf32> -> vector<64x128xf32>
    %34 = arith.addf %30, %33 : vector<64x128xf32>
    %35 = vector.extract_strided_slice %15 {offsets = [320, 0], sizes = [64, 64], strides = [1, 1]} : vector<1024x64xbf16> to vector<64x64xbf16>
    %c320 = arith.constant 320 : index
    %c0_22 = arith.constant 0 : index
    %36 = vector.load %arg4[%c320, %c0_22] : memref<1024x128xbf16, #tpu.memory_space<vmem>>, vector<64x128xbf16>
    %cst_23 = arith.constant dense<0.000000e+00> : vector<64x128xf32>
    %37 = tpu.matmul %35, %36, %cst_23 {dimension_numbers = #tpu.dot_dimension_numbers<[1], [0], [0], [1], [0, 0, 1, 1], [], []>} : vector<64x64xbf16>, vector<64x128xbf16>, vector<64x128xf32> -> vector<64x128xf32>
    %38 = arith.addf %34, %37 : vector<64x128xf32>
    %39 = vector.extract_strided_slice %15 {offsets = [384, 0], sizes = [64, 64], strides = [1, 1]} : vector<1024x64xbf16> to vector<64x64xbf16>
    %c384 = arith.constant 384 : index
    %c0_24 = arith.constant 0 : index
    %40 = vector.load %arg4[%c384, %c0_24] : memref<1024x128xbf16, #tpu.memory_space<vmem>>, vector<64x128xbf16>
    %cst_25 = arith.constant dense<0.000000e+00> : vector<64x128xf32>
    %41 = tpu.matmul %39, %40, %cst_25 {dimension_numbers = #tpu.dot_dimension_numbers<[1], [0], [0], [1], [0, 0, 1, 1], [], []>} : vector<64x64xbf16>, vector<64x128xbf16>, vector<64x128xf32> -> vector<64x128xf32>
    %42 = arith.addf %38, %41 : vector<64x128xf32>
    %43 = vector.extract_strided_slice %15 {offsets = [448, 0], sizes = [64, 64], strides = [1, 1]} : vector<1024x64xbf16> to vector<64x64xbf16>
    %c448 = arith.constant 448 : index
    %c0_26 = arith.constant 0 : index
    %44 = vector.load %arg4[%c448, %c0_26] : memref<1024x128xbf16, #tpu.memory_space<vmem>>, vector<64x128xbf16>
    %cst_27 = arith.constant dense<0.000000e+00> : vector<64x128xf32>
    %45 = tpu.matmul %43, %44, %cst_27 {dimension_numbers = #tpu.dot_dimension_numbers<[1], [0], [0], [1], [0, 0, 1, 1], [], []>} : vector<64x64xbf16>, vector<64x128xbf16>, vector<64x128xf32> -> vector<64x128xf32>
    %46 = arith.addf %42, %45 : vector<64x128xf32>
    %47 = vector.extract_strided_slice %15 {offsets = [512, 0], sizes = [64, 64], strides = [1, 1]} : vector<1024x64xbf16> to vector<64x64xbf16>
    %c512 = arith.constant 512 : index
    %c0_28 = arith.constant 0 : index
    %48 = vector.load %arg4[%c512, %c0_28] : memref<1024x128xbf16, #tpu.memory_space<vmem>>, vector<64x128xbf16>
    %cst_29 = arith.constant dense<0.000000e+00> : vector<64x128xf32>
    %49 = tpu.matmul %47, %48, %cst_29 {dimension_numbers = #tpu.dot_dimension_numbers<[1], [0], [0], [1], [0, 0, 1, 1], [], []>} : vector<64x64xbf16>, vector<64x128xbf16>, vector<64x128xf32> -> vector<64x128xf32>
    %50 = arith.addf %46, %49 : vector<64x128xf32>
    %51 = vector.extract_strided_slice %15 {offsets = [576, 0], sizes = [64, 64], strides = [1, 1]} : vector<1024x64xbf16> to vector<64x64xbf16>
    %c576 = arith.constant 576 : index
    %c0_30 = arith.constant 0 : index
    %52 = vector.load %arg4[%c576, %c0_30] : memref<1024x128xbf16, #tpu.memory_space<vmem>>, vector<64x128xbf16>
    %cst_31 = arith.constant dense<0.000000e+00> : vector<64x128xf32>
    %53 = tpu.matmul %51, %52, %cst_31 {dimension_numbers = #tpu.dot_dimension_numbers<[1], [0], [0], [1], [0, 0, 1, 1], [], []>} : vector<64x64xbf16>, vector<64x128xbf16>, vector<64x128xf32> -> vector<64x128xf32>
    %54 = arith.addf %50, %53 : vector<64x128xf32>
    %55 = vector.extract_strided_slice %15 {offsets = [640, 0], sizes = [64, 64], strides = [1, 1]} : vector<1024x64xbf16> to vector<64x64xbf16>
    %c640 = arith.constant 640 : index
    %c0_32 = arith.constant 0 : index
    %56 = vector.load %arg4[%c640, %c0_32] : memref<1024x128xbf16, #tpu.memory_space<vmem>>, vector<64x128xbf16>
    %cst_33 = arith.constant dense<0.000000e+00> : vector<64x128xf32>
    %57 = tpu.matmul %55, %56, %cst_33 {dimension_numbers = #tpu.dot_dimension_numbers<[1], [0], [0], [1], [0, 0, 1, 1], [], []>} : vector<64x64xbf16>, vector<64x128xbf16>, vector<64x128xf32> -> vector<64x128xf32>
    %58 = arith.addf %54, %57 : vector<64x128xf32>
    %59 = vector.extract_strided_slice %15 {offsets = [704, 0], sizes = [64, 64], strides = [1, 1]} : vector<1024x64xbf16> to vector<64x64xbf16>
    %c704 = arith.constant 704 : index
    %c0_34 = arith.constant 0 : index
    %60 = vector.load %arg4[%c704, %c0_34] : memref<1024x128xbf16, #tpu.memory_space<vmem>>, vector<64x128xbf16>
    %cst_35 = arith.constant dense<0.000000e+00> : vector<64x128xf32>
    %61 = tpu.matmul %59, %60, %cst_35 {dimension_numbers = #tpu.dot_dimension_numbers<[1], [0], [0], [1], [0, 0, 1, 1], [], []>} : vector<64x64xbf16>, vector<64x128xbf16>, vector<64x128xf32> -> vector<64x128xf32>
    %62 = arith.addf %58, %61 : vector<64x128xf32>
    %63 = vector.extract_strided_slice %15 {offsets = [768, 0], sizes = [64, 64], strides = [1, 1]} : vector<1024x64xbf16> to vector<64x64xbf16>
    %c768 = arith.constant 768 : index
    %c0_36 = arith.constant 0 : index
    %64 = vector.load %arg4[%c768, %c0_36] : memref<1024x128xbf16, #tpu.memory_space<vmem>>, vector<64x128xbf16>
    %cst_37 = arith.constant dense<0.000000e+00> : vector<64x128xf32>
    %65 = tpu.matmul %63, %64, %cst_37 {dimension_numbers = #tpu.dot_dimension_numbers<[1], [0], [0], [1], [0, 0, 1, 1], [], []>} : vector<64x64xbf16>, vector<64x128xbf16>, vector<64x128xf32> -> vector<64x128xf32>
    %66 = arith.addf %62, %65 : vector<64x128xf32>
    %67 = vector.extract_strided_slice %15 {offsets = [832, 0], sizes = [64, 64], strides = [1, 1]} : vector<1024x64xbf16> to vector<64x64xbf16>
    %c832 = arith.constant 832 : index
    %c0_38 = arith.constant 0 : index
    %68 = vector.load %arg4[%c832, %c0_38] : memref<1024x128xbf16, #tpu.memory_space<vmem>>, vector<64x128xbf16>
    %cst_39 = arith.constant dense<0.000000e+00> : vector<64x128xf32>
    %69 = tpu.matmul %67, %68, %cst_39 {dimension_numbers = #tpu.dot_dimension_numbers<[1], [0], [0], [1], [0, 0, 1, 1], [], []>} : vector<64x64xbf16>, vector<64x128xbf16>, vector<64x128xf32> -> vector<64x128xf32>
    %70 = arith.addf %66, %69 : vector<64x128xf32>
    %71 = vector.extract_strided_slice %15 {offsets = [896, 0], sizes = [64, 64], strides = [1, 1]} : vector<1024x64xbf16> to vector<64x64xbf16>
    %c896 = arith.constant 896 : index
    %c0_40 = arith.constant 0 : index
    %72 = vector.load %arg4[%c896, %c0_40] : memref<1024x128xbf16, #tpu.memory_space<vmem>>, vector<64x128xbf16>
    %cst_41 = arith.constant dense<0.000000e+00> : vector<64x128xf32>
    %73 = tpu.matmul %71, %72, %cst_41 {dimension_numbers = #tpu.dot_dimension_numbers<[1], [0], [0], [1], [0, 0, 1, 1], [], []>} : vector<64x64xbf16>, vector<64x128xbf16>, vector<64x128xf32> -> vector<64x128xf32>
    %74 = arith.addf %70, %73 : vector<64x128xf32>
    %75 = vector.extract_strided_slice %15 {offsets = [960, 0], sizes = [64, 64], strides = [1, 1]} : vector<1024x64xbf16> to vector<64x64xbf16>
    %c960 = arith.constant 960 : index
    %c0_42 = arith.constant 0 : index
    %76 = vector.load %arg4[%c960, %c0_42] : memref<1024x128xbf16, #tpu.memory_space<vmem>>, vector<64x128xbf16>
    %cst_43 = arith.constant dense<0.000000e+00> : vector<64x128xf32>
    %77 = tpu.matmul %75, %76, %cst_43 {dimension_numbers = #tpu.dot_dimension_numbers<[1], [0], [0], [1], [0, 0, 1, 1], [], []>} : vector<64x64xbf16>, vector<64x128xbf16>, vector<64x128xf32> -> vector<64x128xf32>
    %78 = arith.addf %74, %77 : vector<64x128xf32>
    %c0_44 = arith.constant 0 : index
    %c0_45 = arith.constant 0 : index
    %79 = vector.load %arg8[%c0_44, %c0_45] : memref<1x128xf32, #tpu.memory_space<vmem>>, vector<1x128xf32>
    %80 = vector.broadcast %79 : vector<1x128xf32> to vector<64x128xf32>
    %81 = arith.addf %78, %80 : vector<64x128xf32>
    %cst_46 = arith.constant 0.000000e+00 : f32
    %82 = vector.broadcast %cst_46 : f32 to vector<64x128xf32>
    %83 = arith.cmpf ogt, %81, %82 : vector<64x128xf32>
    %cst_47 = arith.constant 2.000000e-01 : f32
    %84 = vector.broadcast %cst_47 : f32 to vector<64x128xf32>
    %85 = arith.mulf %84, %81 : vector<64x128xf32>
    %86 = arith.select %83, %81, %85 : vector<64x128xi1>, vector<64x128xf32>
    %87 = arith.truncf %86 : vector<64x128xf32> to vector<64x128xbf16>
    %c0_48 = arith.constant 0 : index
    %c0_49 = arith.constant 0 : index
    %88 = vector.load %arg5[%c0_48, %c0_49] : memref<256x64xbf16, #tpu.memory_space<vmem>>, vector<256x64xbf16>
    %cst_50 = arith.constant dense<0.000000e+00> : vector<256x128xf32>
    %89 = tpu.matmul %88, %87, %cst_50 {dimension_numbers = #tpu.dot_dimension_numbers<[1], [0], [0], [1], [0, 0, 1, 1], [], []>} : vector<256x64xbf16>, vector<64x128xbf16>, vector<256x128xf32> -> vector<256x128xf32>
    %90 = arith.truncf %89 : vector<256x128xf32> to vector<256x128xbf16>
    %91 = vector.extract_strided_slice %90 {offsets = [0, 0], sizes = [16, 128], strides = [1, 1]} : vector<256x128xbf16> to vector<16x128xbf16>
    %c0_51 = arith.constant 0 : index
    %c0_52 = arith.constant 0 : index
    %92 = vector.load %arg6[%c0_51, %c0_52] : memref<2048x256xbf16, #tpu.memory_space<vmem>>, vector<128x256xbf16>
    %cst_53 = arith.constant dense<0.000000e+00> : vector<16x256xf32>
    %93 = tpu.matmul %91, %92, %cst_53 {dimension_numbers = #tpu.dot_dimension_numbers<[1], [0], [0], [1], [0, 0, 1, 1], [], []>} : vector<16x128xbf16>, vector<128x256xbf16>, vector<16x256xf32> -> vector<16x256xf32>
    %94 = vector.extract_strided_slice %90 {offsets = [16, 0], sizes = [16, 128], strides = [1, 1]} : vector<256x128xbf16> to vector<16x128xbf16>
    %c128_54 = arith.constant 128 : index
    %c0_55 = arith.constant 0 : index
    %95 = vector.load %arg6[%c128_54, %c0_55] : memref<2048x256xbf16, #tpu.memory_space<vmem>>, vector<128x256xbf16>
    %cst_56 = arith.constant dense<0.000000e+00> : vector<16x256xf32>
    %96 = tpu.matmul %94, %95, %cst_56 {dimension_numbers = #tpu.dot_dimension_numbers<[1], [0], [0], [1], [0, 0, 1, 1], [], []>} : vector<16x128xbf16>, vector<128x256xbf16>, vector<16x256xf32> -> vector<16x256xf32>
    %97 = arith.addf %93, %96 : vector<16x256xf32>
    %98 = vector.extract_strided_slice %90 {offsets = [32, 0], sizes = [16, 128], strides = [1, 1]} : vector<256x128xbf16> to vector<16x128xbf16>
    %c256_57 = arith.constant 256 : index
    %c0_58 = arith.constant 0 : index
    %99 = vector.load %arg6[%c256_57, %c0_58] : memref<2048x256xbf16, #tpu.memory_space<vmem>>, vector<128x256xbf16>
    %cst_59 = arith.constant dense<0.000000e+00> : vector<16x256xf32>
    %100 = tpu.matmul %98, %99, %cst_59 {dimension_numbers = #tpu.dot_dimension_numbers<[1], [0], [0], [1], [0, 0, 1, 1], [], []>} : vector<16x128xbf16>, vector<128x256xbf16>, vector<16x256xf32> -> vector<16x256xf32>
    %101 = arith.addf %97, %100 : vector<16x256xf32>
    %102 = vector.extract_strided_slice %90 {offsets = [48, 0], sizes = [16, 128], strides = [1, 1]} : vector<256x128xbf16> to vector<16x128xbf16>
    %c384_60 = arith.constant 384 : index
    %c0_61 = arith.constant 0 : index
    %103 = vector.load %arg6[%c384_60, %c0_61] : memref<2048x256xbf16, #tpu.memory_space<vmem>>, vector<128x256xbf16>
    %cst_62 = arith.constant dense<0.000000e+00> : vector<16x256xf32>
    %104 = tpu.matmul %102, %103, %cst_62 {dimension_numbers = #tpu.dot_dimension_numbers<[1], [0], [0], [1], [0, 0, 1, 1], [], []>} : vector<16x128xbf16>, vector<128x256xbf16>, vector<16x256xf32> -> vector<16x256xf32>
    %105 = arith.addf %101, %104 : vector<16x256xf32>
    %106 = vector.extract_strided_slice %90 {offsets = [64, 0], sizes = [16, 128], strides = [1, 1]} : vector<256x128xbf16> to vector<16x128xbf16>
    %c512_63 = arith.constant 512 : index
    %c0_64 = arith.constant 0 : index
    %107 = vector.load %arg6[%c512_63, %c0_64] : memref<2048x256xbf16, #tpu.memory_space<vmem>>, vector<128x256xbf16>
    %cst_65 = arith.constant dense<0.000000e+00> : vector<16x256xf32>
    %108 = tpu.matmul %106, %107, %cst_65 {dimension_numbers = #tpu.dot_dimension_numbers<[1], [0], [0], [1], [0, 0, 1, 1], [], []>} : vector<16x128xbf16>, vector<128x256xbf16>, vector<16x256xf32> -> vector<16x256xf32>
    %109 = arith.addf %105, %108 : vector<16x256xf32>
    %110 = vector.extract_strided_slice %90 {offsets = [80, 0], sizes = [16, 128], strides = [1, 1]} : vector<256x128xbf16> to vector<16x128xbf16>
    %c640_66 = arith.constant 640 : index
    %c0_67 = arith.constant 0 : index
    %111 = vector.load %arg6[%c640_66, %c0_67] : memref<2048x256xbf16, #tpu.memory_space<vmem>>, vector<128x256xbf16>
    %cst_68 = arith.constant dense<0.000000e+00> : vector<16x256xf32>
    %112 = tpu.matmul %110, %111, %cst_68 {dimension_numbers = #tpu.dot_dimension_numbers<[1], [0], [0], [1], [0, 0, 1, 1], [], []>} : vector<16x128xbf16>, vector<128x256xbf16>, vector<16x256xf32> -> vector<16x256xf32>
    %113 = arith.addf %109, %112 : vector<16x256xf32>
    %114 = vector.extract_strided_slice %90 {offsets = [96, 0], sizes = [16, 128], strides = [1, 1]} : vector<256x128xbf16> to vector<16x128xbf16>
    %c768_69 = arith.constant 768 : index
    %c0_70 = arith.constant 0 : index
    %115 = vector.load %arg6[%c768_69, %c0_70] : memref<2048x256xbf16, #tpu.memory_space<vmem>>, vector<128x256xbf16>
    %cst_71 = arith.constant dense<0.000000e+00> : vector<16x256xf32>
    %116 = tpu.matmul %114, %115, %cst_71 {dimension_numbers = #tpu.dot_dimension_numbers<[1], [0], [0], [1], [0, 0, 1, 1], [], []>} : vector<16x128xbf16>, vector<128x256xbf16>, vector<16x256xf32> -> vector<16x256xf32>
    %117 = arith.addf %113, %116 : vector<16x256xf32>
    %118 = vector.extract_strided_slice %90 {offsets = [112, 0], sizes = [16, 128], strides = [1, 1]} : vector<256x128xbf16> to vector<16x128xbf16>
    %c896_72 = arith.constant 896 : index
    %c0_73 = arith.constant 0 : index
    %119 = vector.load %arg6[%c896_72, %c0_73] : memref<2048x256xbf16, #tpu.memory_space<vmem>>, vector<128x256xbf16>
    %cst_74 = arith.constant dense<0.000000e+00> : vector<16x256xf32>
    %120 = tpu.matmul %118, %119, %cst_74 {dimension_numbers = #tpu.dot_dimension_numbers<[1], [0], [0], [1], [0, 0, 1, 1], [], []>} : vector<16x128xbf16>, vector<128x256xbf16>, vector<16x256xf32> -> vector<16x256xf32>
    %121 = arith.addf %117, %120 : vector<16x256xf32>
    %122 = vector.extract_strided_slice %90 {offsets = [128, 0], sizes = [16, 128], strides = [1, 1]} : vector<256x128xbf16> to vector<16x128xbf16>
    %c1024 = arith.constant 1024 : index
    %c0_75 = arith.constant 0 : index
    %123 = vector.load %arg6[%c1024, %c0_75] : memref<2048x256xbf16, #tpu.memory_space<vmem>>, vector<128x256xbf16>
    %cst_76 = arith.constant dense<0.000000e+00> : vector<16x256xf32>
    %124 = tpu.matmul %122, %123, %cst_76 {dimension_numbers = #tpu.dot_dimension_numbers<[1], [0], [0], [1], [0, 0, 1, 1], [], []>} : vector<16x128xbf16>, vector<128x256xbf16>, vector<16x256xf32> -> vector<16x256xf32>
    %125 = arith.addf %121, %124 : vector<16x256xf32>
    %126 = vector.extract_strided_slice %90 {offsets = [144, 0], sizes = [16, 128], strides = [1, 1]} : vector<256x128xbf16> to vector<16x128xbf16>
    %c1152 = arith.constant 1152 : index
    %c0_77 = arith.constant 0 : index
    %127 = vector.load %arg6[%c1152, %c0_77] : memref<2048x256xbf16, #tpu.memory_space<vmem>>, vector<128x256xbf16>
    %cst_78 = arith.constant dense<0.000000e+00> : vector<16x256xf32>
    %128 = tpu.matmul %126, %127, %cst_78 {dimension_numbers = #tpu.dot_dimension_numbers<[1], [0], [0], [1], [0, 0, 1, 1], [], []>} : vector<16x128xbf16>, vector<128x256xbf16>, vector<16x256xf32> -> vector<16x256xf32>
    %129 = arith.addf %125, %128 : vector<16x256xf32>
    %130 = vector.extract_strided_slice %90 {offsets = [160, 0], sizes = [16, 128], strides = [1, 1]} : vector<256x128xbf16> to vector<16x128xbf16>
    %c1280 = arith.constant 1280 : index
    %c0_79 = arith.constant 0 : index
    %131 = vector.load %arg6[%c1280, %c0_79] : memref<2048x256xbf16, #tpu.memory_space<vmem>>, vector<128x256xbf16>
    %cst_80 = arith.constant dense<0.000000e+00> : vector<16x256xf32>
    %132 = tpu.matmul %130, %131, %cst_80 {dimension_numbers = #tpu.dot_dimension_numbers<[1], [0], [0], [1], [0, 0, 1, 1], [], []>} : vector<16x128xbf16>, vector<128x256xbf16>, vector<16x256xf32> -> vector<16x256xf32>
    %133 = arith.addf %129, %132 : vector<16x256xf32>
    %134 = vector.extract_strided_slice %90 {offsets = [176, 0], sizes = [16, 128], strides = [1, 1]} : vector<256x128xbf16> to vector<16x128xbf16>
    %c1408 = arith.constant 1408 : index
    %c0_81 = arith.constant 0 : index
    %135 = vector.load %arg6[%c1408, %c0_81] : memref<2048x256xbf16, #tpu.memory_space<vmem>>, vector<128x256xbf16>
    %cst_82 = arith.constant dense<0.000000e+00> : vector<16x256xf32>
    %136 = tpu.matmul %134, %135, %cst_82 {dimension_numbers = #tpu.dot_dimension_numbers<[1], [0], [0], [1], [0, 0, 1, 1], [], []>} : vector<16x128xbf16>, vector<128x256xbf16>, vector<16x256xf32> -> vector<16x256xf32>
    %137 = arith.addf %133, %136 : vector<16x256xf32>
    %138 = vector.extract_strided_slice %90 {offsets = [192, 0], sizes = [16, 128], strides = [1, 1]} : vector<256x128xbf16> to vector<16x128xbf16>
    %c1536 = arith.constant 1536 : index
    %c0_83 = arith.constant 0 : index
    %139 = vector.load %arg6[%c1536, %c0_83] : memref<2048x256xbf16, #tpu.memory_space<vmem>>, vector<128x256xbf16>
    %cst_84 = arith.constant dense<0.000000e+00> : vector<16x256xf32>
    %140 = tpu.matmul %138, %139, %cst_84 {dimension_numbers = #tpu.dot_dimension_numbers<[1], [0], [0], [1], [0, 0, 1, 1], [], []>} : vector<16x128xbf16>, vector<128x256xbf16>, vector<16x256xf32> -> vector<16x256xf32>
    %141 = arith.addf %137, %140 : vector<16x256xf32>
    %142 = vector.extract_strided_slice %90 {offsets = [208, 0], sizes = [16, 128], strides = [1, 1]} : vector<256x128xbf16> to vector<16x128xbf16>
    %c1664 = arith.constant 1664 : index
    %c0_85 = arith.constant 0 : index
    %143 = vector.load %arg6[%c1664, %c0_85] : memref<2048x256xbf16, #tpu.memory_space<vmem>>, vector<128x256xbf16>
    %cst_86 = arith.constant dense<0.000000e+00> : vector<16x256xf32>
    %144 = tpu.matmul %142, %143, %cst_86 {dimension_numbers = #tpu.dot_dimension_numbers<[1], [0], [0], [1], [0, 0, 1, 1], [], []>} : vector<16x128xbf16>, vector<128x256xbf16>, vector<16x256xf32> -> vector<16x256xf32>
    %145 = arith.addf %141, %144 : vector<16x256xf32>
    %146 = vector.extract_strided_slice %90 {offsets = [224, 0], sizes = [16, 128], strides = [1, 1]} : vector<256x128xbf16> to vector<16x128xbf16>
    %c1792 = arith.constant 1792 : index
    %c0_87 = arith.constant 0 : index
    %147 = vector.load %arg6[%c1792, %c0_87] : memref<2048x256xbf16, #tpu.memory_space<vmem>>, vector<128x256xbf16>
    %cst_88 = arith.constant dense<0.000000e+00> : vector<16x256xf32>
    %148 = tpu.matmul %146, %147, %cst_88 {dimension_numbers = #tpu.dot_dimension_numbers<[1], [0], [0], [1], [0, 0, 1, 1], [], []>} : vector<16x128xbf16>, vector<128x256xbf16>, vector<16x256xf32> -> vector<16x256xf32>
    %149 = arith.addf %145, %148 : vector<16x256xf32>
    %150 = vector.extract_strided_slice %90 {offsets = [240, 0], sizes = [16, 128], strides = [1, 1]} : vector<256x128xbf16> to vector<16x128xbf16>
    %c1920 = arith.constant 1920 : index
    %c0_89 = arith.constant 0 : index
    %151 = vector.load %arg6[%c1920, %c0_89] : memref<2048x256xbf16, #tpu.memory_space<vmem>>, vector<128x256xbf16>
    %cst_90 = arith.constant dense<0.000000e+00> : vector<16x256xf32>
    %152 = tpu.matmul %150, %151, %cst_90 {dimension_numbers = #tpu.dot_dimension_numbers<[1], [0], [0], [1], [0, 0, 1, 1], [], []>} : vector<16x128xbf16>, vector<128x256xbf16>, vector<16x256xf32> -> vector<16x256xf32>
    %153 = arith.addf %149, %152 : vector<16x256xf32>
    %c0_91 = arith.constant 0 : index
    %c0_92 = arith.constant 0 : index
    %154 = vector.load %arg9[%c0_91, %c0_92] : memref<1x256xf32, #tpu.memory_space<vmem>>, vector<1x256xf32>
    %155 = vector.broadcast %154 : vector<1x256xf32> to vector<16x256xf32>
    %156 = arith.addf %153, %155 : vector<16x256xf32>
    %cst_93 = arith.constant 0.000000e+00 : f32
    %157 = vector.broadcast %cst_93 : f32 to vector<16x256xf32>
    %158 = arith.cmpf ogt, %156, %157 : vector<16x256xf32>
    %cst_94 = arith.constant 2.000000e-01 : f32
    %159 = vector.broadcast %cst_94 : f32 to vector<16x256xf32>
    %160 = arith.mulf %159, %156 : vector<16x256xf32>
    %161 = arith.select %158, %156, %160 : vector<16x256xi1>, vector<16x256xf32>
    %c0_95 = arith.constant 0 : index
    %c0_96 = arith.constant 0 : index
    %c0_97 = arith.constant 0 : index
    %162 = vector.load %arg10[%c0_95, %c0_96, %c0_97] : memref<1x16x256xf32, #tpu.memory_space<vmem>>, vector<1x16x256xf32>
    %163 = vector.shape_cast %162 : vector<1x16x256xf32> to vector<16x256xf32>
    %164 = vector.shape_cast %161 : vector<16x256xf32> to vector<1x16x256xf32>
    tpu.vector_store %arg10[%c0_95, %c0_96, %c0_97], %164 {strides = array<i32>} : memref<1x16x256xf32, #tpu.memory_space<vmem>>, vector<1x16x256xf32>,
    return
  }
  func.func @transform_0(%arg0: i32) -> (i32, i32, i32) {
    %c0_i32 = arith.constant 0 : i32
    %c0_i32_0 = arith.constant 0 : i32
    %c0_i32_1 = arith.constant 0 : i32
    return %arg0, %c0_i32, %c0_i32_0 : i32, i32, i32
  }
  func.func @transform_1(%arg0: i32) -> (i32, i32) {
    %c0_i32 = arith.constant 0 : i32
    %c0_i32_0 = arith.constant 0 : i32
    %c0_i32_1 = arith.constant 0 : i32
    return %c0_i32, %c0_i32_0 : i32, i32
  }
  func.func @transform_2(%arg0: i32) -> (i32, i32) {
    %c0_i32 = arith.constant 0 : i32
    %c0_i32_0 = arith.constant 0 : i32
    %c0_i32_1 = arith.constant 0 : i32
    return %c0_i32, %c0_i32_0 : i32, i32
  }
  func.func @transform_3(%arg0: i32) -> (i32, i32) {
    %c0_i32 = arith.constant 0 : i32
    %c0_i32_0 = arith.constant 0 : i32
    %c0_i32_1 = arith.constant 0 : i32
    return %c0_i32, %c0_i32_0 : i32, i32
  }
  func.func @transform_4(%arg0: i32) -> (i32, i32) {
    %c0_i32 = arith.constant 0 : i32
    %c0_i32_0 = arith.constant 0 : i32
    %c0_i32_1 = arith.constant 0 : i32
    return %c0_i32, %c0_i32_0 : i32, i32
  }
  func.func @transform_5(%arg0: i32) -> (i32, i32) {
    %c0_i32 = arith.constant 0 : i32
    %c0_i32_0 = arith.constant 0 : i32
    %c0_i32_1 = arith.constant 0 : i32
    return %c0_i32, %c0_i32_0 : i32, i32
  }
  func.func @transform_6(%arg0: i32) -> (i32, i32) {
    %c0_i32 = arith.constant 0 : i32
    %c0_i32_0 = arith.constant 0 : i32
    %c0_i32_1 = arith.constant 0 : i32
    return %c0_i32, %c0_i32_0 : i32, i32
  }
  func.func @transform_7(%arg0: i32) -> (i32, i32) {
    %c0_i32 = arith.constant 0 : i32
    %c0_i32_0 = arith.constant 0 : i32
    %c0_i32_1 = arith.constant 0 : i32
    return %c0_i32, %c0_i32_0 : i32, i32
  }
  func.func @transform_8(%arg0: i32) -> (i32, i32) {
    %c0_i32 = arith.constant 0 : i32
    %c0_i32_0 = arith.constant 0 : i32
    %c0_i32_1 = arith.constant 0 : i32
    return %c0_i32, %c0_i32_0 : i32, i32
  }
  func.func @transform_9(%arg0: i32) -> (i32, i32, i32) {
    %c0_i32 = arith.constant 0 : i32
    %c0_i32_0 = arith.constant 0 : i32
    %c0_i32_1 = arith.constant 0 : i32
    return %arg0, %c0_i32, %c0_i32_0 : i32, i32, i32
  }
}

</mosaic_0001>

<bundles_post_ra>
// kernel: encoder_forward.1
= control target key start
LH: loop header
LB: loop body
LE: loop exit
PB: predicated region body
PF: predicated region fallthrough
CT: control target
= control target key end

     0   :  { %s8810_s30 = smov 0   ;;  %s10602_s0 = inlined_call_operand.vmem [shape: bf16[2,256,64], index: 0, kind: input, shape index: {}]   ;;  %s10603_s1 = inlined_call_operand.vmem [shape: bf16[64,64], index: 1, kind: input, shape index: {}]   ;;  %s10604_s2 = inlined_call_operand.vmem [shape: bf16[1024,256], index: 2, kind: input, shape index: {}]   ;;  %s10605_s3 = inlined_call_operand.vmem [shape: bf16[1024,128], index: 3, kind: input, shape index: {}]   ;;  %s10606_s4 = inlined_call_operand.vmem [shape: bf16[256,64], index: 4, kind: input, shape index: {}]   ;;  %s10607_s5 = inlined_call_operand.vmem [shape: bf16[2048,256], index: 5, kind: input, shape index: {}]   ;;  %s10608_s6 = inlined_call_operand.vmem [shape: f32[1,64], index: 6, kind: input, shape index: {}]   ;;  %s10609_s7 = inlined_call_operand.vmem [shape: f32[1,128], index: 7, kind: input, shape index: {}]   ;;  %s10610_s8 = inlined_call_operand.vmem [shape: f32[1,256], index: 8, kind: input, shape index: {}]   ;;  %s10611_s9 = inlined_call_operand.vmem [shape: f32[2,16,256], index: 9, kind: output, shape index: {}]  }
   0x1 LB: > { %s6787_s10 = sadd.s32 4294967295, %s8757_s30   ;;  %p6791_p0 = scmp.ge.s32.totalorder %s8757_s30, 1  ;;  %s8757_s30 = sphi %s8810_s30, %s19_s30  }
   0x2   : > { %p287_p1 = scmp.lt.s32.totalorder %s8757_s30, 3 }
   0x4   : > { %p288_p2 = pnand %p6791_p0, %p287_p1 }
   0x5   : > { %v8075_v0 = vld [vmem:[%s10603_s1] sm:$0xff] (!%p288_p2)   ;;  %p323_p3 = scmp.lt.s32.totalorder (!%p288_p2), %s6787_s10, 1  ;;  %v8076_v1 = vld [vmem:[%s10603_s1 + $0x8] sm:$0xff] (!%p288_p2)   ;;  %v8077_v2 = vld [vmem:[%s10603_s1 + $0x10] sm:$0xff] (!%p288_p2)   ;;  %vm485_vm0 = vcmask (!%p288_p2), 523264   ;;  %v8759_v20 = vmov (!%p288_p2), 0  }
   0x6   : > { %291 = sbr.rel (%p288_p2) target bundleno = 2121 (0x849), region = 56  ;;  %7550 = vmatprep.subr.bf16.mxu1 (!%p288_p2), %v8075_v0  ;;  %v8078_v4 = vld [vmem:[%s10603_s1 + $0x18] sm:$0xff] (!%p288_p2)   ;;  %v8097_v21 = vld [vmem:[%s10604_s2 + $0x4] ss:$8 sps:$4 sm:$0xff] (!%p288_p2)   ;;  %v8877_v22 = vld [vmem:[%s10608_s6] ss:$0 sm:$0xff] (!%p288_p2) }
   0x7   : > { %7551 = vmatpush3.bf16.msra.mxu1 (!%p288_p2), %v8075_v0 }
   0x8   : > { %7552 = vmatprep.subr.bf16.mxu1 (!%p288_p2), %v8076_v1 }
   0xb   : > { %7553 = vmatpush3.bf16.msra.mxu1 (!%p288_p2), %v8076_v1 }
   0xc   : > { %7554 = vmatprep.subr.bf16.mxu1 (!%p288_p2), %v8077_v2 }
   0xd   : > { %s10613_s10 = smov (!%p323_p3, %s6787_s10), 1 }
   0xe   : > { %s7380_s17 = sshll.u32 %s10613_s10, 7  ;;  %s7381_s26 = sshll.u32 %s10613_s10, 5 }
   0xf   : > { %s8833_s20 = scalar_lea.vmem %s10602_s0, %s7380_s17  ;;  %7555 = vmatpush3.bf16.msra.mxu1 %v8077_v2  ;;  %s332_s29 = scalar_lea.vmem %s10611_s9, %s7381_s26 }
  0x10   : > { %v8079_v3 = vld [vmem:[%s8833_s20] sm:$0xff]   ;;  %7556 = vmatprep.subr.bf16.mxu1 %v8078_v4  ;;  %v8080_v5 = vld [vmem:[%s8833_s20 + $0x8] sm:$0xff]   ;;  %v8081_v6 = vld [vmem:[%s8833_s20 + $0x10] sm:$0xff]  }
  0x11   : > { %7558 = vmatprep.mubr.msk.bf16.mxu1 %vm485_vm0, %v8079_v3  ;;  %v8082_v7 = vld [vmem:[%s8833_s20 + $0x18] sm:$0xff]   ;;  %v8083_v8 = vld [vmem:[%s8833_s20 + $0x20] sm:$0xff]   ;;  %v8084_v9 = vld [vmem:[%s8833_s20 + $0x28] sm:$0xff]  }
  0x12   : > { %v8085_v10 = vld [vmem:[%s8833_s20 + $0x30] sm:$0xff]   ;;  %v8086_v11 = vld [vmem:[%s8833_s20 + $0x38] sm:$0xff]   ;;  %v8087_v12 = vld [vmem:[%s8833_s20 + $0x40] sm:$0xff]  }
  0x13   : > { %7557 = vmatpush3.bf16.msra.mxu1 %v8078_v4  ;;  %v8088_v13 = vld [vmem:[%s8833_s20 + $0x48] sm:$0xff]   ;;  %v8089_v14 = vld [vmem:[%s8833_s20 + $0x50] sm:$0xff]   ;;  %v8090_v15 = vld [vmem:[%s8833_s20 + $0x58] sm:$0xff]  }
  0x14   : > { %v8091_v16 = vld [vmem:[%s8833_s20 + $0x60] sm:$0xff]   ;;  %v8092_v17 = vld [vmem:[%s8833_s20 + $0x68] sm:$0xff]   ;;  %v8093_v18 = vld [vmem:[%s8833_s20 + $0x70] sm:$0xff]   ;;  %1575 = vmatprep.subr.bf16.mxu1 %v8759_v20 }
  0x15   : > { %v8094_v19 = vld [vmem:[%s8833_s20 + $0x78] sm:$0xff]  }
  0x16   : > { %7559 = vmatmul.mubr.msk.bf16.vlgmr.msra.gmra.mrb[0].mxu1 %vm485_vm0, %v8080_v5 }
  0x17   : > { %7562 = vmatprep.mubr.msk.bf16.mxu1 %vm485_vm0, %v8081_v6 }
  0x1e   : > { %7563 = vmatmul.mubr.msk.bf16.gmra.mrb[4].mxu1 %vm485_vm0, %v8082_v7 }
  0x1f   : > { %7566 = vmatprep.mubr.msk.bf16.mxu1 %vm485_vm0, %v8083_v8 }
  0x26   : > { %7567 = vmatmul.mubr.msk.bf16.gmra.mrb[8].mxu1 %vm485_vm0, %v8084_v9 }
  0x27   : > { %7570 = vmatprep.mubr.msk.bf16.mxu1 %vm485_vm0, %v8085_v10 }
  0x2e   : > { %7571 = vmatmul.mubr.msk.bf16.gmra.mrb[12].mxu1 %vm485_vm0, %v8086_v11 }
  0x2f   : > { %7574 = vmatprep.mubr.msk.bf16.mxu1 %vm485_vm0, %v8087_v12 }
  0x36   : > { %7575 = vmatmul.mubr.msk.bf16.gmra.mrb[16].mxu1 %vm485_vm0, %v8088_v13 }
  0x37   : > { %7578 = vmatprep.mubr.msk.bf16.mxu1 %vm485_vm0, %v8089_v14 }
  0x3e   : > { %7579 = vmatmul.mubr.msk.bf16.gmra.mrb[20].mxu1 %vm485_vm0, %v8090_v15 }
  0x3f   : > { %7582 = vmatprep.mubr.msk.bf16.mxu1 %vm485_vm0, %v8091_v16 }
  0x46   : > { %7583 = vmatmul.mubr.msk.bf16.gmra.mrb[24].mxu1 %vm485_vm0, %v8092_v17 }
  0x47   : > { %7586 = vmatprep.mubr.msk.bf16.mxu1 %vm485_vm0, %v8093_v18 }
  0x4e   : > { %7587 = vmatmul.mubr.msk.bf16.gmra.mrb[28].mxu1 %vm485_vm0, %v8094_v19 }
  0x4f   : > { %1607 = vmatprep.mubr.bf16.mxu1 %v8097_v21 }
  0xe9   : > { %v7560_v23 = vpop.f32.mrb[0].mxu1 }
  0xea   : > { %v577_v24 = vadd.f32 %v7560_v23, %v8877_v22  ;;  %v568_v25 = vpop.f32.mrb[1].mxu1 }
  0xeb   : > { %v569_v26 = vadd.f32 %v8877_v22, %v568_v25  ;;  %v7561_v27 = vpop.f32.mrb[2].mxu1 }
  0xec   : > { %v729_v28 = vmul.f32 0.2, %v577_v24  ;;  %v580_v29 = vadd.f32 %v7561_v27, %v8877_v22  ;;  %v571_v30 = vpop.f32.mrb[3].mxu1  ;;  %vm697_vm1 = vcmp.gt.f32.partialorder %v577_v24, 0.0 }
  0xed   : > { %v727_v31 = vmul.f32 0.2, %v569_v26  ;;  %v572_v32 = vadd.f32 %v8877_v22, %v571_v30  ;;  %vm695_vm2 = vcmp.gt.f32.partialorder %v569_v26, 0.0 }
  0xee   : > { %vm698_vm3 = vcmp.gt.f32.partialorder %v580_v29, 0.0  ;;  %v730_v33 = vmul.f32 0.2, %v580_v29  ;;  %v761_v35 = vsel %vm697_vm1, %v577_v24, %v729_v28 }
  0xef   : > { %vm696_vm4 = vcmp.gt.f32.partialorder %v572_v32, 0.0  ;;  %v728_v34 = vmul.f32 0.2, %v572_v32  ;;  %v759_v37 = vsel %vm695_vm2, %v569_v26, %v727_v31 }
  0xf0   : > { %v762_v36 = vsel %vm698_vm3, %v580_v29, %v730_v33 }
  0xf1   : > { %v760_v38 = vsel %vm696_vm4, %v572_v32, %v728_v34  ;;  %v7564_v39 = vpop.f32.mrb[4].mxu1  ;;  %v792_v40 = vpack.c.bf16 %v762_v36, %v761_v35 }
  0xf2   : > { %v593_v41 = vadd.f32 %v7564_v39, %v8877_v22  ;;  %v584_v42 = vpop.f32.mrb[5].mxu1  ;;  %v791_v43 = vpack.c.bf16 %v760_v38, %v759_v37 }
  0xf3   : > { %v585_v44 = vadd.f32 %v8877_v22, %v584_v42  ;;  %v7565_v45 = vpop.f32.mrb[6].mxu1 }
  0xf4   : > { %v733_v46 = vmul.f32 0.2, %v593_v41  ;;  %v596_v47 = vadd.f32 %v7565_v45, %v8877_v22  ;;  %v587_v48 = vpop.f32.mrb[7].mxu1  ;;  %1576 = vmatpush1.bf16.msra.mxu1 %v791_v43  ;;  %vm701_vm5 = vcmp.gt.f32.partialorder %v593_v41, 0.0 }
  0xf5   : > { %v731_v49 = vmul.f32 0.2, %v585_v44  ;;  %v588_v50 = vadd.f32 %v8877_v22, %v587_v48  ;;  %1577 = vmatprep.subr.bf16.mxu1 %v8759_v20  ;;  %vm699_vm6 = vcmp.gt.f32.partialorder %v585_v44, 0.0 }
  0xf6   : > { %vm702_vm7 = vcmp.gt.f32.partialorder %v596_v47, 0.0  ;;  %v734_v51 = vmul.f32 0.2, %v596_v47  ;;  %v765_v53 = vsel %vm701_vm5, %v593_v41, %v733_v46 }
  0xf7   : > { %vm700_vm8 = vcmp.gt.f32.partialorder %v588_v50, 0.0  ;;  %v732_v52 = vmul.f32 0.2, %v588_v50  ;;  %v763_v55 = vsel %vm699_vm6, %v585_v44, %v731_v49 }
  0xf8   : > { %v766_v54 = vsel %vm702_vm7, %v596_v47, %v734_v51  ;;  %1578 = vmatpush1.bf16.msra.mxu1 %v792_v40 }
  0xf9   : > { %v764_v56 = vsel %vm700_vm8, %v588_v50, %v732_v52  ;;  %v7568_v57 = vpop.f32.mrb[8].mxu1  ;;  %1579 = vmatprep.subr.bf16.mxu1 %v8759_v20  ;;  %v794_v58 = vpack.c.bf16 %v766_v54, %v765_v53 }
  0xfa   : > { %v609_v59 = vadd.f32 %v7568_v57, %v8877_v22  ;;  %v600_v60 = vpop.f32.mrb[9].mxu1  ;;  %v793_v61 = vpack.c.bf16 %v764_v56, %v763_v55 }
  0xfb   : > { %v601_v62 = vadd.f32 %v8877_v22, %v600_v60  ;;  %v7569_v63 = vpop.f32.mrb[10].mxu1 }
  0xfc   : > { %v737_v0 = vmul.f32 0.2, %v609_v59  ;;  %v612_v1 = vadd.f32 %v7569_v63, %v8877_v22  ;;  %v603_v2 = vpop.f32.mrb[11].mxu1  ;;  %1580 = vmatpush1.bf16.msra.mxu1 %v793_v61  ;;  %vm705_vm9 = vcmp.gt.f32.partialorder %v609_v59, 0.0 }
  0xfd   : > { %v735_v3 = vmul.f32 0.2, %v601_v62  ;;  %v604_v4 = vadd.f32 %v8877_v22, %v603_v2  ;;  %1581 = vmatprep.subr.bf16.mxu1 %v8759_v20  ;;  %vm703_vm10 = vcmp.gt.f32.partialorder %v601_v62, 0.0 }
  0xfe   : > { %vm706_vm11 = vcmp.gt.f32.partialorder %v612_v1, 0.0  ;;  %v738_v5 = vmul.f32 0.2, %v612_v1  ;;  %v769_v7 = vsel %vm705_vm9, %v609_v59, %v737_v0 }
  0xff   : > { %vm704_vm12 = vcmp.gt.f32.partialorder %v604_v4, 0.0  ;;  %v736_v6 = vmul.f32 0.2, %v604_v4  ;;  %v767_v9 = vsel %vm703_vm10, %v601_v62, %v735_v3 }
 0x100   : > { %v770_v8 = vsel %vm706_vm11, %v612_v1, %v738_v5  ;;  %1582 = vmatpush1.bf16.msra.mxu1 %v794_v58 }
 0x101   : > { %v768_v10 = vsel %vm704_vm12, %v604_v4, %v736_v6  ;;  %v7572_v11 = vpop.f32.mrb[12].mxu1  ;;  %1583 = vmatprep.subr.bf16.mxu1 %v8759_v20  ;;  %v796_v12 = vpack.c.bf16 %v770_v8, %v769_v7 }
 0x102   : > { %v625_v13 = vadd.f32 %v7572_v11, %v8877_v22  ;;  %v616_v14 = vpop.f32.mrb[13].mxu1  ;;  %v795_v15 = vpack.c.bf16 %v768_v10, %v767_v9 }
 0x103   : > { %v617_v16 = vadd.f32 %v8877_v22, %v616_v14  ;;  %v7573_v17 = vpop.f32.mrb[14].mxu1 }
 0x104   : > { %v741_v18 = vmul.f32 0.2, %v625_v13  ;;  %v628_v19 = vadd.f32 %v7573_v17, %v8877_v22  ;;  %v619_v21 = vpop.f32.mrb[15].mxu1  ;;  %1584 = vmatpush1.bf16.msra.mxu1 %v795_v15  ;;  %vm709_vm13 = vcmp.gt.f32.partialorder %v625_v13, 0.0 }
 0x105   : > { %v739_v23 = vmul.f32 0.2, %v617_v16  ;;  %v620_v24 = vadd.f32 %v8877_v22, %v619_v21  ;;  %1585 = vmatprep.subr.bf16.mxu1 %v8759_v20  ;;  %vm707_vm14 = vcmp.gt.f32.partialorder %v617_v16, 0.0 }
 0x106   : > { %vm710_vm15 = vcmp.gt.f32.partialorder %v628_v19, 0.0  ;;  %v742_v25 = vmul.f32 0.2, %v628_v19  ;;  %v773_v27 = vsel %vm709_vm13, %v625_v13, %v741_v18 }
 0x107   : > { %vm708_vm1 = vcmp.gt.f32.partialorder %v620_v24, 0.0  ;;  %v740_v26 = vmul.f32 0.2, %v620_v24  ;;  %v771_v29 = vsel %vm707_vm14, %v617_v16, %v739_v23 }
 0x108   : > { %v774_v28 = vsel %vm710_vm15, %v628_v19, %v742_v25  ;;  %1586 = vmatpush1.bf16.msra.mxu1 %v796_v12 }
 0x109   : > { %v772_v30 = vsel %vm708_vm1, %v620_v24, %v740_v26  ;;  %v7576_v31 = vpop.f32.mrb[16].mxu1  ;;  %1587 = vmatprep.subr.bf16.mxu1 %v8759_v20  ;;  %v798_v32 = vpack.c.bf16 %v774_v28, %v773_v27 }
 0x10a   : > { %v641_v33 = vadd.f32 %v7576_v31, %v8877_v22  ;;  %v632_v34 = vpop.f32.mrb[17].mxu1  ;;  %v797_v35 = vpack.c.bf16 %v772_v30, %v771_v29 }
 0x10b   : > { %v633_v36 = vadd.f32 %v8877_v22, %v632_v34  ;;  %v7577_v37 = vpop.f32.mrb[18].mxu1 }
 0x10c   : > { %v745_v38 = vmul.f32 0.2, %v641_v33  ;;  %v644_v39 = vadd.f32 %v7577_v37, %v8877_v22  ;;  %v635_v40 = vpop.f32.mrb[19].mxu1  ;;  %1588 = vmatpush1.bf16.msra.mxu1 %v797_v35  ;;  %vm713_vm2 = vcmp.gt.f32.partialorder %v641_v33, 0.0 }
 0x10d   : > { %v743_v41 = vmul.f32 0.2, %v633_v36  ;;  %v636_v42 = vadd.f32 %v8877_v22, %v635_v40  ;;  %1589 = vmatprep.subr.bf16.mxu1 %v8759_v20  ;;  %vm711_vm3 = vcmp.gt.f32.partialorder %v633_v36, 0.0 }
 0x10e   : > { %vm714_vm4 = vcmp.gt.f32.partialorder %v644_v39, 0.0  ;;  %v746_v43 = vmul.f32 0.2, %v644_v39  ;;  %v777_v45 = vsel %vm713_vm2, %v641_v33, %v745_v38 }
 0x10f   : > { %vm712_vm5 = vcmp.gt.f32.partialorder %v636_v42, 0.0  ;;  %v744_v44 = vmul.f32 0.2, %v636_v42  ;;  %v775_v47 = vsel %vm711_vm3, %v633_v36, %v743_v41 }
 0x110   : > { %v778_v46 = vsel %vm714_vm4, %v644_v39, %v746_v43  ;;  %1590 = vmatpush1.bf16.msra.mxu1 %v798_v32  ;;  %v8098_v43 = vld [vmem:[%s10604_s2 + $0x14] ss:$8 sps:$4 sm:$0xff]  }
 0x111   : > { %v776_v48 = vsel %vm712_vm5, %v636_v42, %v744_v44  ;;  %v7580_v49 = vpop.f32.mrb[20].mxu1  ;;  %1591 = vmatprep.subr.bf16.mxu1 %v8759_v20  ;;  %v800_v50 = vpack.c.bf16 %v778_v46, %v777_v45  ;;  %v8100_v44 = vld [vmem:[%s10604_s2 + $0x10] ss:$8 sps:$4 sm:$0xff]   ;;  %v8101_v45 = vld [vmem:[%s10604_s2 + $0x24] ss:$8 sps:$4 sm:$0xff]  }
 0x112   : > { %v657_v51 = vadd.f32 %v7580_v49, %v8877_v22  ;;  %v648_v52 = vpop.f32.mrb[21].mxu1  ;;  %v799_v53 = vpack.c.bf16 %v776_v48, %v775_v47  ;;  %v8103_v46 = vld [vmem:[%s10604_s2 + $0x20] ss:$8 sps:$4 sm:$0xff]   ;;  %v8104_v47 = vld [vmem:[%s10604_s2 + $0x34] ss:$8 sps:$4 sm:$0xff]  }
 0x113   : > { %v649_v54 = vadd.f32 %v8877_v22, %v648_v52  ;;  %v7581_v55 = vpop.f32.mrb[22].mxu1  ;;  %v8106_v48 = vld [vmem:[%s10604_s2 + $0x30] ss:$8 sps:$4 sm:$0xff]   ;;  %v8107_v49 = vld [vmem:[%s10604_s2 + $0x44] ss:$8 sps:$4 sm:$0xff]  }
 0x114   : > { %v749_v56 = vmul.f32 0.2, %v657_v51  ;;  %v660_v57 = vadd.f32 %v7581_v55, %v8877_v22  ;;  %v651_v58 = vpop.f32.mrb[23].mxu1  ;;  %1592 = vmatpush1.bf16.msra.mxu1 %v799_v53  ;;  %vm717_vm6 = vcmp.gt.f32.partialorder %v657_v51, 0.0  ;;  %v8112_v52 = vld [vmem:[%s10604_s2 + $0x50] ss:$8 sps:$4 sm:$0xff]  }
 0x115   : > { %v747_v59 = vmul.f32 0.2, %v649_v54  ;;  %v652_v60 = vadd.f32 %v8877_v22, %v651_v58  ;;  %1593 = vmatprep.subr.bf16.mxu1 %v8759_v20  ;;  %vm715_vm7 = vcmp.gt.f32.partialorder %v649_v54, 0.0  ;;  %v8113_v53 = vld [vmem:[%s10604_s2 + $0x64] ss:$8 sps:$4 sm:$0xff]  }
 0x116   : > { %vm718_vm8 = vcmp.gt.f32.partialorder %v660_v57, 0.0  ;;  %v750_v61 = vmul.f32 0.2, %v660_v57  ;;  %v781_v63 = vsel %vm717_vm6, %v657_v51, %v749_v56  ;;  %v8110_v51 = vld [vmem:[%s10604_s2 + $0x54] ss:$8 sps:$4 sm:$0xff]  }
 0x117   : > { %vm716_vm9 = vcmp.gt.f32.partialorder %v652_v60, 0.0  ;;  %v748_v62 = vmul.f32 0.2, %v652_v60  ;;  %v779_v1 = vsel %vm715_vm7, %v649_v54, %v747_v59  ;;  %v8115_v54 = vld [vmem:[%s10604_s2 + $0x60] ss:$8 sps:$4 sm:$0xff]  }
 0x118   : > { %v782_v0 = vsel %vm718_vm8, %v660_v57, %v750_v61  ;;  %1594 = vmatpush1.bf16.msra.mxu1 %v800_v50  ;;  %v8109_v50 = vld [vmem:[%s10604_s2 + $0x40] ss:$8 sps:$4 sm:$0xff]   ;;  %v8116_v55 = vld [vmem:[%s10604_s2 + $0x74] ss:$8 sps:$4 sm:$0xff]   ;;  %v8118_v56 = vld [vmem:[%s10604_s2 + $0x70] ss:$8 sps:$4 sm:$0xff]  }
 0x119   : > { %v780_v2 = vsel %vm716_vm9, %v652_v60, %v748_v62  ;;  %v7584_v3 = vpop.f32.mrb[24].mxu1  ;;  %1595 = vmatprep.subr.bf16.mxu1 %v8759_v20  ;;  %v802_v4 = vpack.c.bf16 %v782_v0, %v781_v63  ;;  %v8119_v57 = vld [vmem:[%s10604_s2 + $0x84] ss:$8 sps:$4 sm:$0xff]   ;;  %v8121_v58 = vld [vmem:[%s10604_s2 + $0x80] ss:$8 sps:$4 sm:$0xff]  }
 0x11a   : > { %v673_v5 = vadd.f32 %v7584_v3, %v8877_v22  ;;  %v664_v6 = vpop.f32.mrb[25].mxu1  ;;  %v801_v7 = vpack.c.bf16 %v780_v2, %v779_v1  ;;  %v8122_v59 = vld [vmem:[%s10604_s2 + $0x94] ss:$8 sps:$4 sm:$0xff]   ;;  %v8124_v60 = vld [vmem:[%s10604_s2 + $0x90] ss:$8 sps:$4 sm:$0xff]  }
 0x11b   : > { %v665_v8 = vadd.f32 %v8877_v22, %v664_v6  ;;  %v7585_v9 = vpop.f32.mrb[26].mxu1  ;;  %v8125_v61 = vld [vmem:[%s10604_s2 + $0xa4] ss:$8 sps:$4 sm:$0xff]   ;;  %v8127_v62 = vld [vmem:[%s10604_s2 + $0xa0] ss:$8 sps:$4 sm:$0xff]  }
 0x11c   : > { %v753_v10 = vmul.f32 0.2, %v673_v5  ;;  %v676_v11 = vadd.f32 %v7585_v9, %v8877_v22  ;;  %v667_v12 = vpop.f32.mrb[27].mxu1  ;;  %1596 = vmatpush1.bf16.msra.mxu1 %v801_v7  ;;  %vm721_vm10 = vcmp.gt.f32.partialorder %v673_v5, 0.0  ;;  %v8128_v63 = vld [vmem:[%s10604_s2 + $0xb4] ss:$8 sps:$4 sm:$0xff]  }
 0x11d   : > { %v751_v13 = vmul.f32 0.2, %v665_v8  ;;  %v668_v14 = vadd.f32 %v8877_v22, %v667_v12  ;;  %1597 = vmatprep.subr.bf16.mxu1 %v8759_v20  ;;  %vm719_vm11 = vcmp.gt.f32.partialorder %v665_v8, 0.0  ;;  %v8130_v0 = vld [vmem:[%s10604_s2 + $0xb0] ss:$8 sps:$4 sm:$0xff]   ;;  %v8189_v9 = vld [vmem:[%s10605_s3 + $0x28] sm:$0xff]  }
 0x11e   : > { %vm722_vm12 = vcmp.gt.f32.partialorder %v676_v11, 0.0  ;;  %v754_v15 = vmul.f32 0.2, %v676_v11  ;;  %v785_v17 = vsel %vm721_vm10, %v673_v5, %v753_v10  ;;  %v8131_v1 = vld [vmem:[%s10604_s2 + $0xc4] ss:$8 sps:$4 sm:$0xff]   ;;  %v8193_v12 = vld [vmem:[%s10605_s3 + $0x30] sm:$0xff]  }
 0x11f   : > { %vm720_vm13 = vcmp.gt.f32.partialorder %v668_v14, 0.0  ;;  %v752_v16 = vmul.f32 0.2, %v668_v14  ;;  %v783_v19 = vsel %vm719_vm11, %v665_v8, %v751_v13  ;;  %v8133_v2 = vld [vmem:[%s10604_s2 + $0xc0] ss:$8 sps:$4 sm:$0xff]   ;;  %v8194_v13 = vld [vmem:[%s10605_s3 + $0x38] sm:$0xff]  }
 0x120   : > { %v786_v18 = vsel %vm722_vm12, %v676_v11, %v754_v15  ;;  %1598 = vmatpush1.bf16.msra.mxu1 %v802_v4  ;;  %v8134_v3 = vld [vmem:[%s10604_s2 + $0xd4] ss:$8 sps:$4 sm:$0xff]   ;;  %v8136_v4 = vld [vmem:[%s10604_s2 + $0xd0] ss:$8 sps:$4 sm:$0xff]   ;;  %v8137_v5 = vld [vmem:[%s10604_s2 + $0xe4] ss:$8 sps:$4 sm:$0xff]  }
 0x121   : > { %v784_v21 = vsel %vm720_vm13, %v668_v14, %v752_v16  ;;  %v7588_v23 = vpop.f32.mrb[28].mxu1  ;;  %1599 = vmatprep.subr.bf16.mxu1 %v8759_v20  ;;  %v804_v24 = vpack.c.bf16 %v786_v18, %v785_v17  ;;  %v8139_v6 = vld [vmem:[%s10604_s2 + $0xe0] ss:$8 sps:$4 sm:$0xff]   ;;  %v8140_v7 = vld [vmem:[%s10604_s2 + $0xf4] ss:$8 sps:$4 sm:$0xff]  }
 0x122   : > { %v689_v25 = vadd.f32 %v7588_v23, %v8877_v22  ;;  %v680_v26 = vpop.f32.mrb[29].mxu1  ;;  %v803_v27 = vpack.c.bf16 %v784_v21, %v783_v19  ;;  %v8188_v8 = vld [vmem:[%s10605_s3 + $0x20] sm:$0xff]   ;;  %v8142_v10 = vld [vmem:[%s10604_s2 + $0xf0] ss:$8 sps:$4 sm:$0xff]   ;;  %v8146_v15 = vld [vmem:[%s10604_s2 + $0x114] ss:$8 sps:$4 sm:$0xff]  }
 0x123   : > { %v681_v28 = vadd.f32 %v8877_v22, %v680_v26  ;;  %v7589_v29 = vpop.f32.mrb[30].mxu1  ;;  %7590 = vmatprep.subr.bf16.mxu0 %v8188_v8  ;;  %v8143_v11 = vld [vmem:[%s10604_s2 + $0x104] ss:$8 sps:$4 sm:$0xff]   ;;  %v8145_v14 = vld [vmem:[%s10604_s2 + $0x100] ss:$8 sps:$4 sm:$0xff]  }
 0x124   : > { %v757_v30 = vmul.f32 0.2, %v689_v25  ;;  %v692_v31 = vadd.f32 %v7589_v29, %v8877_v22  ;;  %v683_v32 = vpop.f32.mrb[31].mxu1  ;;  %1600 = vmatpush1.bf16.msra.mxu1 %v803_v27  ;;  %vm725_vm14 = vcmp.gt.f32.partialorder %v689_v25, 0.0  ;;  %7591 = vmatpush3.bf16.msra.mxu0 %v8188_v8  ;;  %v8148_v16 = vld [vmem:[%s10604_s2 + $0x110] ss:$8 sps:$4 sm:$0xff]  }
 0x125   : > { %v755_v33 = vmul.f32 0.2, %v681_v28  ;;  %v684_v34 = vadd.f32 %v8877_v22, %v683_v32  ;;  %1601 = vmatprep.subr.bf16.mxu1 %v8759_v20  ;;  %vm723_vm15 = vcmp.gt.f32.partialorder %v681_v28, 0.0  ;;  %v8095_v22 = vld [vmem:[%s10604_s2] ss:$8 sps:$4 sm:$0xff]   ;;  %7592 = vmatprep.subr.bf16.mxu0 %v8189_v9 }
 0x126   : > { %vm726_vm1 = vcmp.gt.f32.partialorder %v692_v31, 0.0  ;;  %v758_v35 = vmul.f32 0.2, %v692_v31  ;;  %v789_v37 = vsel %vm725_vm14, %v689_v25, %v757_v30  ;;  %v8149_v17 = vld [vmem:[%s10604_s2 + $0x124] ss:$8 sps:$4 sm:$0xff]  }
 0x127   : > { %vm724_vm2 = vcmp.gt.f32.partialorder %v684_v34, 0.0  ;;  %v756_v36 = vmul.f32 0.2, %v684_v34  ;;  %v787_v39 = vsel %vm723_vm15, %v681_v28, %v755_v33  ;;  %v9049_v18 = vld [vmem:[%s10605_s3] sm:$0xff]   ;;  %v8152_v21 = vld [vmem:[%s10604_s2 + $0x134] ss:$8 sps:$4 sm:$0xff]  }
 0x128   : > { %v790_v38 = vsel %vm726_vm1, %v692_v31, %v758_v35  ;;  %1602 = vmatpush1.bf16.msra.mxu1 %v804_v24  ;;  %7593 = vmatpush3.bf16.msra.mxu0 %v8189_v9  ;;  %v8151_v19 = vld [vmem:[%s10604_s2 + $0x120] ss:$8 sps:$4 sm:$0xff]   ;;  %v8154_v23 = vld [vmem:[%s10604_s2 + $0x130] ss:$8 sps:$4 sm:$0xff]   ;;  %v8155_v24 = vld [vmem:[%s10604_s2 + $0x144] ss:$8 sps:$4 sm:$0xff]  }
 0x129   : > { %v788_v40 = vsel %vm724_vm2, %v684_v34, %v756_v36  ;;  %1603 = vmatprep.subr.bf16.mxu1 %v8759_v20  ;;  %v806_v41 = vpack.c.bf16 %v790_v38, %v789_v37  ;;  %7594 = vmatprep.subr.bf16.mxu0 %v8193_v12  ;;  %v8157_v25 = vld [vmem:[%s10604_s2 + $0x140] ss:$8 sps:$4 sm:$0xff]   ;;  %v8158_v26 = vld [vmem:[%s10604_s2 + $0x154] ss:$8 sps:$4 sm:$0xff]   ;;  %v8160_v27 = vld [vmem:[%s10604_s2 + $0x150] ss:$8 sps:$4 sm:$0xff]  }
 0x12a   : > { %v805_v42 = vpack.c.bf16 %v788_v40, %v787_v39  ;;  %v8161_v28 = vld [vmem:[%s10604_s2 + $0x164] ss:$8 sps:$4 sm:$0xff]   ;;  %v8163_v29 = vld [vmem:[%s10604_s2 + $0x160] ss:$8 sps:$4 sm:$0xff]   ;;  %v8164_v30 = vld [vmem:[%s10604_s2 + $0x174] ss:$8 sps:$4 sm:$0xff]  }
 0x12b   : > { %v8166_v31 = vld [vmem:[%s10604_s2 + $0x170] ss:$8 sps:$4 sm:$0xff]   ;;  %v8167_v32 = vld [vmem:[%s10604_s2 + $0x184] ss:$8 sps:$4 sm:$0xff]   ;;  %v8169_v33 = vld [vmem:[%s10604_s2 + $0x180] ss:$8 sps:$4 sm:$0xff]  }
 0x12c   : > { %1604 = vmatpush1.bf16.msra.mxu1 %v805_v42  ;;  %7595 = vmatpush3.bf16.msra.mxu0 %v8193_v12  ;;  %v8170_v34 = vld [vmem:[%s10604_s2 + $0x194] ss:$8 sps:$4 sm:$0xff]   ;;  %v8172_v35 = vld [vmem:[%s10604_s2 + $0x190] ss:$8 sps:$4 sm:$0xff]   ;;  %v8173_v36 = vld [vmem:[%s10604_s2 + $0x1a4] ss:$8 sps:$4 sm:$0xff]  }
 0x12d   : > { %1605 = vmatprep.subr.bf16.mxu1 %v8759_v20  ;;  %7596 = vmatprep.subr.bf16.mxu0 %v8194_v13  ;;  %v8175_v37 = vld [vmem:[%s10604_s2 + $0x1a0] ss:$8 sps:$4 sm:$0xff]   ;;  %v8176_v38 = vld [vmem:[%s10604_s2 + $0x1b4] ss:$8 sps:$4 sm:$0xff]  }
 0x130   : > { %1606 = vmatpush1.bf16.msra.mxu1 %v806_v41  ;;  %7597 = vmatpush3.bf16.msra.mxu0 %v8194_v13  ;;  %v8178_v41 = vld [vmem:[%s10604_s2 + $0x1b0] ss:$8 sps:$4 sm:$0xff]   ;;  %v8198_v13 = vld [vmem:[%s10604_s2 + $0x214] ss:$8 sps:$4 sm:$0xff]  }
 0x131   : > { %7606 = vmatprep.subr.bf16.mxu0 %v9049_v18 }
 0x133   : > { %1608 = vmatmul.mubr.bf16.vlgmr.msra.gmra.mrb[32].mxu1 %v8095_v22  ;;  %v8179_v22 = vld [vmem:[%s10604_s2 + $0x1c4] ss:$8 sps:$4 sm:$0xff]  }
 0x134   : > { %1615 = vmatprep.mubr.bf16.mxu1 %v8098_v43 }
 0x13b   : > { %1616 = vmatmul.mubr.bf16.gmra.mrb[36].mxu1 %v8100_v44 }
 0x13c   : > { %1623 = vmatprep.mubr.bf16.mxu1 %v8101_v45 }
 0x143   : > { %1624 = vmatmul.mubr.bf16.gmra.mrb[40].mxu1 %v8103_v46 }
 0x144   : > { %1631 = vmatprep.mubr.bf16.mxu1 %v8104_v47  ;;  %v8181_v47 = vld [vmem:[%s10604_s2 + $0x1c0] ss:$8 sps:$4 sm:$0xff]  }
 0x14b   : > { %1632 = vmatmul.mubr.bf16.gmra.mrb[44].mxu1 %v8106_v48 }
 0x14c   : > { %1639 = vmatprep.mubr.bf16.mxu1 %v8107_v49  ;;  %v8182_v49 = vld [vmem:[%s10604_s2 + $0x1d4] ss:$8 sps:$4 sm:$0xff]  }
 0x153   : > { %1640 = vmatmul.mubr.bf16.gmra.mrb[48].mxu1 %v8109_v50 }
 0x154   : > { %1647 = vmatprep.mubr.bf16.mxu1 %v8110_v51 }
 0x15b   : > { %1648 = vmatmul.mubr.bf16.gmra.mrb[52].mxu1 %v8112_v52 }
 0x15c   : > { %1655 = vmatprep.mubr.bf16.mxu1 %v8113_v53 }
 0x163   : > { %1656 = vmatmul.mubr.bf16.gmra.mrb[56].mxu1 %v8115_v54  ;;  %v8184_v54 = vld [vmem:[%s10604_s2 + $0x1d0] ss:$8 sps:$4 sm:$0xff]  }
 0x164   : > { %1663 = vmatprep.mubr.bf16.mxu1 %v8116_v55 }
 0x16b   : > { %1664 = vmatmul.mubr.bf16.gmra.mrb[60].mxu1 %v8118_v56  ;;  %v8185_v56 = vld [vmem:[%s10604_s2 + $0x1e4] ss:$8 sps:$4 sm:$0xff]  }
 0x16c   : > { %1671 = vmatprep.mubr.bf16.mxu1 %v8119_v57 }
 0x173   : > { %1672 = vmatmul.mubr.bf16.gmra.mrb[64].mxu1 %v8121_v58 }
 0x174   : > { %1679 = vmatprep.mubr.bf16.mxu1 %v8122_v59 }
 0x17b   : > { %1680 = vmatmul.mubr.bf16.gmra.mrb[68].mxu1 %v8124_v60 }
 0x17c   : > { %1687 = vmatprep.mubr.bf16.mxu1 %v8125_v61  ;;  %v8187_v61 = vld [vmem:[%s10604_s2 + $0x1e0] ss:$8 sps:$4 sm:$0xff]  }
 0x183   : > { %1688 = vmatmul.mubr.bf16.gmra.mrb[72].mxu1 %v8127_v62 }
 0x184   : > { %1695 = vmatprep.mubr.bf16.mxu1 %v8128_v63  ;;  %v8190_v63 = vld [vmem:[%s10604_s2 + $0x1f4] ss:$8 sps:$4 sm:$0xff]  }
 0x18b   : > { %1696 = vmatmul.mubr.bf16.gmra.mrb[76].mxu1 %v8130_v0 }
 0x18c   : > { %1703 = vmatprep.mubr.bf16.mxu1 %v8131_v1 }
 0x193   : > { %1704 = vmatmul.mubr.bf16.gmra.mrb[80].mxu1 %v8133_v2 }
 0x194   : > { %1711 = vmatprep.mubr.bf16.mxu1 %v8134_v3 }
 0x19b   : > { %1712 = vmatmul.mubr.bf16.gmra.mrb[84].mxu1 %v8136_v4  ;;  %v8192_v4 = vld [vmem:[%s10604_s2 + $0x1f0] ss:$8 sps:$4 sm:$0xff]  }
 0x19c   : > { %1719 = vmatprep.mubr.bf16.mxu1 %v8137_v5 }
 0x1a3   : > { %1720 = vmatmul.mubr.bf16.gmra.mrb[88].mxu1 %v8139_v6  ;;  %v8195_v6 = vld [vmem:[%s10604_s2 + $0x204] ss:$8 sps:$4 sm:$0xff]  }
 0x1a4   : > { %1727 = vmatprep.mubr.bf16.mxu1 %v8140_v7 }
 0x1ab   : > { %1728 = vmatmul.mubr.bf16.gmra.mrb[92].mxu1 %v8142_v10 }
 0x1ac   : > { %1735 = vmatprep.mubr.bf16.mxu1 %v8143_v11  ;;  %v8197_v11 = vld [vmem:[%s10604_s2 + $0x200] ss:$8 sps:$4 sm:$0xff]  }
 0x1b3   : > { %1736 = vmatmul.mubr.bf16.gmra.mrb[96].mxu1 %v8145_v14 }
 0x1b4   : > { %1743 = vmatprep.mubr.bf16.mxu1 %v8146_v15 }
 0x1bb   : > { %1744 = vmatmul.mubr.bf16.gmra.mrb[100].mxu1 %v8148_v16  ;;  %v8202_v16 = vld [vmem:[%s10605_s3 + $0x8] sm:$0xff]  }
 0x1bc   : > { %1751 = vmatprep.mubr.bf16.mxu1 %v8149_v17  ;;  %v8206_v17 = vld [vmem:[%s10605_s3 + $0x10] sm:$0xff]  }
 0x1c3   : > { %1752 = vmatmul.mubr.bf16.gmra.mrb[104].mxu1 %v8151_v19 }
 0x1c4   : > { %1759 = vmatprep.mubr.bf16.mxu1 %v8152_v21 }
 0x1cb   : > { %1760 = vmatmul.mubr.bf16.gmra.mrb[108].mxu1 %v8154_v23  ;;  %v8200_v23 = vld [vmem:[%s10604_s2 + $0x210] ss:$8 sps:$4 sm:$0xff]  }
 0x1cc   : > { %1767 = vmatprep.mubr.bf16.mxu1 %v8155_v24 }
 0x1d3   : > { %1768 = vmatmul.mubr.bf16.gmra.mrb[112].mxu1 %v8157_v25  ;;  %v8203_v25 = vld [vmem:[%s10604_s2 + $0x224] ss:$8 sps:$4 sm:$0xff]  }
 0x1d4   : > { %1775 = vmatprep.mubr.bf16.mxu1 %v8158_v26 }
 0x1db   : > { %1776 = vmatmul.mubr.bf16.gmra.mrb[116].mxu1 %v8160_v27 }
 0x1dc   : > { %1783 = vmatprep.mubr.bf16.mxu1 %v8161_v28  ;;  %v8211_v28 = vld [vmem:[%s10605_s3 + $0x40] sm:$0xff]  }
 0x1e3   : > { %1784 = vmatmul.mubr.bf16.gmra.mrb[120].mxu1 %v8163_v29 }
 0x1e4   : > { %1791 = vmatprep.mubr.bf16.mxu1 %v8164_v30 }
 0x1eb   : > { %1792 = vmatmul.mubr.bf16.gmra.mrb[124].mxu1 %v8166_v31  ;;  %v8205_v31 = vld [vmem:[%s10604_s2 + $0x220] ss:$8 sps:$4 sm:$0xff]  }
 0x1ec   : > { %1799 = vmatprep.mubr.bf16.mxu1 %v8167_v32 }
 0x1f3   : > { %1800 = vmatmul.mubr.bf16.gmra.mrb[128].mxu1 %v8169_v33  ;;  %v8208_v33 = vld [vmem:[%s10604_s2 + $0x234] ss:$8 sps:$4 sm:$0xff]  }
 0x1f4   : > { %1807 = vmatprep.mubr.bf16.mxu1 %v8170_v34 }
 0x1fb   : > { %1808 = vmatmul.mubr.bf16.gmra.mrb[132].mxu1 %v8172_v35 }
 0x1fc   : > { %1815 = vmatprep.mubr.bf16.mxu1 %v8173_v36 }
 0x203   : > { %1816 = vmatmul.mubr.bf16.gmra.mrb[136].mxu1 %v8175_v37 }
 0x204   : > { %1823 = vmatprep.mubr.bf16.mxu1 %v8176_v38  ;;  %v8210_v38 = vld [vmem:[%s10604_s2 + $0x230] ss:$8 sps:$4 sm:$0xff]  }
 0x206   : > { %v9106_v39 = vpop.f32.mrb[32].mxu1 }
 0x207   : > { %v1611_v40 = vpop.f32.mrb[33].mxu1 }
 0x208   : > { %v9111_v42 = vpop.f32.mrb[34].mxu1 }
 0x209   : > { %v2120_v43 = vpack.c.bf16 %v9111_v42, %v9106_v39  ;;  %v1614_v44 = vpop.f32.mrb[35].mxu1  ;;  %v8213_v39 = vld [vmem:[%s10604_s2 + $0x244] ss:$8 sps:$4 sm:$0xff]   ;;  %v8216_v42 = vld [vmem:[%s10605_s3 + $0x50] sm:$0xff]  }
 0x20a   : > { %v8212_v44 = vld [vmem:[%s10605_s3 + $0x48] sm:$0xff]  }
 0x20b   : > { %1824 = vmatmul.mubr.bf16.gmra.mrb[140].mxu1 %v8178_v41 }
 0x20c   : > { %1831 = vmatprep.mubr.bf16.mxu1 %v8179_v22 }
 0x20e   : > { %v9118_v45 = vpop.f32.mrb[36].mxu1 }
 0x20f   : > { %v1619_v46 = vpop.f32.mrb[37].mxu1 }
 0x210   : > { %v9123_v48 = vpop.f32.mrb[38].mxu1 }
 0x211   : > { %v2121_v50 = vpack.c.bf16 %v9123_v48, %v9118_v45  ;;  %v1622_v51 = vpop.f32.mrb[39].mxu1  ;;  %v8215_v45 = vld [vmem:[%s10604_s2 + $0x240] ss:$8 sps:$4 sm:$0xff]  }
 0x212   : > { %v8218_v51 = vld [vmem:[%s10604_s2 + $0x254] ss:$8 sps:$4 sm:$0xff]  }
 0x213   : > { %1832 = vmatmul.mubr.bf16.gmra.mrb[144].mxu1 %v8181_v47 }
 0x214   : > { %1839 = vmatprep.mubr.bf16.mxu1 %v8182_v49 }
 0x216   : > { %v9130_v52 = vpop.f32.mrb[40].mxu1 }
 0x217   : > { %v1627_v53 = vpop.f32.mrb[41].mxu1 }
 0x218   : > { %v9135_v55 = vpop.f32.mrb[42].mxu1 }
 0x219   : > { %v2122_v57 = vpack.c.bf16 %v9135_v55, %v9130_v52  ;;  %v1630_v58 = vpop.f32.mrb[43].mxu1  ;;  %v8224_v52 = vld [vmem:[%s10605_s3 + $0x60] sm:$0xff]   ;;  %v8220_v55 = vld [vmem:[%s10604_s2 + $0x250] ss:$8 sps:$4 sm:$0xff]  }
 0x21b   : > { %1840 = vmatmul.mubr.bf16.gmra.mrb[148].mxu1 %v8184_v54 }
 0x21c   : > { %1847 = vmatprep.mubr.bf16.mxu1 %v8185_v56 }
 0x21e   : > { %v9142_v59 = vpop.f32.mrb[44].mxu1 }
 0x21f   : > { %v1635_v60 = vpop.f32.mrb[45].mxu1 }
 0x220   : > { %v9147_v62 = vpop.f32.mrb[46].mxu1  ;;  %v8225_v60 = vld [vmem:[%s10605_s3 + $0x68] sm:$0xff]  }
 0x221   : > { %v2123_v0 = vpack.c.bf16 %v9147_v62, %v9142_v59  ;;  %v1638_v1 = vpop.f32.mrb[47].mxu1  ;;  %v8229_v62 = vld [vmem:[%s10605_s3 + $0x70] sm:$0xff]  }
 0x223   : > { %1848 = vmatmul.mubr.bf16.gmra.mrb[152].mxu1 %v8187_v61 }
 0x224   : > { %1855 = vmatprep.mubr.bf16.mxu1 %v8190_v63 }
 0x226   : > { %v1641_v2 = vpop.f32.mrb[48].mxu1 }
 0x227   : > { %v1643_v3 = vpop.f32.mrb[49].mxu1 }
 0x228   : > { %v1644_v5 = vpop.f32.mrb[50].mxu1 }
 0x229   : > { %v1646_v7 = vpop.f32.mrb[51].mxu1  ;;  %v2124_v8 = vpack.c.bf16 %v1644_v5, %v1641_v2  ;;  %v8226_v2 = vld [vmem:[%s10604_s2 + $0x274] ss:$8 sps:$4 sm:$0xff]  }
 0x22a   : > { %v8230_v5 = vld [vmem:[%s10605_s3 + $0x78] sm:$0xff]   ;;  %v8240_v7 = vld [vmem:[%s10605_s3 + $0x80] sm:$0xff]  }
 0x22b   : > { %1856 = vmatmul.mubr.bf16.gmra.mrb[156].mxu1 %v8192_v4  ;;  %7598 = vmatprep.mubr.msk.bf16.mxu0 %vm485_vm0, %v2124_v8 }
 0x22c   : > { %1863 = vmatprep.mubr.bf16.mxu1 %v8195_v6 }
 0x22e   : > { %v1649_v9 = vpop.f32.mrb[52].mxu1 }
 0x22f   : > { %v1651_v10 = vpop.f32.mrb[53].mxu1 }
 0x230   : > { %v1652_v12 = vpop.f32.mrb[54].mxu1 }
 0x231   : > { %v2125_v14 = vpack.c.bf16 %v1652_v12, %v1649_v9  ;;  %v1654_v15 = vpop.f32.mrb[55].mxu1  ;;  %v8228_v9 = vld [vmem:[%s10604_s2 + $0x270] ss:$8 sps:$4 sm:$0xff]  }
 0x233   : > { %1864 = vmatmul.mubr.bf16.gmra.mrb[160].mxu1 %v8197_v11  ;;  %7599 = vmatmul.mubr.msk.bf16.vlgmr.msra.gmra.mrb[0].mxu0 %vm485_vm0, %v2125_v14  ;;  %v8231_v11 = vld [vmem:[%s10604_s2 + $0x284] ss:$8 sps:$4 sm:$0xff]  }
 0x234   : > { %1871 = vmatprep.mubr.bf16.mxu1 %v8198_v13  ;;  %7607 = vmatpush3.bf16.msra.mxu0 %v9049_v18  ;;  %v8207_v18 = vld [vmem:[%s10605_s3 + $0x18] sm:$0xff]  }
 0x235   : > { %7608 = vmatprep.subr.bf16.mxu0 %v8202_v16 }
 0x236   : > { %v1657_v19 = vpop.f32.mrb[56].mxu1 }
 0x237   : > { %v1659_v21 = vpop.f32.mrb[57].mxu1 }
 0x238   : > { %v1660_v24 = vpop.f32.mrb[58].mxu1  ;;  %7609 = vmatpush3.bf16.msra.mxu0 %v8202_v16  ;;  %v8233_v16 = vld [vmem:[%s10604_s2 + $0x280] ss:$8 sps:$4 sm:$0xff]  }
 0x239   : > { %v2126_v26 = vpack.c.bf16 %v1660_v24, %v1657_v19  ;;  %v1662_v27 = vpop.f32.mrb[59].mxu1  ;;  %7610 = vmatprep.subr.bf16.mxu0 %v8206_v17  ;;  %v8234_v19 = vld [vmem:[%s10604_s2 + $0x294] ss:$8 sps:$4 sm:$0xff]   ;;  %v8241_v24 = vld [vmem:[%s10605_s3 + $0x88] sm:$0xff]  }
 0x23b   : > { %1872 = vmatmul.mubr.bf16.gmra.mrb[164].mxu1 %v8200_v23  ;;  %7602 = vmatprep.mubr.msk.bf16.mxu0 %vm485_vm0, %v2126_v26 }
 0x23c   : > { %1879 = vmatprep.mubr.bf16.mxu1 %v8203_v25  ;;  %7611 = vmatpush3.bf16.msra.mxu0 %v8206_v17  ;;  %v8245_v25 = vld [vmem:[%s10605_s3 + $0x90] sm:$0xff]  }
 0x23d   : > { %7612 = vmatprep.subr.bf16.mxu0 %v8207_v18 }
 0x23e   : > { %v1665_v29 = vpop.f32.mrb[60].mxu1 }
 0x23f   : > { %v1667_v30 = vpop.f32.mrb[61].mxu1 }
 0x240   : > { %v1668_v32 = vpop.f32.mrb[62].mxu1  ;;  %7613 = vmatpush3.bf16.msra.mxu0 %v8207_v18  ;;  %v8236_v18 = vld [vmem:[%s10604_s2 + $0x290] ss:$8 sps:$4 sm:$0xff]  }
 0x241   : > { %v2127_v34 = vpack.c.bf16 %v1668_v32, %v1665_v29  ;;  %v1670_v35 = vpop.f32.mrb[63].mxu1  ;;  %7622 = vmatprep.subr.bf16.mxu0 %v8211_v28  ;;  %v8237_v29 = vld [vmem:[%s10604_s2 + $0x2a4] ss:$8 sps:$4 sm:$0xff]   ;;  %v8246_v32 = vld [vmem:[%s10605_s3 + $0x98] sm:$0xff]  }
 0x243   : > { %1880 = vmatmul.mubr.bf16.gmra.mrb[168].mxu1 %v8205_v31  ;;  %7603 = vmatmul.mubr.msk.bf16.gmra.mrb[4].mxu0 %vm485_vm0, %v2127_v34 }
 0x244   : > { %7614 = vmatprep.mubr.msk.bf16.mxu0 %vm485_vm0, %v2120_v43  ;;  %1887 = vmatprep.mubr.bf16.mxu1 %v8208_v33  ;;  %v8256_v33 = vld [vmem:[%s10605_s3 + $0xa0] sm:$0xff]  }
 0x246   : > { %v1673_v36 = vpop.f32.mrb[64].mxu1 }
 0x247   : > { %v1675_v37 = vpop.f32.mrb[65].mxu1 }
 0x248   : > { %v1676_v40 = vpop.f32.mrb[66].mxu1 }
 0x249   : > { %v2128_v41 = vpack.c.bf16 %v1676_v40, %v1673_v36  ;;  %v1678_v22 = vpop.f32.mrb[67].mxu1  ;;  %v8239_v36 = vld [vmem:[%s10604_s2 + $0x2a0] ss:$8 sps:$4 sm:$0xff]  }
 0x24b   : > { %1888 = vmatmul.mubr.bf16.gmra.mrb[172].mxu1 %v8210_v38  ;;  %7615 = vmatmul.mubr.msk.bf16.vlgmr.msra.gmra.mrb[0].mxu0 %vm485_vm0, %v2121_v50  ;;  %v8217_v50 = vld [vmem:[%s10605_s3 + $0x58] sm:$0xff]  }
 0x24c   : > { %7618 = vmatprep.mubr.msk.bf16.mxu0 %vm485_vm0, %v2122_v57  ;;  %7623 = vmatpush3.bf16.msra.mxu0 %v8211_v28  ;;  %v8221_v57 = vld [vmem:[%s10604_s2 + $0x264] ss:$8 sps:$4 sm:$0xff]   ;;  %v8242_v38 = vld [vmem:[%s10604_s2 + $0x2b4] ss:$8 sps:$4 sm:$0xff]  }
 0x24d   : > { %7624 = vmatprep.subr.bf16.mxu0 %v8212_v44  ;;  %1895 = vmatprep.mubr.bf16.mxu1 %v8213_v39  ;;  %v8244_v39 = vld [vmem:[%s10604_s2 + $0x2b0] ss:$8 sps:$4 sm:$0xff]  }
 0x24e   : > { %v1681_v43 = vpop.f32.mrb[68].mxu1 }
 0x24f   : > { %v1683_v46 = vpop.f32.mrb[69].mxu1 }
 0x250   : > { %v1684_v47 = vpop.f32.mrb[70].mxu1  ;;  %7625 = vmatpush3.bf16.msra.mxu0 %v8212_v44 }
 0x251   : > { %v2129_v48 = vpack.c.bf16 %v1684_v47, %v1681_v43  ;;  %v1686_v49 = vpop.f32.mrb[71].mxu1  ;;  %7626 = vmatprep.subr.bf16.mxu0 %v8216_v42  ;;  %v8247_v43 = vld [vmem:[%s10604_s2 + $0x2c4] ss:$8 sps:$4 sm:$0xff]  }
 0x252   : > { %v8249_v49 = vld [vmem:[%s10604_s2 + $0x2c0] ss:$8 sps:$4 sm:$0xff]  }
 0x253   : > { %1896 = vmatmul.mubr.bf16.gmra.mrb[176].mxu1 %v8215_v45  ;;  %7619 = vmatmul.mubr.msk.bf16.gmra.mrb[4].mxu0 %vm485_vm0, %v2123_v0  ;;  %v8223_v0 = vld [vmem:[%s10604_s2 + $0x260] ss:$8 sps:$4 sm:$0xff]  }
 0x254   : > { %7627 = vmatpush3.bf16.msra.mxu0 %v8216_v42  ;;  %7630 = vmatprep.mubr.msk.bf16.mxu0 %vm485_vm0, %v2128_v41 }
 0x255   : > { %7628 = vmatprep.subr.bf16.mxu0 %v8217_v50  ;;  %1903 = vmatprep.mubr.bf16.mxu1 %v8218_v51  ;;  %v8250_v51 = vld [vmem:[%s10604_s2 + $0x2d4] ss:$8 sps:$4 sm:$0xff]  }
 0x256   : > { %v1689_v53 = vpop.f32.mrb[72].mxu1 }
 0x257   : > { %v1691_v54 = vpop.f32.mrb[73].mxu1 }
 0x258   : > { %v1692_v56 = vpop.f32.mrb[74].mxu1  ;;  %7629 = vmatpush3.bf16.msra.mxu0 %v8217_v50  ;;  %v8257_v54 = vld [vmem:[%s10605_s3 + $0xa8] sm:$0xff]  }
 0x259   : > { %v2130_v58 = vpack.c.bf16 %v1692_v56, %v1689_v53  ;;  %v1694_v59 = vpop.f32.mrb[75].mxu1  ;;  %7638 = vmatprep.subr.bf16.mxu0 %v8224_v52 }
 0x25b   : > { %1904 = vmatmul.mubr.bf16.gmra.mrb[180].mxu1 %v8220_v55  ;;  %7631 = vmatmul.mubr.msk.bf16.vlgmr.msra.gmra.mrb[0].mxu0 %vm485_vm0, %v2129_v48  ;;  %v8261_v55 = vld [vmem:[%s10605_s3 + $0xb0] sm:$0xff]  }
 0x25c   : > { %7634 = vmatprep.mubr.msk.bf16.mxu0 %vm485_vm0, %v2130_v58  ;;  %1911 = vmatprep.mubr.bf16.mxu1 %v8221_v57  ;;  %v8252_v58 = vld [vmem:[%s10604_s2 + $0x2d0] ss:$8 sps:$4 sm:$0xff]  }
 0x25d   : > { %7639 = vmatpush3.bf16.msra.mxu0 %v8224_v52 }
 0x25e   : > { %v1697_v61 = vpop.f32.mrb[76].mxu1  ;;  %7640 = vmatprep.subr.bf16.mxu0 %v8225_v60 }
 0x25f   : > { %v1699_v63 = vpop.f32.mrb[77].mxu1 }
 0x260   : > { %v1700_v1 = vpop.f32.mrb[78].mxu1  ;;  %v8262_v63 = vld [vmem:[%s10605_s3 + $0xb8] sm:$0xff]  }
 0x261   : > { %v2131_v3 = vpack.c.bf16 %v1700_v1, %v1697_v61  ;;  %v1702_v4 = vpop.f32.mrb[79].mxu1  ;;  %7641 = vmatpush3.bf16.msra.mxu0 %v8225_v60  ;;  %v8253_v60 = vld [vmem:[%s10604_s2 + $0x2e4] ss:$8 sps:$4 sm:$0xff]  }
 0x262   : > { %7642 = vmatprep.subr.bf16.mxu0 %v8229_v62 }
 0x263   : > { %1912 = vmatmul.mubr.bf16.gmra.mrb[184].mxu1 %v8223_v0  ;;  %7635 = vmatmul.mubr.msk.bf16.gmra.mrb[4].mxu0 %vm485_vm0, %v2131_v3  ;;  %v8272_v0 = vld [vmem:[%s10605_s3 + $0xc0] sm:$0xff]  }
 0x264   : > { %1919 = vmatprep.mubr.bf16.mxu1 %v8226_v2  ;;  %v8255_v3 = vld [vmem:[%s10604_s2 + $0x2e0] ss:$8 sps:$4 sm:$0xff]  }
 0x265   : > { %7643 = vmatpush3.bf16.msra.mxu0 %v8229_v62 }
 0x266   : > { %v1705_v6 = vpop.f32.mrb[80].mxu1  ;;  %7644 = vmatprep.subr.bf16.mxu0 %v8230_v5 }
 0x267   : > { %v1707_v8 = vpop.f32.mrb[81].mxu1 }
 0x268   : > { %v1708_v10 = vpop.f32.mrb[82].mxu1 }
 0x269   : > { %v2132_v12 = vpack.c.bf16 %v1708_v10, %v1705_v6  ;;  %v1710_v13 = vpop.f32.mrb[83].mxu1  ;;  %7645 = vmatpush3.bf16.msra.mxu0 %v8230_v5  ;;  %v8258_v5 = vld [vmem:[%s10604_s2 + $0x2f4] ss:$8 sps:$4 sm:$0xff]   ;;  %v8260_v10 = vld [vmem:[%s10604_s2 + $0x2f0] ss:$8 sps:$4 sm:$0xff]  }
 0x26a   : > { %7654 = vmatprep.subr.bf16.mxu0 %v8240_v7 }
 0x26b   : > { %1920 = vmatmul.mubr.bf16.gmra.mrb[188].mxu1 %v8228_v9  ;;  %7646 = vmatprep.mubr.msk.bf16.mxu0 %vm485_vm0, %v2132_v12  ;;  %v8263_v12 = vld [vmem:[%s10604_s2 + $0x304] ss:$8 sps:$4 sm:$0xff]  }
 0x26c   : > { %1927 = vmatprep.mubr.bf16.mxu1 %v8231_v11 }
 0x26e   : > { %v1713_v14 = vpop.f32.mrb[84].mxu1 }
 0x26f   : > { %v1715_v15 = vpop.f32.mrb[85].mxu1 }
 0x270   : > { %v1716_v17 = vpop.f32.mrb[86].mxu1 }
 0x271   : > { %v2133_v21 = vpack.c.bf16 %v1716_v17, %v1713_v14  ;;  %v1718_v23 = vpop.f32.mrb[87].mxu1  ;;  %v8265_v17 = vld [vmem:[%s10604_s2 + $0x300] ss:$8 sps:$4 sm:$0xff]  }
 0x273   : > { %1928 = vmatmul.mubr.bf16.gmra.mrb[192].mxu1 %v8233_v16  ;;  %7647 = vmatmul.mubr.msk.bf16.vlgmr.msra.gmra.mrb[0].mxu0 %vm485_vm0, %v2133_v21  ;;  %v8266_v21 = vld [vmem:[%s10604_s2 + $0x314] ss:$8 sps:$4 sm:$0xff]  }
 0x274   : > { %1935 = vmatprep.mubr.bf16.mxu1 %v8234_v19  ;;  %7655 = vmatpush3.bf16.msra.mxu0 %v8240_v7 }
 0x275   : > { %7656 = vmatprep.subr.bf16.mxu0 %v8241_v24 }
 0x276   : > { %v1721_v26 = vpop.f32.mrb[88].mxu1 }
 0x277   : > { %v1723_v27 = vpop.f32.mrb[89].mxu1 }
 0x278   : > { %v1724_v28 = vpop.f32.mrb[90].mxu1  ;;  %7657 = vmatpush3.bf16.msra.mxu0 %v8241_v24 }
 0x279   : > { %v2134_v30 = vpack.c.bf16 %v1724_v28, %v1721_v26  ;;  %v1726_v31 = vpop.f32.mrb[91].mxu1  ;;  %7658 = vmatprep.subr.bf16.mxu0 %v8245_v25  ;;  %v8277_v26 = vld [vmem:[%s10605_s3 + $0xd0] sm:$0xff]  }
 0x27a   : > { %v8268_v28 = vld [vmem:[%s10604_s2 + $0x310] ss:$8 sps:$4 sm:$0xff]  }
 0x27b   : > { %1936 = vmatmul.mubr.bf16.gmra.mrb[196].mxu1 %v8236_v18  ;;  %7650 = vmatprep.mubr.msk.bf16.mxu0 %vm485_vm0, %v2134_v30  ;;  %v8269_v30 = vld [vmem:[%s10604_s2 + $0x324] ss:$8 sps:$4 sm:$0xff]  }
 0x27c   : > { %1943 = vmatprep.mubr.bf16.mxu1 %v8237_v29  ;;  %7659 = vmatpush3.bf16.msra.mxu0 %v8245_v25  ;;  %v8273_v25 = vld [vmem:[%s10605_s3 + $0xc8] sm:$0xff]  }
 0x27d   : > { %7660 = vmatprep.subr.bf16.mxu0 %v8246_v32 }
 0x27e   : > { %v1729_v34 = vpop.f32.mrb[92].mxu1 }
 0x27f   : > { %v1731_v35 = vpop.f32.mrb[93].mxu1 }
 0x280   : > { %v1732_v37 = vpop.f32.mrb[94].mxu1  ;;  %7661 = vmatpush3.bf16.msra.mxu0 %v8246_v32 }
 0x281   : > { %v2135_v40 = vpack.c.bf16 %v1732_v37, %v1729_v34  ;;  %v1734_v41 = vpop.f32.mrb[95].mxu1  ;;  %7670 = vmatprep.subr.bf16.mxu0 %v8256_v33  ;;  %v8288_v34 = vld [vmem:[%s10605_s3 + $0xe0] sm:$0xff]  }
 0x282   : > { %v8271_v37 = vld [vmem:[%s10604_s2 + $0x320] ss:$8 sps:$4 sm:$0xff]  }
 0x283   : > { %1944 = vmatmul.mubr.bf16.gmra.mrb[200].mxu1 %v8239_v36  ;;  %7651 = vmatmul.mubr.msk.bf16.gmra.mrb[4].mxu0 %vm485_vm0, %v2135_v40  ;;  %v8274_v40 = vld [vmem:[%s10604_s2 + $0x334] ss:$8 sps:$4 sm:$0xff]  }
 0x284   : > { %1951 = vmatprep.mubr.bf16.mxu1 %v8242_v38 }
 0x286   : > { %v1737_v22 = vpop.f32.mrb[96].mxu1 }
 0x287   : > { %v1739_v44 = vpop.f32.mrb[97].mxu1 }
 0x288   : > { %v1740_v42 = vpop.f32.mrb[98].mxu1 }
 0x289   : > { %v2136_v46 = vpack.c.bf16 %v1740_v42, %v1737_v22  ;;  %v1742_v45 = vpop.f32.mrb[99].mxu1  ;;  %v8276_v42 = vld [vmem:[%s10604_s2 + $0x330] ss:$8 sps:$4 sm:$0xff]  }
 0x28b   : > { %1952 = vmatmul.mubr.bf16.gmra.mrb[204].mxu1 %v8244_v39  ;;  %7662 = vmatprep.mubr.msk.bf16.mxu0 %vm485_vm0, %v2136_v46  ;;  %v8279_v46 = vld [vmem:[%s10604_s2 + $0x344] ss:$8 sps:$4 sm:$0xff]  }
 0x28c   : > { %1959 = vmatprep.mubr.bf16.mxu1 %v8247_v43 }
 0x28e   : > { %v1745_v47 = vpop.f32.mrb[100].mxu1 }
 0x28f   : > { %v1747_v48 = vpop.f32.mrb[101].mxu1 }
 0x290   : > { %v1748_v50 = vpop.f32.mrb[102].mxu1 }
 0x291   : > { %v2137_v52 = vpack.c.bf16 %v1748_v50, %v1745_v47  ;;  %v1750_v53 = vpop.f32.mrb[103].mxu1  ;;  %v8281_v50 = vld [vmem:[%s10604_s2 + $0x340] ss:$8 sps:$4 sm:$0xff]  }
 0x293   : > { %1960 = vmatmul.mubr.bf16.gmra.mrb[208].mxu1 %v8249_v49  ;;  %7663 = vmatmul.mubr.msk.bf16.vlgmr.msra.gmra.mrb[0].mxu0 %vm485_vm0, %v2137_v52  ;;  %v8282_v52 = vld [vmem:[%s10604_s2 + $0x354] ss:$8 sps:$4 sm:$0xff]  }
 0x294   : > { %1967 = vmatprep.mubr.bf16.mxu1 %v8250_v51  ;;  %7671 = vmatpush3.bf16.msra.mxu0 %v8256_v33  ;;  %v8278_v33 = vld [vmem:[%s10605_s3 + $0xd8] sm:$0xff]  }
 0x295   : > { %7672 = vmatprep.subr.bf16.mxu0 %v8257_v54 }
 0x296   : > { %v1753_v56 = vpop.f32.mrb[104].mxu1 }
 0x297   : > { %v1755_v57 = vpop.f32.mrb[105].mxu1 }
 0x298   : > { %v1756_v59 = vpop.f32.mrb[106].mxu1  ;;  %7673 = vmatpush3.bf16.msra.mxu0 %v8257_v54 }
 0x299   : > { %v2138_v61 = vpack.c.bf16 %v1756_v59, %v1753_v56  ;;  %v1758_v62 = vpop.f32.mrb[107].mxu1  ;;  %7674 = vmatprep.subr.bf16.mxu0 %v8261_v55  ;;  %v8293_v56 = vld [vmem:[%s10605_s3 + $0xf0] sm:$0xff]  }
 0x29a   : > { %v8284_v59 = vld [vmem:[%s10604_s2 + $0x350] ss:$8 sps:$4 sm:$0xff]  }
 0x29b   : > { %1968 = vmatmul.mubr.bf16.gmra.mrb[212].mxu1 %v8252_v58  ;;  %7666 = vmatprep.mubr.msk.bf16.mxu0 %vm485_vm0, %v2138_v61  ;;  %v8285_v61 = vld [vmem:[%s10604_s2 + $0x364] ss:$8 sps:$4 sm:$0xff]  }
 0x29c   : > { %1975 = vmatprep.mubr.bf16.mxu1 %v8253_v60  ;;  %7675 = vmatpush3.bf16.msra.mxu0 %v8261_v55  ;;  %v8289_v55 = vld [vmem:[%s10605_s3 + $0xe8] sm:$0xff]  }
 0x29d   : > { %7676 = vmatprep.subr.bf16.mxu0 %v8262_v63 }
 0x29e   : > { %v1761_v1 = vpop.f32.mrb[108].mxu1 }
 0x29f   : > { %v1763_v2 = vpop.f32.mrb[109].mxu1 }
 0x2a0   : > { %v1764_v4 = vpop.f32.mrb[110].mxu1  ;;  %7677 = vmatpush3.bf16.msra.mxu0 %v8262_v63 }
 0x2a1   : > { %v2139_v6 = vpack.c.bf16 %v1764_v4, %v1761_v1  ;;  %v1766_v7 = vpop.f32.mrb[111].mxu1  ;;  %7686 = vmatprep.subr.bf16.mxu0 %v8272_v0  ;;  %v8304_v1 = vld [vmem:[%s10605_s3 + $0x100] sm:$0xff]  }
 0x2a2   : > { %v8287_v4 = vld [vmem:[%s10604_s2 + $0x360] ss:$8 sps:$4 sm:$0xff]  }
 0x2a3   : > { %1976 = vmatmul.mubr.bf16.gmra.mrb[216].mxu1 %v8255_v3  ;;  %7667 = vmatmul.mubr.msk.bf16.gmra.mrb[4].mxu0 %vm485_vm0, %v2139_v6  ;;  %v8290_v6 = vld [vmem:[%s10604_s2 + $0x374] ss:$8 sps:$4 sm:$0xff]  }
 0x2a4   : > { %1983 = vmatprep.mubr.bf16.mxu1 %v8258_v5 }
 0x2a6   : > { %v1769_v8 = vpop.f32.mrb[112].mxu1 }
 0x2a7   : > { %v1771_v9 = vpop.f32.mrb[113].mxu1 }
 0x2a8   : > { %v1772_v11 = vpop.f32.mrb[114].mxu1 }
 0x2a9   : > { %v2140_v13 = vpack.c.bf16 %v1772_v11, %v1769_v8  ;;  %v1774_v14 = vpop.f32.mrb[115].mxu1  ;;  %v8292_v11 = vld [vmem:[%s10604_s2 + $0x370] ss:$8 sps:$4 sm:$0xff]  }
 0x2ab   : > { %1984 = vmatmul.mubr.bf16.gmra.mrb[220].mxu1 %v8260_v10  ;;  %7678 = vmatprep.mubr.msk.bf16.mxu0 %vm485_vm0, %v2140_v13  ;;  %v8297_v13 = vld [vmem:[%s10604_s2 + $0x384] ss:$8 sps:$4 sm:$0xff]  }
 0x2ac   : > { %1991 = vmatprep.mubr.bf16.mxu1 %v8263_v12 }
 0x2ae   : > { %v1777_v15 = vpop.f32.mrb[116].mxu1 }
 0x2af   : > { %v1779_v16 = vpop.f32.mrb[117].mxu1 }
 0x2b0   : > { %v1780_v19 = vpop.f32.mrb[118].mxu1 }
 0x2b1   : > { %v2141_v23 = vpack.c.bf16 %v1780_v19, %v1777_v15  ;;  %v1782_v24 = vpop.f32.mrb[119].mxu1  ;;  %v8295_v19 = vld [vmem:[%s10604_s2 + $0x380] ss:$8 sps:$4 sm:$0xff]  }
 0x2b3   : > { %1992 = vmatmul.mubr.bf16.gmra.mrb[224].mxu1 %v8265_v17  ;;  %7679 = vmatmul.mubr.msk.bf16.vlgmr.msra.gmra.mrb[0].mxu0 %vm485_vm0, %v2141_v23  ;;  %v8300_v23 = vld [vmem:[%s10604_s2 + $0x394] ss:$8 sps:$4 sm:$0xff]  }
 0x2b4   : > { %1999 = vmatprep.mubr.bf16.mxu1 %v8266_v21  ;;  %7687 = vmatpush3.bf16.msra.mxu0 %v8272_v0  ;;  %v8294_v0 = vld [vmem:[%s10605_s3 + $0xf8] sm:$0xff]  }
 0x2b5   : > { %7688 = vmatprep.subr.bf16.mxu0 %v8273_v25 }
 0x2b6   : > { %v1785_v27 = vpop.f32.mrb[120].mxu1 }
 0x2b7   : > { %v1787_v18 = vpop.f32.mrb[121].mxu1 }
 0x2b8   : > { %v1788_v29 = vpop.f32.mrb[122].mxu1  ;;  %7689 = vmatpush3.bf16.msra.mxu0 %v8273_v25 }
 0x2b9   : > { %v2142_v31 = vpack.c.bf16 %v1788_v29, %v1785_v27  ;;  %v1790_v32 = vpop.f32.mrb[123].mxu1  ;;  %7690 = vmatprep.subr.bf16.mxu0 %v8277_v26  ;;  %v8309_v27 = vld [vmem:[%s10605_s3 + $0x110] sm:$0xff]  }
 0x2ba   : > { %v8298_v29 = vld [vmem:[%s10604_s2 + $0x390] ss:$8 sps:$4 sm:$0xff]  }
 0x2bb   : > { %2000 = vmatmul.mubr.bf16.gmra.mrb[228].mxu1 %v8268_v28  ;;  %7682 = vmatprep.mubr.msk.bf16.mxu0 %vm485_vm0, %v2142_v31  ;;  %v8303_v31 = vld [vmem:[%s10604_s2 + $0x3a4] ss:$8 sps:$4 sm:$0xff]  }
 0x2bc   : > { %2007 = vmatprep.mubr.bf16.mxu1 %v8269_v30  ;;  %7691 = vmatpush3.bf16.msra.mxu0 %v8277_v26  ;;  %v8305_v26 = vld [vmem:[%s10605_s3 + $0x108] sm:$0xff]  }
 0x2bd   : > { %7692 = vmatprep.subr.bf16.mxu0 %v8278_v33 }
 0x2be   : > { %v1793_v35 = vpop.f32.mrb[124].mxu1 }
 0x2bf   : > { %v1795_v36 = vpop.f32.mrb[125].mxu1 }
 0x2c0   : > { %v1796_v38 = vpop.f32.mrb[126].mxu1  ;;  %7693 = vmatpush3.bf16.msra.mxu0 %v8278_v33 }
 0x2c1   : > { %v2143_v41 = vpack.c.bf16 %v1796_v38, %v1793_v35  ;;  %v1798_v22 = vpop.f32.mrb[127].mxu1  ;;  %7702 = vmatprep.subr.bf16.mxu0 %v8288_v34  ;;  %v8320_v35 = vld [vmem:[%s10605_s3 + $0x120] sm:$0xff]  }
 0x2c2   : > { %v8301_v38 = vld [vmem:[%s10604_s2 + $0x3a0] ss:$8 sps:$4 sm:$0xff]  }
 0x2c3   : > { %2008 = vmatmul.mubr.bf16.gmra.mrb[232].mxu1 %v8271_v37  ;;  %7683 = vmatmul.mubr.msk.bf16.gmra.mrb[4].mxu0 %vm485_vm0, %v2143_v41  ;;  %v8308_v41 = vld [vmem:[%s10604_s2 + $0x3b4] ss:$8 sps:$4 sm:$0xff]  }
 0x2c4   : > { %2015 = vmatprep.mubr.bf16.mxu1 %v8274_v40 }
 0x2c6   : > { %v1801_v44 = vpop.f32.mrb[128].mxu1 }
 0x2c7   : > { %v1803_v39 = vpop.f32.mrb[129].mxu1 }
 0x2c8   : > { %v1804_v43 = vpop.f32.mrb[130].mxu1 }
 0x2c9   : > { %v2144_v45 = vpack.c.bf16 %v1804_v43, %v1801_v44  ;;  %v1806_v47 = vpop.f32.mrb[131].mxu1  ;;  %v8306_v43 = vld [vmem:[%s10604_s2 + $0x3b0] ss:$8 sps:$4 sm:$0xff]  }
 0x2cb   : > { %2016 = vmatmul.mubr.bf16.gmra.mrb[236].mxu1 %v8276_v42  ;;  %7694 = vmatprep.mubr.msk.bf16.mxu0 %vm485_vm0, %v2144_v45  ;;  %v8313_v45 = vld [vmem:[%s10604_s2 + $0x3c4] ss:$8 sps:$4 sm:$0xff]  }
 0x2cc   : > { %2023 = vmatprep.mubr.bf16.mxu1 %v8279_v46 }
 0x2ce   : > { %v1809_v48 = vpop.f32.mrb[132].mxu1 }
 0x2cf   : > { %v1811_v49 = vpop.f32.mrb[133].mxu1 }
 0x2d0   : > { %v1812_v51 = vpop.f32.mrb[134].mxu1 }
 0x2d1   : > { %v2145_v53 = vpack.c.bf16 %v1812_v51, %v1809_v48  ;;  %v1814_v54 = vpop.f32.mrb[135].mxu1  ;;  %v8311_v51 = vld [vmem:[%s10604_s2 + $0x3c0] ss:$8 sps:$4 sm:$0xff]  }
 0x2d3   : > { %2024 = vmatmul.mubr.bf16.gmra.mrb[240].mxu1 %v8281_v50  ;;  %7695 = vmatmul.mubr.msk.bf16.vlgmr.msra.gmra.mrb[0].mxu0 %vm485_vm0, %v2145_v53  ;;  %v8316_v53 = vld [vmem:[%s10604_s2 + $0x3d4] ss:$8 sps:$4 sm:$0xff]  }
 0x2d4   : > { %2031 = vmatprep.mubr.bf16.mxu1 %v8282_v52  ;;  %7703 = vmatpush3.bf16.msra.mxu0 %v8288_v34  ;;  %v8310_v34 = vld [vmem:[%s10605_s3 + $0x118] sm:$0xff]  }
 0x2d5   : > { %7704 = vmatprep.subr.bf16.mxu0 %v8289_v55 }
 0x2d6   : > { %v1817_v57 = vpop.f32.mrb[136].mxu1 }
 0x2d7   : > { %v1819_v58 = vpop.f32.mrb[137].mxu1 }
 0x2d8   : > { %v1820_v60 = vpop.f32.mrb[138].mxu1  ;;  %7705 = vmatpush3.bf16.msra.mxu0 %v8289_v55 }
 0x2d9   : > { %v2146_v62 = vpack.c.bf16 %v1820_v60, %v1817_v57  ;;  %v1822_v63 = vpop.f32.mrb[139].mxu1  ;;  %7706 = vmatprep.subr.bf16.mxu0 %v8293_v56  ;;  %v8325_v57 = vld [vmem:[%s10605_s3 + $0x130] sm:$0xff]  }
 0x2da   : > { %v8314_v60 = vld [vmem:[%s10604_s2 + $0x3d0] ss:$8 sps:$4 sm:$0xff]  }
 0x2db   : > { %2032 = vmatmul.mubr.bf16.gmra.mrb[244].mxu1 %v8284_v59  ;;  %7698 = vmatprep.mubr.msk.bf16.mxu0 %vm485_vm0, %v2146_v62  ;;  %v8319_v62 = vld [vmem:[%s10604_s2 + $0x3e4] ss:$8 sps:$4 sm:$0xff]  }
 0x2dc   : > { %2039 = vmatprep.mubr.bf16.mxu1 %v8285_v61  ;;  %7707 = vmatpush3.bf16.msra.mxu0 %v8293_v56  ;;  %v8321_v56 = vld [vmem:[%s10605_s3 + $0x128] sm:$0xff]  }
 0x2dd   : > { %7708 = vmatprep.subr.bf16.mxu0 %v8294_v0 }
 0x2de   : > { %v1825_v2 = vpop.f32.mrb[140].mxu1 }
 0x2df   : > { %v1827_v3 = vpop.f32.mrb[141].mxu1 }
 0x2e0   : > { %v1828_v5 = vpop.f32.mrb[142].mxu1  ;;  %7709 = vmatpush3.bf16.msra.mxu0 %v8294_v0 }
 0x2e1   : > { %v2147_v7 = vpack.c.bf16 %v1828_v5, %v1825_v2  ;;  %v1830_v8 = vpop.f32.mrb[143].mxu1  ;;  %7718 = vmatprep.subr.bf16.mxu0 %v8304_v1  ;;  %v8327_v2 = vld [vmem:[%s10605_s3 + $0x140] sm:$0xff]  }
 0x2e2   : > { %v8317_v5 = vld [vmem:[%s10604_s2 + $0x3e0] ss:$8 sps:$4 sm:$0xff]  }
 0x2e3   : > { %2040 = vmatmul.mubr.bf16.gmra.mrb[248].mxu1 %v8287_v4  ;;  %7699 = vmatmul.mubr.msk.bf16.gmra.mrb[4].mxu0 %vm485_vm0, %v2147_v7  ;;  %v8324_v7 = vld [vmem:[%s10604_s2 + $0x3f4] ss:$8 sps:$4 sm:$0xff]  }
 0x2e4   : > { %2047 = vmatprep.mubr.bf16.mxu1 %v8290_v6 }
 0x2e6   : > { %v1833_v9 = vpop.f32.mrb[144].mxu1 }
 0x2e7   : > { %v1835_v10 = vpop.f32.mrb[145].mxu1 }
 0x2e8   : > { %v1836_v12 = vpop.f32.mrb[146].mxu1 }
 0x2e9   : > { %v2148_v14 = vpack.c.bf16 %v1836_v12, %v1833_v9  ;;  %v1838_v15 = vpop.f32.mrb[147].mxu1  ;;  %v8322_v12 = vld [vmem:[%s10604_s2 + $0x3f0] ss:$8 sps:$4 sm:$0xff]  }
 0x2eb   : > { %2048 = vmatmul.mubr.bf16.gmra.mrb[252].mxu1 %v8292_v11  ;;  %7710 = vmatprep.mubr.msk.bf16.mxu0 %vm485_vm0, %v2148_v14 }
 0x2ec   : > { %2055 = vmatprep.mubr.bf16.mxu1 %v8297_v13 }
 0x2ee   : > { %v1841_v16 = vpop.f32.mrb[148].mxu1 }
 0x2ef   : > { %v1843_v17 = vpop.f32.mrb[149].mxu1 }
 0x2f0   : > { %v1844_v21 = vpop.f32.mrb[150].mxu1 }
 0x2f1   : > { %v2149_v24 = vpack.c.bf16 %v1844_v21, %v1841_v16  ;;  %v1846_v25 = vpop.f32.mrb[151].mxu1 }
 0x2f2   : > { %v8329_v25 = vld [vmem:[%s10605_s3 + $0x150] sm:$0xff]  }
 0x2f3   : > { %2056 = vmatmul.mubr.bf16.gmra.mrb[0].mxu1 %v8295_v19  ;;  %7711 = vmatmul.mubr.msk.bf16.vlgmr.msra.gmra.mrb[0].mxu0 %vm485_vm0, %v2149_v24  ;;  %v8328_v24 = vld [vmem:[%s10605_s3 + $0x148] sm:$0xff]  }
 0x2f4   : > { %2063 = vmatprep.mubr.bf16.mxu1 %v8300_v23  ;;  %7719 = vmatpush3.bf16.msra.mxu0 %v8304_v1  ;;  %v8326_v1 = vld [vmem:[%s10605_s3 + $0x138] sm:$0xff]  }
 0x2f5   : > { %7720 = vmatprep.subr.bf16.mxu0 %v8305_v26 }
 0x2f6   : > { %v1849_v18 = vpop.f32.mrb[152].mxu1 }
 0x2f7   : > { %v1851_v28 = vpop.f32.mrb[153].mxu1 }
 0x2f8   : > { %v1852_v30 = vpop.f32.mrb[154].mxu1  ;;  %7721 = vmatpush3.bf16.msra.mxu0 %v8305_v26 }
 0x2f9   : > { %v2150_v32 = vpack.c.bf16 %v1852_v30, %v1849_v18  ;;  %v1854_v33 = vpop.f32.mrb[155].mxu1  ;;  %7722 = vmatprep.subr.bf16.mxu0 %v8309_v27  ;;  %v8330_v30 = vld [vmem:[%s10605_s3 + $0x158] sm:$0xff]  }
 0x2fb   : > { %2064 = vmatmul.mubr.bf16.gmra.mrb[4].mxu1 %v8298_v29  ;;  %7714 = vmatprep.mubr.msk.bf16.mxu0 %vm485_vm0, %v2150_v32 }
 0x2fc   : > { %2071 = vmatprep.mubr.bf16.mxu1 %v8303_v31  ;;  %7723 = vmatpush3.bf16.msra.mxu0 %v8309_v27  ;;  %v8331_v31 = vld [vmem:[%s10605_s3 + $0x160] sm:$0xff]  }
 0x2fd   : > { %7724 = vmatprep.subr.bf16.mxu0 %v8310_v34 }
 0x2fe   : > { %v1857_v36 = vpop.f32.mrb[156].mxu1 }
 0x2ff   : > { %v1859_v37 = vpop.f32.mrb[157].mxu1 }
 0x300   : > { %v1860_v40 = vpop.f32.mrb[158].mxu1  ;;  %7725 = vmatpush3.bf16.msra.mxu0 %v8310_v34 }
 0x301   : > { %v2151_v22 = vpack.c.bf16 %v1860_v40, %v1857_v36  ;;  %v1862_v44 = vpop.f32.mrb[159].mxu1  ;;  %7734 = vmatprep.subr.bf16.mxu0 %v8320_v35 }
 0x303   : > { %2072 = vmatmul.mubr.bf16.gmra.mrb[8].mxu1 %v8301_v38  ;;  %7715 = vmatmul.mubr.msk.bf16.gmra.mrb[4].mxu0 %vm485_vm0, %v2151_v22 }
 0x304   : > { %2079 = vmatprep.mubr.bf16.mxu1 %v8308_v41 }
 0x306   : > { %v1865_v39 = vpop.f32.mrb[160].mxu1 }
 0x307   : > { %v1867_v42 = vpop.f32.mrb[161].mxu1 }
 0x308   : > { %v1868_v46 = vpop.f32.mrb[162].mxu1 }
 0x309   : > { %v2152_v47 = vpack.c.bf16 %v1868_v46, %v1865_v39  ;;  %v1870_v48 = vpop.f32.mrb[163].mxu1 }
 0x30b   : > { %2080 = vmatmul.mubr.bf16.gmra.mrb[12].mxu1 %v8306_v43  ;;  %7726 = vmatprep.mubr.msk.bf16.mxu0 %vm485_vm0, %v2152_v47  ;;  %v8333_v47 = vld [vmem:[%s10605_s3 + $0x170] sm:$0xff]  }
 0x30c   : > { %2087 = vmatprep.mubr.bf16.mxu1 %v8313_v45  ;;  %v8332_v45 = vld [vmem:[%s10605_s3 + $0x168] sm:$0xff]  }
 0x30e   : > { %v1873_v49 = vpop.f32.mrb[164].mxu1 }
 0x30f   : > { %v1875_v50 = vpop.f32.mrb[165].mxu1 }
 0x310   : > { %v1876_v52 = vpop.f32.mrb[166].mxu1 }
 0x311   : > { %v2153_v54 = vpack.c.bf16 %v1876_v52, %v1873_v49  ;;  %v1878_v55 = vpop.f32.mrb[167].mxu1 }
 0x313   : > { %2088 = vmatmul.mubr.bf16.gmra.mrb[16].mxu1 %v8311_v51  ;;  %7727 = vmatmul.mubr.msk.bf16.vlgmr.msra.gmra.mrb[0].mxu0 %vm485_vm0, %v2153_v54  ;;  %v8335_v54 = vld [vmem:[%s10605_s3 + $0x180] sm:$0xff]  }
 0x314   : > { %2095 = vmatprep.mubr.bf16.mxu1 %v8316_v53  ;;  %7735 = vmatpush3.bf16.msra.mxu0 %v8320_v35  ;;  %v8334_v53 = vld [vmem:[%s10605_s3 + $0x178] sm:$0xff]  }
 0x315   : > { %7736 = vmatprep.subr.bf16.mxu0 %v8321_v56 }
 0x316   : > { %v1881_v58 = vpop.f32.mrb[168].mxu1 }
 0x317   : > { %v1883_v59 = vpop.f32.mrb[169].mxu1 }
 0x318   : > { %v1884_v61 = vpop.f32.mrb[170].mxu1  ;;  %7737 = vmatpush3.bf16.msra.mxu0 %v8321_v56 }
 0x319   : > { %v2154_v63 = vpack.c.bf16 %v1884_v61, %v1881_v58  ;;  %v1886_v0 = vpop.f32.mrb[171].mxu1  ;;  %7738 = vmatprep.subr.bf16.mxu0 %v8325_v57 }
 0x31b   : > { %2096 = vmatmul.mubr.bf16.gmra.mrb[20].mxu1 %v8314_v60  ;;  %7730 = vmatprep.mubr.msk.bf16.mxu0 %vm485_vm0, %v2154_v63 }
 0x31c   : > { %2103 = vmatprep.mubr.bf16.mxu1 %v8319_v62  ;;  %7739 = vmatpush3.bf16.msra.mxu0 %v8325_v57 }
 0x31d   : > { %7740 = vmatprep.subr.bf16.mxu0 %v8326_v1 }
 0x31e   : > { %v1889_v3 = vpop.f32.mrb[172].mxu1 }
 0x31f   : > { %v1891_v4 = vpop.f32.mrb[173].mxu1 }
 0x320   : > { %v1892_v6 = vpop.f32.mrb[174].mxu1  ;;  %7741 = vmatpush3.bf16.msra.mxu0 %v8326_v1 }
 0x321   : > { %v2155_v8 = vpack.c.bf16 %v1892_v6, %v1889_v3  ;;  %v1894_v9 = vpop.f32.mrb[175].mxu1  ;;  %7750 = vmatprep.subr.bf16.mxu0 %v8327_v2  ;;  %v8336_v6 = vld [vmem:[%s10605_s3 + $0x188] sm:$0xff]  }
 0x323   : > { %2104 = vmatmul.mubr.bf16.gmra.mrb[24].mxu1 %v8317_v5  ;;  %7731 = vmatmul.mubr.msk.bf16.gmra.mrb[4].mxu0 %vm485_vm0, %v2155_v8 }
 0x324   : > { %2111 = vmatprep.mubr.bf16.mxu1 %v8324_v7  ;;  %v8337_v7 = vld [vmem:[%s10605_s3 + $0x190] sm:$0xff]  }
 0x326   : > { %v1897_v10 = vpop.f32.mrb[176].mxu1 }
 0x327   : > { %v1899_v11 = vpop.f32.mrb[177].mxu1 }
 0x328   : > { %v1900_v13 = vpop.f32.mrb[178].mxu1 }
 0x329   : > { %v2156_v14 = vpack.c.bf16 %v1900_v13, %v1897_v10  ;;  %v1902_v15 = vpop.f32.mrb[179].mxu1  ;;  %v8338_v13 = vld [vmem:[%s10605_s3 + $0x198] sm:$0xff]  }
 0x32b   : > { %2112 = vmatmul.mubr.bf16.gmra.mrb[28].mxu1 %v8322_v12  ;;  %7742 = vmatprep.mubr.msk.bf16.mxu0 %vm485_vm0, %v2156_v14  ;;  %v8339_v14 = vld [vmem:[%s10605_s3 + $0x1a0] sm:$0xff]  }
 0x32e   : > { %v1905_v16 = vpop.f32.mrb[180].mxu1 }
 0x32f   : > { %v1907_v17 = vpop.f32.mrb[181].mxu1 }
 0x330   : > { %v1908_v19 = vpop.f32.mrb[182].mxu1 }
 0x331   : > { %v2157_v21 = vpack.c.bf16 %v1908_v19, %v1905_v16  ;;  %v1910_v23 = vpop.f32.mrb[183].mxu1 }
 0x333   : > { %7743 = vmatmul.mubr.msk.bf16.vlgmr.msra.gmra.mrb[0].mxu0 %vm485_vm0, %v2157_v21 }
 0x334   : > { %7751 = vmatpush3.bf16.msra.mxu0 %v8327_v2 }
 0x335   : > { %7752 = vmatprep.subr.bf16.mxu0 %v8328_v24 }
 0x336   : > { %v1913_v26 = vpop.f32.mrb[184].mxu1 }
 0x337   : > { %v1915_v27 = vpop.f32.mrb[185].mxu1 }
 0x338   : > { %v1916_v18 = vpop.f32.mrb[186].mxu1  ;;  %7753 = vmatpush3.bf16.msra.mxu0 %v8328_v24 }
 0x339   : > { %v2158_v28 = vpack.c.bf16 %v1916_v18, %v1913_v26  ;;  %v1918_v29 = vpop.f32.mrb[187].mxu1  ;;  %7754 = vmatprep.subr.bf16.mxu0 %v8329_v25 }
 0x33b   : > { %7746 = vmatprep.mubr.msk.bf16.mxu0 %vm485_vm0, %v2158_v28 }
 0x33c   : > { %7755 = vmatpush3.bf16.msra.mxu0 %v8329_v25 }
 0x33d   : > { %7756 = vmatprep.subr.bf16.mxu0 %v8330_v30 }
 0x33e   : > { %v1921_v32 = vpop.f32.mrb[188].mxu1 }
 0x33f   : > { %v1923_v33 = vpop.f32.mrb[189].mxu1 }
 0x340   : > { %v1924_v34 = vpop.f32.mrb[190].mxu1  ;;  %7757 = vmatpush3.bf16.msra.mxu0 %v8330_v30  ;;  %v8341_v33 = vld [vmem:[%s10605_s3 + $0x1b0] sm:$0xff]  }
 0x341   : > { %v2159_v35 = vpack.c.bf16 %v1924_v34, %v1921_v32  ;;  %v1926_v36 = vpop.f32.mrb[191].mxu1  ;;  %7766 = vmatprep.subr.bf16.mxu0 %v8331_v31  ;;  %v8340_v32 = vld [vmem:[%s10605_s3 + $0x1a8] sm:$0xff]  }
 0x343   : > { %7747 = vmatmul.mubr.msk.bf16.gmra.mrb[4].mxu0 %vm485_vm0, %v2159_v35 }
 0x346   : > { %v1929_v37 = vpop.f32.mrb[192].mxu1 }
 0x347   : > { %v1931_v38 = vpop.f32.mrb[193].mxu1 }
 0x348   : > { %v1932_v40 = vpop.f32.mrb[194].mxu1 }
 0x349   : > { %v2160_v41 = vpack.c.bf16 %v1932_v40, %v1929_v37  ;;  %v1934_v22 = vpop.f32.mrb[195].mxu1  ;;  %v8342_v40 = vld [vmem:[%s10605_s3 + $0x1b8] sm:$0xff]  }
 0x34b   : > { %7758 = vmatprep.mubr.msk.bf16.mxu0 %vm485_vm0, %v2160_v41  ;;  %v8343_v41 = vld [vmem:[%s10605_s3 + $0x1c0] sm:$0xff]  }
 0x34e   : > { %v1937_v44 = vpop.f32.mrb[196].mxu1 }
 0x34f   : > { %v1939_v39 = vpop.f32.mrb[197].mxu1 }
 0x350   : > { %v1940_v42 = vpop.f32.mrb[198].mxu1 }
 0x351   : > { %v2161_v43 = vpack.c.bf16 %v1940_v42, %v1937_v44  ;;  %v1942_v46 = vpop.f32.mrb[199].mxu1 }
 0x353   : > { %7759 = vmatmul.mubr.msk.bf16.vlgmr.msra.gmra.mrb[0].mxu0 %vm485_vm0, %v2161_v43 }
 0x354   : > { %7767 = vmatpush3.bf16.msra.mxu0 %v8331_v31 }
 0x355   : > { %7768 = vmatprep.subr.bf16.mxu0 %v8332_v45 }
 0x356   : > { %v1945_v48 = vpop.f32.mrb[200].mxu1 }
 0x357   : > { %v1947_v49 = vpop.f32.mrb[201].mxu1 }
 0x358   : > { %v1948_v50 = vpop.f32.mrb[202].mxu1  ;;  %7769 = vmatpush3.bf16.msra.mxu0 %v8332_v45 }
 0x359   : > { %v2162_v51 = vpack.c.bf16 %v1948_v50, %v1945_v48  ;;  %v1950_v52 = vpop.f32.mrb[203].mxu1  ;;  %7770 = vmatprep.subr.bf16.mxu0 %v8333_v47 }
 0x35b   : > { %7762 = vmatprep.mubr.msk.bf16.mxu0 %vm485_vm0, %v2162_v51 }
 0x35c   : > { %7771 = vmatpush3.bf16.msra.mxu0 %v8333_v47 }
 0x35d   : > { %7772 = vmatprep.subr.bf16.mxu0 %v8334_v53 }
 0x35e   : > { %v1953_v55 = vpop.f32.mrb[204].mxu1 }
 0x35f   : > { %v1955_v56 = vpop.f32.mrb[205].mxu1 }
 0x360   : > { %v1956_v57 = vpop.f32.mrb[206].mxu1  ;;  %7773 = vmatpush3.bf16.msra.mxu0 %v8334_v53  ;;  %v8345_v56 = vld [vmem:[%s10605_s3 + $0x1d0] sm:$0xff]  }
 0x361   : > { %v2163_v58 = vpack.c.bf16 %v1956_v57, %v1953_v55  ;;  %v1958_v59 = vpop.f32.mrb[207].mxu1  ;;  %7782 = vmatprep.subr.bf16.mxu0 %v8335_v54  ;;  %v8344_v55 = vld [vmem:[%s10605_s3 + $0x1c8] sm:$0xff]  }
 0x363   : > { %7763 = vmatmul.mubr.msk.bf16.gmra.mrb[4].mxu0 %vm485_vm0, %v2163_v58 }
 0x366   : > { %v1961_v60 = vpop.f32.mrb[208].mxu1 }
 0x367   : > { %v1963_v61 = vpop.f32.mrb[209].mxu1 }
 0x368   : > { %v1964_v62 = vpop.f32.mrb[210].mxu1 }
 0x369   : > { %v2164_v63 = vpack.c.bf16 %v1964_v62, %v1961_v60  ;;  %v1966_v0 = vpop.f32.mrb[211].mxu1  ;;  %v8346_v62 = vld [vmem:[%s10605_s3 + $0x1d8] sm:$0xff]  }
 0x36b   : > { %7774 = vmatprep.mubr.msk.bf16.mxu0 %vm485_vm0, %v2164_v63  ;;  %v8347_v63 = vld [vmem:[%s10605_s3 + $0x1e0] sm:$0xff]  }
 0x36e   : > { %v1969_v1 = vpop.f32.mrb[212].mxu1 }
 0x36f   : > { %v1971_v2 = vpop.f32.mrb[213].mxu1 }
 0x370   : > { %v1972_v3 = vpop.f32.mrb[214].mxu1 }
 0x371   : > { %v2165_v4 = vpack.c.bf16 %v1972_v3, %v1969_v1  ;;  %v1974_v5 = vpop.f32.mrb[215].mxu1 }
 0x373   : > { %7775 = vmatmul.mubr.msk.bf16.vlgmr.msra.gmra.mrb[0].mxu0 %vm485_vm0, %v2165_v4 }
 0x374   : > { %7783 = vmatpush3.bf16.msra.mxu0 %v8335_v54 }
 0x375   : > { %7784 = vmatprep.subr.bf16.mxu0 %v8336_v6 }
 0x376   : > { %v1977_v8 = vpop.f32.mrb[216].mxu1 }
 0x377   : > { %v1979_v9 = vpop.f32.mrb[217].mxu1 }
 0x378   : > { %v1980_v10 = vpop.f32.mrb[218].mxu1  ;;  %7785 = vmatpush3.bf16.msra.mxu0 %v8336_v6 }
 0x379   : > { %v2166_v11 = vpack.c.bf16 %v1980_v10, %v1977_v8  ;;  %v1982_v12 = vpop.f32.mrb[219].mxu1  ;;  %7786 = vmatprep.subr.bf16.mxu0 %v8337_v7 }
 0x37b   : > { %7778 = vmatprep.mubr.msk.bf16.mxu0 %vm485_vm0, %v2166_v11 }
 0x37c   : > { %7787 = vmatpush3.bf16.msra.mxu0 %v8337_v7 }
 0x37d   : > { %7788 = vmatprep.subr.bf16.mxu0 %v8338_v13 }
 0x37e   : > { %v1985_v15 = vpop.f32.mrb[220].mxu1 }
 0x37f   : > { %v1987_v16 = vpop.f32.mrb[221].mxu1 }
 0x380   : > { %v1988_v17 = vpop.f32.mrb[222].mxu1  ;;  %7789 = vmatpush3.bf16.msra.mxu0 %v8338_v13  ;;  %v8349_v16 = vld [vmem:[%s10605_s3 + $0x1f0] sm:$0xff]  }
 0x381   : > { %v2167_v19 = vpack.c.bf16 %v1988_v17, %v1985_v15  ;;  %v1990_v21 = vpop.f32.mrb[223].mxu1  ;;  %7798 = vmatprep.subr.bf16.mxu0 %v8339_v14  ;;  %v8348_v15 = vld [vmem:[%s10605_s3 + $0x1e8] sm:$0xff]  }
 0x383   : > { %7779 = vmatmul.mubr.msk.bf16.gmra.mrb[4].mxu0 %vm485_vm0, %v2167_v19 }
 0x386   : > { %v1993_v23 = vpop.f32.mrb[224].mxu1 }
 0x387   : > { %v1995_v24 = vpop.f32.mrb[225].mxu1 }
 0x388   : > { %v1996_v25 = vpop.f32.mrb[226].mxu1 }
 0x389   : > { %v2168_v26 = vpack.c.bf16 %v1996_v25, %v1993_v23  ;;  %v1998_v27 = vpop.f32.mrb[227].mxu1  ;;  %v8350_v25 = vld [vmem:[%s10605_s3 + $0x1f8] sm:$0xff]  }
 0x38b   : > { %7790 = vmatprep.mubr.msk.bf16.mxu0 %vm485_vm0, %v2168_v26 }
 0x38e   : > { %v2001_v18 = vpop.f32.mrb[228].mxu1 }
 0x38f   : > { %v2003_v28 = vpop.f32.mrb[229].mxu1 }
 0x390   : > { %v2004_v29 = vpop.f32.mrb[230].mxu1 }
 0x391   : > { %v2169_v30 = vpack.c.bf16 %v2004_v29, %v2001_v18  ;;  %v2006_v31 = vpop.f32.mrb[231].mxu1 }
 0x393   : > { %7791 = vmatmul.mubr.msk.bf16.vlgmr.msra.gmra.mrb[0].mxu0 %vm485_vm0, %v2169_v30 }
 0x394   : > { %7799 = vmatpush3.bf16.msra.mxu0 %v8339_v14 }
 0x395   : > { %7800 = vmatprep.subr.bf16.mxu0 %v8340_v32 }
 0x396   : > { %v2009_v34 = vpop.f32.mrb[232].mxu1 }
 0x397   : > { %v2011_v35 = vpop.f32.mrb[233].mxu1 }
 0x398   : > { %v2012_v36 = vpop.f32.mrb[234].mxu1  ;;  %7801 = vmatpush3.bf16.msra.mxu0 %v8340_v32 }
 0x399   : > { %v2170_v37 = vpack.c.bf16 %v2012_v36, %v2009_v34  ;;  %v2014_v38 = vpop.f32.mrb[235].mxu1  ;;  %7802 = vmatprep.subr.bf16.mxu0 %v8341_v33 }
 0x39b   : > { %7794 = vmatprep.mubr.msk.bf16.mxu0 %vm485_vm0, %v2170_v37 }
 0x39c   : > { %7803 = vmatpush3.bf16.msra.mxu0 %v8341_v33 }
 0x39d   : > { %7804 = vmatprep.subr.bf16.mxu0 %v8342_v40 }
 0x39e   : > { %v2017_v22 = vpop.f32.mrb[236].mxu1 }
 0x39f   : > { %v2019_v44 = vpop.f32.mrb[237].mxu1 }
 0x3a0   : > { %v2020_v39 = vpop.f32.mrb[238].mxu1  ;;  %7805 = vmatpush3.bf16.msra.mxu0 %v8342_v40 }
 0x3a1   : > { %v2171_v42 = vpack.c.bf16 %v2020_v39, %v2017_v22  ;;  %v2022_v43 = vpop.f32.mrb[239].mxu1  ;;  %7814 = vmatprep.subr.bf16.mxu0 %v8343_v41 }
 0x3a3   : > { %7795 = vmatmul.mubr.msk.bf16.gmra.mrb[4].mxu0 %vm485_vm0, %v2171_v42 }
 0x3a6   : > { %v2025_v46 = vpop.f32.mrb[240].mxu1 }
 0x3a7   : > { %v2027_v45 = vpop.f32.mrb[241].mxu1 }
 0x3a8   : > { %v2028_v47 = vpop.f32.mrb[242].mxu1 }
 0x3a9   : > { %v2172_v48 = vpack.c.bf16 %v2028_v47, %v2025_v46  ;;  %v2030_v49 = vpop.f32.mrb[243].mxu1 }
 0x3aa   : > { %v8351_v49 = vld [vmem:[%s10606_s4] sm:$0xff]  }
 0x3ab   : > { %7806 = vmatprep.mubr.msk.bf16.mxu0 %vm485_vm0, %v2172_v48  ;;  %7854 = vmatprep.mubr.msk.bf16.mxu1 %vm485_vm0, %v8351_v49  ;;  %v8415_v49 = vld [vmem:[%s10606_s4 + $0x50] sm:$0xff]  }
 0x3ae   : > { %v2033_v50 = vpop.f32.mrb[244].mxu1 }
 0x3af   : > { %v2035_v51 = vpop.f32.mrb[245].mxu1 }
 0x3b0   : > { %v2036_v52 = vpop.f32.mrb[246].mxu1  ;;  %v8361_v51 = vld [vmem:[%s10607_s5 + $0x104] ss:$8 sps:$4 sm:$0xff]  }
 0x3b1   : > { %v2173_v53 = vpack.c.bf16 %v2036_v52, %v2033_v50  ;;  %v2038_v54 = vpop.f32.mrb[247].mxu1  ;;  %v8359_v50 = vld [vmem:[%s10607_s5 + $0x100] ss:$8 sps:$4 sm:$0xff]   ;;  %v8364_v52 = vld [vmem:[%s10607_s5 + $0x114] ss:$8 sps:$4 sm:$0xff]  }
 0x3b2   : > { %v8367_v54 = vld [vmem:[%s10607_s5 + $0x120] ss:$8 sps:$4 sm:$0xff]  }
 0x3b3   : > { %7807 = vmatmul.mubr.msk.bf16.vlgmr.msra.gmra.mrb[0].mxu0 %vm485_vm0, %v2173_v53  ;;  %v8362_v53 = vld [vmem:[%s10607_s5 + $0x110] ss:$8 sps:$4 sm:$0xff]  }
 0x3b4   : > { %7815 = vmatpush3.bf16.msra.mxu0 %v8343_v41 }
 0x3b5   : > { %7816 = vmatprep.subr.bf16.mxu0 %v8344_v55 }
 0x3b6   : > { %v2041_v57 = vpop.f32.mrb[248].mxu1 }
 0x3b7   : > { %v2043_v58 = vpop.f32.mrb[249].mxu1 }
 0x3b8   : > { %v2044_v59 = vpop.f32.mrb[250].mxu1  ;;  %7817 = vmatpush3.bf16.msra.mxu0 %v8344_v55  ;;  %v8369_v55 = vld [vmem:[%s10607_s5 + $0x124] ss:$8 sps:$4 sm:$0xff]  }
 0x3b9   : > { %v2174_v60 = vpack.c.bf16 %v2044_v59, %v2041_v57  ;;  %v2046_v61 = vpop.f32.mrb[251].mxu1  ;;  %7818 = vmatprep.subr.bf16.mxu0 %v8345_v56  ;;  %v8370_v57 = vld [vmem:[%s10607_s5 + $0x130] ss:$8 sps:$4 sm:$0xff]   ;;  %v8375_v58 = vld [vmem:[%s10607_s5 + $0x144] ss:$8 sps:$4 sm:$0xff]  }
 0x3ba   : > { %v8373_v59 = vld [vmem:[%s10607_s5 + $0x140] ss:$8 sps:$4 sm:$0xff]   ;;  %v8376_v61 = vld [vmem:[%s10607_s5 + $0x150] ss:$8 sps:$4 sm:$0xff]  }
 0x3bb   : > { %7810 = vmatprep.mubr.msk.bf16.mxu0 %vm485_vm0, %v2174_v60  ;;  %v8378_v60 = vld [vmem:[%s10607_s5 + $0x154] ss:$8 sps:$4 sm:$0xff]  }
 0x3bc   : > { %7819 = vmatpush3.bf16.msra.mxu0 %v8345_v56  ;;  %v8372_v56 = vld [vmem:[%s10607_s5 + $0x134] ss:$8 sps:$4 sm:$0xff]  }
 0x3bd   : > { %7820 = vmatprep.subr.bf16.mxu0 %v8346_v62 }
 0x3be   : > { %v2049_v0 = vpop.f32.mrb[252].mxu1 }
 0x3bf   : > { %v2051_v1 = vpop.f32.mrb[253].mxu1 }
 0x3c0   : > { %v2052_v2 = vpop.f32.mrb[254].mxu1  ;;  %7821 = vmatpush3.bf16.msra.mxu0 %v8346_v62  ;;  %v7089_v62 = vld [vmem:[%s10609_s7] ss:$0 sm:$0xff] }
 0x3c1   : > { %v2175_v3 = vpack.c.bf16 %v2052_v2, %v2049_v0  ;;  %v2054_v4 = vpop.f32.mrb[255].mxu1  ;;  %7830 = vmatprep.subr.bf16.mxu0 %v8347_v63 }
 0x3c3   : > { %7811 = vmatmul.mubr.msk.bf16.gmra.mrb[4].mxu0 %vm485_vm0, %v2175_v3 }
 0x3c6   : > { %v2057_v5 = vpop.f32.mrb[0].mxu1 }
 0x3c7   : > { %v2059_v6 = vpop.f32.mrb[1].mxu1 }
 0x3c8   : > { %v2060_v7 = vpop.f32.mrb[2].mxu1 }
 0x3c9   : > { %v2176_v8 = vpack.c.bf16 %v2060_v7, %v2057_v5  ;;  %v2062_v9 = vpop.f32.mrb[3].mxu1 }
 0x3cb   : > { %7822 = vmatprep.mubr.msk.bf16.mxu0 %vm485_vm0, %v2176_v8 }
 0x3ce   : > { %v2065_v10 = vpop.f32.mrb[4].mxu1 }
 0x3cf   : > { %v2067_v11 = vpop.f32.mrb[5].mxu1 }
 0x3d0   : > { %v2068_v12 = vpop.f32.mrb[6].mxu1 }
 0x3d1   : > { %v2177_v13 = vpack.c.bf16 %v2068_v12, %v2065_v10  ;;  %v2070_v14 = vpop.f32.mrb[7].mxu1 }
 0x3d3   : > { %7823 = vmatmul.mubr.msk.bf16.vlgmr.msra.gmra.mrb[0].mxu0 %vm485_vm0, %v2177_v13 }
 0x3d4   : > { %7831 = vmatpush3.bf16.msra.mxu0 %v8347_v63 }
 0x3d5   : > { %7832 = vmatprep.subr.bf16.mxu0 %v8348_v15 }
 0x3d6   : > { %v2073_v17 = vpop.f32.mrb[8].mxu1 }
 0x3d7   : > { %v2075_v19 = vpop.f32.mrb[9].mxu1 }
 0x3d8   : > { %v2076_v21 = vpop.f32.mrb[10].mxu1  ;;  %7833 = vmatpush3.bf16.msra.mxu0 %v8348_v15 }
 0x3d9   : > { %v2178_v23 = vpack.c.bf16 %v2076_v21, %v2073_v17  ;;  %v2078_v24 = vpop.f32.mrb[11].mxu1  ;;  %7834 = vmatprep.subr.bf16.mxu0 %v8349_v16 }
 0x3db   : > { %7826 = vmatprep.mubr.msk.bf16.mxu0 %vm485_vm0, %v2178_v23 }
 0x3dc   : > { %7835 = vmatpush3.bf16.msra.mxu0 %v8349_v16 }
 0x3dd   : > { %7836 = vmatprep.subr.bf16.mxu0 %v8350_v25 }
 0x3de   : > { %v2081_v26 = vpop.f32.mrb[12].mxu1 }
 0x3df   : > { %v2083_v27 = vpop.f32.mrb[13].mxu1 }
 0x3e0   : > { %v2084_v18 = vpop.f32.mrb[14].mxu1  ;;  %7837 = vmatpush3.bf16.msra.mxu0 %v8350_v25 }
 0x3e1   : > { %v2179_v28 = vpack.c.bf16 %v2084_v18, %v2081_v26  ;;  %v2086_v29 = vpop.f32.mrb[15].mxu1  ;;  %4794 = vmatprep.subr.bf16.mxu0 %v8361_v51  ;;  %v8416_v51 = vld [vmem:[%s10606_s4 + $0x58] sm:$0xff]  }
 0x3e3   : > { %7827 = vmatmul.mubr.msk.bf16.gmra.mrb[4].mxu0 %vm485_vm0, %v2179_v28 }
 0x3e6   : > { %v2089_v30 = vpop.f32.mrb[16].mxu1 }
 0x3e7   : > { %v2091_v31 = vpop.f32.mrb[17].mxu1 }
 0x3e8   : > { %v2092_v32 = vpop.f32.mrb[18].mxu1 }
 0x3e9   : > { %v2180_v33 = vpack.c.bf16 %v2092_v32, %v2089_v30  ;;  %v2094_v34 = vpop.f32.mrb[19].mxu1 }
 0x3eb   : > { %7838 = vmatprep.mubr.msk.bf16.mxu0 %vm485_vm0, %v2180_v33 }
 0x3ee   : > { %v2097_v35 = vpop.f32.mrb[20].mxu1 }
 0x3ef   : > { %v2099_v36 = vpop.f32.mrb[21].mxu1 }
 0x3f0   : > { %v2100_v37 = vpop.f32.mrb[22].mxu1 }
 0x3f1   : > { %v2181_v38 = vpack.c.bf16 %v2100_v37, %v2097_v35  ;;  %v2102_v40 = vpop.f32.mrb[23].mxu1  ;;  %v8352_v37 = vld [vmem:[%s10606_s4 + $0x8] sm:$0xff]  }
 0x3f2   : > { %v8354_v40 = vld [vmem:[%s10606_s4 + $0x18] sm:$0xff]  }
 0x3f3   : > { %7839 = vmatmul.mubr.msk.bf16.vlgmr.msra.gmra.mrb[0].mxu0 %vm485_vm0, %v2181_v38  ;;  %v8353_v38 = vld [vmem:[%s10606_s4 + $0x10] sm:$0xff]  }
 0x3f4   : > { %4795 = vmatpush1.bf16.msra.mxu0 %v8359_v50  ;;  %v8669_v50 = vld [vmem:[%s10607_s5 + $0xa4] ss:$8 sps:$4 sm:$0xff]  }
 0x3f5   : > { %4796 = vmatprep.subr.bf16.mxu0 %v8364_v52  ;;  %v8667_v52 = vld [vmem:[%s10607_s5 + $0xa0] ss:$8 sps:$4 sm:$0xff]  }
 0x3f6   : > { %v2105_v41 = vpop.f32.mrb[24].mxu1 }
 0x3f7   : > { %v2107_v22 = vpop.f32.mrb[25].mxu1 }
 0x3f8   : > { %v2108_v44 = vpop.f32.mrb[26].mxu1  ;;  %4797 = vmatpush1.bf16.msra.mxu0 %v8362_v53  ;;  %v8356_v22 = vld [vmem:[%s10606_s4 + $0x28] sm:$0xff]   ;;  %v8675_v53 = vld [vmem:[%s10607_s5 + $0xb4] ss:$8 sps:$4 sm:$0xff]  }
 0x3f9   : > { %v2182_v39 = vpack.c.bf16 %v2108_v44, %v2105_v41  ;;  %v2110_v42 = vpop.f32.mrb[27].mxu1  ;;  %4798 = vmatprep.subr.bf16.mxu0 %v8369_v55  ;;  %v8355_v41 = vld [vmem:[%s10606_s4 + $0x20] sm:$0xff]   ;;  %v8357_v44 = vld [vmem:[%s10606_s4 + $0x30] sm:$0xff]  }
 0x3fa   : > { %v8365_v42 = vld [vmem:[%s10606_s4 + $0x40] sm:$0xff]  }
 0x3fb   : > { %7842 = vmatprep.mubr.msk.bf16.mxu0 %vm485_vm0, %v2182_v39  ;;  %v8358_v39 = vld [vmem:[%s10606_s4 + $0x38] sm:$0xff]   ;;  %v8465_v55 = vld [vmem:[%s10606_s4 + $0x60] sm:$0xff]  }
 0x3fc   : > { %4799 = vmatpush1.bf16.msra.mxu0 %v8367_v54  ;;  %v8673_v54 = vld [vmem:[%s10607_s5 + $0xb0] ss:$8 sps:$4 sm:$0xff]  }
 0x3fd   : > { %4800 = vmatprep.subr.bf16.mxu0 %v8372_v56  ;;  %v8681_v56 = vld [vmem:[%s10607_s5 + $0xc4] ss:$8 sps:$4 sm:$0xff]  }
 0x3fe   : > { %v2113_v43 = vpop.f32.mrb[28].mxu1 }
 0x3ff   : > { %v2115_v46 = vpop.f32.mrb[29].mxu1 }
 0x400   : > { %v2116_v45 = vpop.f32.mrb[30].mxu1  ;;  %4801 = vmatpush1.bf16.msra.mxu0 %v8370_v57  ;;  %v8657_v46 = vld [vmem:[%s10607_s5 + $0x84] ss:$8 sps:$4 sm:$0xff]  }
 0x401   : > { %v2183_v47 = vpack.c.bf16 %v2116_v45, %v2113_v43  ;;  %v2118_v48 = vpop.f32.mrb[31].mxu1  ;;  %4802 = vmatprep.subr.bf16.mxu0 %v8375_v58  ;;  %v8366_v43 = vld [vmem:[%s10606_s4 + $0x48] sm:$0xff]  }
 0x402   : > { %v8655_v45 = vld [vmem:[%s10607_s5 + $0x80] ss:$8 sps:$4 sm:$0xff]   ;;  %v8661_v48 = vld [vmem:[%s10607_s5 + $0x90] ss:$8 sps:$4 sm:$0xff]  }
 0x403   : > { %7843 = vmatmul.mubr.msk.bf16.gmra.mrb[4].mxu0 %vm485_vm0, %v2183_v47  ;;  %v8663_v47 = vld [vmem:[%s10607_s5 + $0x94] ss:$8 sps:$4 sm:$0xff]   ;;  %v8466_v57 = vld [vmem:[%s10606_s4 + $0x68] sm:$0xff]  }
 0x404   : > { %4826 = vmatprep.mubr.bf16.mxu0 %v8759_v20  ;;  %4803 = vmatpush1.bf16.msra.mxu0 %v8373_v59  ;;  %v8679_v58 = vld [vmem:[%s10607_s5 + $0xc0] ss:$8 sps:$4 sm:$0xff]   ;;  %v8687_v59 = vld [vmem:[%s10607_s5 + $0xd4] ss:$8 sps:$4 sm:$0xff]  }
 0x405   : > { %4804 = vmatprep.subr.bf16.mxu0 %v8378_v60  ;;  %v8685_v60 = vld [vmem:[%s10607_s5 + $0xd0] ss:$8 sps:$4 sm:$0xff]  }
 0x408   : > { %4805 = vmatpush1.bf16.msra.mxu0 %v8376_v61  ;;  %v8515_v61 = vld [vmem:[%s10606_s4 + $0x70] sm:$0xff]  }
 0x4c6   : > { %v7840_v63 = vpop.f32.mrb[0].mxu0 }
 0x4c7   : > { %v4049_v0 = vadd.f32 %v7840_v63, %v7089_v62  ;;  %v4001_v1 = vpop.f32.mrb[1].mxu0  ;;  %v8516_v63 = vld [vmem:[%s10606_s4 + $0x78] sm:$0xff]  }
 0x4c8   : > { %v4047_v2 = vadd.f32 %v7089_v62, %v4001_v1  ;;  %v7841_v3 = vpop.f32.mrb[2].mxu0  ;;  %v8699_v1 = vld [vmem:[%s10607_s5 + $0xf4] ss:$8 sps:$4 sm:$0xff]  }
 0x4c9   : > { %v4065_v4 = vmul.f32 0.2, %v4049_v0  ;;  %v4050_v5 = vadd.f32 %v7841_v3, %v7089_v62  ;;  %v4004_v6 = vpop.f32.mrb[3].mxu0  ;;  %vm4057_vm3 = vcmp.gt.f32.partialorder %v4049_v0, 0.0  ;;  %v8379_v3 = vld [vmem:[%s10607_s5 + $0x160] ss:$8 sps:$4 sm:$0xff]  }
 0x4ca   : > { %v4063_v7 = vmul.f32 0.2, %v4047_v2  ;;  %v4048_v8 = vadd.f32 %v7089_v62, %v4004_v6  ;;  %vm4055_vm4 = vcmp.gt.f32.partialorder %v4047_v2, 0.0  ;;  %v8384_v6 = vld [vmem:[%s10607_s5 + $0x174] ss:$8 sps:$4 sm:$0xff]  }
 0x4cb   : > { %vm4058_vm5 = vcmp.gt.f32.partialorder %v4050_v5, 0.0  ;;  %v4066_v9 = vmul.f32 0.2, %v4050_v5  ;;  %v4073_v11 = vsel %vm4057_vm3, %v4049_v0, %v4065_v4  ;;  %v8691_v0 = vld [vmem:[%s10607_s5 + $0xe0] ss:$8 sps:$4 sm:$0xff]  }
 0x4cc   : > { %vm4056_vm6 = vcmp.gt.f32.partialorder %v4048_v8, 0.0  ;;  %v4064_v10 = vmul.f32 0.2, %v4048_v8  ;;  %v4071_v13 = vsel %vm4055_vm4, %v4047_v2, %v4063_v7  ;;  %v8697_v2 = vld [vmem:[%s10607_s5 + $0xf0] ss:$8 sps:$4 sm:$0xff]  }
 0x4cd   : > { %v4074_v12 = vsel %vm4058_vm5, %v4050_v5, %v4066_v9  ;;  %v8381_v4 = vld [vmem:[%s10607_s5 + $0x164] ss:$8 sps:$4 sm:$0xff]   ;;  %v8382_v7 = vld [vmem:[%s10607_s5 + $0x170] ss:$8 sps:$4 sm:$0xff]  }
 0x4ce   : > { %v4072_v14 = vsel %vm4056_vm6, %v4048_v8, %v4064_v10  ;;  %v4080_v15 = vpack.c.bf16 %v4074_v12, %v4073_v11  ;;  %4806 = vmatprep.subr.bf16.mxu0 %v8381_v4  ;;  %v8705_v5 = vld [vmem:[%s10607_s5 + $0x4] ss:$8 sps:$4 sm:$0xff]   ;;  %v8703_v12 = vld [vmem:[%s10607_s5] ss:$8 sps:$4 sm:$0xff]  }
 0x4cf   : > { %v4079_v16 = vpack.c.bf16 %v4072_v14, %v4071_v13  ;;  %4807 = vmatpush1.bf16.msra.mxu0 %v8379_v3  ;;  %v8387_v8 = vld [vmem:[%s10607_s5 + $0x184] ss:$8 sps:$4 sm:$0xff]   ;;  %v8412_v3 = vld [vmem:[%s10607_s5 + $0x210] ss:$8 sps:$4 sm:$0xff]  }
 0x4d0   : > { %4808 = vmatprep.subr.bf16.mxu0 %v8384_v6  ;;  %v8419_v4 = vld [vmem:[%s10607_s5 + $0x224] ss:$8 sps:$4 sm:$0xff]   ;;  %v8422_v6 = vld [vmem:[%s10607_s5 + $0x234] ss:$8 sps:$4 sm:$0xff]  }
 0x4d1   : > { %7846 = vmatprep.subr.bf16.mxu1 %v4079_v16 }
 0x4d2   : > { %7847 = vmatpush3.bf16.msra.mxu1 %v4079_v16 }
 0x4d3   : > { %7848 = vmatprep.subr.bf16.mxu1 %v4080_v15  ;;  %4809 = vmatpush1.bf16.msra.mxu0 %v8382_v7  ;;  %v8420_v7 = vld [vmem:[%s10607_s5 + $0x230] ss:$8 sps:$4 sm:$0xff]  }
 0x4d4   : > { %4937 = vmatprep.subr.bf16.mxu0 %v8387_v8  ;;  %v8425_v8 = vld [vmem:[%s10607_s5 + $0x244] ss:$8 sps:$4 sm:$0xff]  }
 0x4d6   : > { %v7844_v17 = vpop.f32.mrb[4].mxu0  ;;  %7849 = vmatpush3.bf16.msra.mxu1 %v4080_v15  ;;  %v8711_v15 = vld [vmem:[%s10607_s5 + $0x14] ss:$8 sps:$4 sm:$0xff]  }
 0x4d7   : > { %v4053_v19 = vadd.f32 %v7844_v17, %v7089_v62  ;;  %v4017_v21 = vpop.f32.mrb[5].mxu0  ;;  %v8709_v17 = vld [vmem:[%s10607_s5 + $0x10] ss:$8 sps:$4 sm:$0xff]  }
 0x4d8   : > { %v4051_v23 = vadd.f32 %v7089_v62, %v4017_v21  ;;  %v7845_v24 = vpop.f32.mrb[6].mxu0 }
 0x4d9   : > { %v4069_v25 = vmul.f32 0.2, %v4053_v19  ;;  %v4054_v26 = vadd.f32 %v7845_v24, %v7089_v62  ;;  %v4020_v27 = vpop.f32.mrb[7].mxu0  ;;  %vm4061_vm7 = vcmp.gt.f32.partialorder %v4053_v19, 0.0 }
 0x4da   : > { %v4067_v18 = vmul.f32 0.2, %v4051_v23  ;;  %v4052_v28 = vadd.f32 %v7089_v62, %v4020_v27  ;;  %vm4059_vm8 = vcmp.gt.f32.partialorder %v4051_v23, 0.0  ;;  %v8693_v62 = vld [vmem:[%s10607_s5 + $0xe4] ss:$8 sps:$4 sm:$0xff]  }
 0x4db   : > { %vm4062_vm9 = vcmp.gt.f32.partialorder %v4054_v26, 0.0  ;;  %v4070_v29 = vmul.f32 0.2, %v4054_v26  ;;  %v4077_v31 = vsel %vm4061_vm7, %v4053_v19, %v4069_v25  ;;  %v8717_v19 = vld [vmem:[%s10607_s5 + $0x24] ss:$8 sps:$4 sm:$0xff]  }
 0x4dc   : > { %vm4060_vm10 = vcmp.gt.f32.partialorder %v4052_v28, 0.0  ;;  %v4068_v30 = vmul.f32 0.2, %v4052_v28  ;;  %v4075_v33 = vsel %vm4059_vm8, %v4051_v23, %v4067_v18  ;;  %v8715_v25 = vld [vmem:[%s10607_s5 + $0x20] ss:$8 sps:$4 sm:$0xff]  }
 0x4dd   : > { %v4078_v32 = vsel %vm4062_vm9, %v4054_v26, %v4070_v29  ;;  %v8385_v18 = vld [vmem:[%s10607_s5 + $0x180] ss:$8 sps:$4 sm:$0xff]   ;;  %v8390_v29 = vld [vmem:[%s10607_s5 + $0x194] ss:$8 sps:$4 sm:$0xff]  }
 0x4de   : > { %v4076_v34 = vsel %vm4060_vm10, %v4052_v28, %v4068_v30  ;;  %v4082_v35 = vpack.c.bf16 %v4078_v32, %v4077_v31  ;;  %v8723_v30 = vld [vmem:[%s10607_s5 + $0x34] ss:$8 sps:$4 sm:$0xff]   ;;  %v8721_v31 = vld [vmem:[%s10607_s5 + $0x30] ss:$8 sps:$4 sm:$0xff]  }
 0x4df   : > { %v4081_v36 = vpack.c.bf16 %v4076_v34, %v4075_v33  ;;  %v8388_v32 = vld [vmem:[%s10607_s5 + $0x190] ss:$8 sps:$4 sm:$0xff]   ;;  %v8729_v33 = vld [vmem:[%s10607_s5 + $0x44] ss:$8 sps:$4 sm:$0xff]  }
 0x4e0   : > { %v8393_v34 = vld [vmem:[%s10607_s5 + $0x1a4] ss:$8 sps:$4 sm:$0xff]  }
 0x4e1   : > { %7850 = vmatprep.subr.bf16.mxu1 %v4081_v36 }
 0x4e2   : > { %7851 = vmatpush3.bf16.msra.mxu1 %v4081_v36 }
 0x4e3   : > { %7852 = vmatprep.subr.bf16.mxu1 %v4082_v35 }
 0x4e6   : > { %7853 = vmatpush3.bf16.msra.mxu1 %v4082_v35 }
 0x4e7   : > { %4532 = vmatprep.subr.bf16.mxu1 %v8657_v46  ;;  %v8394_v46 = vld [vmem:[%s10607_s5 + $0x1b0] ss:$8 sps:$4 sm:$0xff]  }
 0x4e9   : > { %7855 = vmatmul.mubr.msk.bf16.vlgmr.msra.gmra.mrb[32].mxu1 %vm485_vm0, %v8352_v37 }
 0x4ea   : > { %7858 = vmatprep.mubr.msk.bf16.mxu1 %vm485_vm0, %v8353_v38  ;;  %4533 = vmatpush1.bf16.msra.mxu1 %v8655_v45  ;;  %v8727_v38 = vld [vmem:[%s10607_s5 + $0x40] ss:$8 sps:$4 sm:$0xff]   ;;  %v8741_v45 = vld [vmem:[%s10607_s5 + $0x64] ss:$8 sps:$4 sm:$0xff]  }
 0x4eb   : > { %4534 = vmatprep.subr.bf16.mxu1 %v8663_v47  ;;  %v8399_v47 = vld [vmem:[%s10607_s5 + $0x1c4] ss:$8 sps:$4 sm:$0xff]  }
 0x4ee   : > { %4535 = vmatpush1.bf16.msra.mxu1 %v8661_v48 }
 0x4ef   : > { %4536 = vmatprep.subr.bf16.mxu1 %v8669_v50 }
 0x4f1   : > { %7859 = vmatmul.mubr.msk.bf16.gmra.mrb[36].mxu1 %vm485_vm0, %v8354_v40  ;;  %v8391_v40 = vld [vmem:[%s10607_s5 + $0x1a0] ss:$8 sps:$4 sm:$0xff]  }
 0x4f2   : > { %7862 = vmatprep.mubr.msk.bf16.mxu1 %vm485_vm0, %v8355_v41  ;;  %4537 = vmatpush1.bf16.msra.mxu1 %v8667_v52  ;;  %v8397_v52 = vld [vmem:[%s10607_s5 + $0x1c0] ss:$8 sps:$4 sm:$0xff]  }
 0x4f3   : > { %4538 = vmatprep.subr.bf16.mxu1 %v8675_v53 }
 0x4f6   : > { %4539 = vmatpush1.bf16.msra.mxu1 %v8673_v54 }
 0x4f7   : > { %4540 = vmatprep.subr.bf16.mxu1 %v8681_v56  ;;  %v8402_v56 = vld [vmem:[%s10607_s5 + $0x1d4] ss:$8 sps:$4 sm:$0xff]  }
 0x4f9   : > { %7863 = vmatmul.mubr.msk.bf16.gmra.mrb[40].mxu1 %vm485_vm0, %v8356_v22 }
 0x4fa   : > { %7866 = vmatprep.mubr.msk.bf16.mxu1 %vm485_vm0, %v8357_v44  ;;  %4541 = vmatpush1.bf16.msra.mxu1 %v8679_v58  ;;  %v8735_v44 = vld [vmem:[%s10607_s5 + $0x54] ss:$8 sps:$4 sm:$0xff]   ;;  %v8745_v58 = vld [vmem:[%s10607_s5 + $0x70] ss:$8 sps:$4 sm:$0xff]  }
 0x4fb   : > { %4542 = vmatprep.subr.bf16.mxu1 %v8687_v59  ;;  %v8400_v59 = vld [vmem:[%s10607_s5 + $0x1d0] ss:$8 sps:$4 sm:$0xff]  }
 0x4fe   : > { %4543 = vmatpush1.bf16.msra.mxu1 %v8685_v60  ;;  %v8405_v60 = vld [vmem:[%s10607_s5 + $0x1e4] ss:$8 sps:$4 sm:$0xff]  }
 0x4ff   : > { %4544 = vmatprep.subr.bf16.mxu1 %v8693_v62  ;;  %v8408_v62 = vld [vmem:[%s10607_s5 + $0x1f4] ss:$8 sps:$4 sm:$0xff]  }
 0x501   : > { %7867 = vmatmul.mubr.msk.bf16.gmra.mrb[44].mxu1 %vm485_vm0, %v8358_v39  ;;  %v8396_v39 = vld [vmem:[%s10607_s5 + $0x1b4] ss:$8 sps:$4 sm:$0xff]  }
 0x502   : > { %7870 = vmatprep.mubr.msk.bf16.mxu1 %vm485_vm0, %v8365_v42  ;;  %4545 = vmatpush1.bf16.msra.mxu1 %v8691_v0  ;;  %v8411_v0 = vld [vmem:[%s10607_s5 + $0x204] ss:$8 sps:$4 sm:$0xff]  }
 0x503   : > { %4546 = vmatprep.subr.bf16.mxu1 %v8699_v1  ;;  %v8409_v1 = vld [vmem:[%s10607_s5 + $0x200] ss:$8 sps:$4 sm:$0xff]  }
 0x506   : > { %4547 = vmatpush1.bf16.msra.mxu1 %v8697_v2  ;;  %v8414_v2 = vld [vmem:[%s10607_s5 + $0x214] ss:$8 sps:$4 sm:$0xff]  }
 0x507   : > { %4655 = vmatprep.subr.bf16.mxu1 %v8705_v5  ;;  %v8417_v5 = vld [vmem:[%s10607_s5 + $0x220] ss:$8 sps:$4 sm:$0xff]  }
 0x509   : > { %7871 = vmatmul.mubr.msk.bf16.gmra.mrb[48].mxu1 %vm485_vm0, %v8366_v43  ;;  %v8733_v43 = vld [vmem:[%s10607_s5 + $0x50] ss:$8 sps:$4 sm:$0xff]  }
 0x50a   : > { %7874 = vmatprep.mubr.msk.bf16.mxu1 %vm485_vm0, %v8415_v49 }
 0x511   : > { %7875 = vmatmul.mubr.msk.bf16.gmra.mrb[52].mxu1 %vm485_vm0, %v8416_v51  ;;  %v8739_v51 = vld [vmem:[%s10607_s5 + $0x60] ss:$8 sps:$4 sm:$0xff]  }
 0x512   : > { %7878 = vmatprep.mubr.msk.bf16.mxu1 %vm485_vm0, %v8465_v55  ;;  %v8747_v55 = vld [vmem:[%s10607_s5 + $0x74] ss:$8 sps:$4 sm:$0xff]  }
 0x519   : > { %7879 = vmatmul.mubr.msk.bf16.gmra.mrb[56].mxu1 %vm485_vm0, %v8466_v57 }
 0x51a   : > { %7882 = vmatprep.mubr.msk.bf16.mxu1 %vm485_vm0, %v8515_v61  ;;  %v8403_v61 = vld [vmem:[%s10607_s5 + $0x1e0] ss:$8 sps:$4 sm:$0xff]  }
 0x521   : > { %7883 = vmatmul.mubr.msk.bf16.gmra.mrb[60].mxu1 %vm485_vm0, %v8516_v63  ;;  %v8406_v63 = vld [vmem:[%s10607_s5 + $0x1f0] ss:$8 sps:$4 sm:$0xff]  }
 0x522   : > { %4564 = vmatprep.mubr.bf16.mxu1 %v8759_v20 }
 0x5bc   : > { %v7856_v9 = vpop.f32.mrb[32].mxu1 }
 0x5bd   : > { %v9774_v10 = vpop.f32.mrb[33].mxu1 }
 0x5be   : > { %v7857_v11 = vpop.f32.mrb[34].mxu1 }
 0x5bf   : > { %v4405_v13 = vpack.c.bf16 %v7857_v11, %v7856_v9  ;;  %v9779_v14 = vpop.f32.mrb[35].mxu1  ;;  %v8423_v9 = vld [vmem:[%s10607_s5 + $0x240] ss:$8 sps:$4 sm:$0xff]   ;;  %v8426_v11 = vld [vmem:[%s10607_s5 + $0x250] ss:$8 sps:$4 sm:$0xff]  }
 0x5c0   : > { %v4404_v16 = vpack.c.bf16 %v9779_v14, %v9774_v10  ;;  %v8428_v10 = vld [vmem:[%s10607_s5 + $0x254] ss:$8 sps:$4 sm:$0xff]  }
 0x5c1   : > { %4565 = vmatmul.mubr.bf16.vlgmr.msra.gmra.mrb[64].mxu1 %v4405_v13  ;;  %v8429_v13 = vld [vmem:[%s10607_s5 + $0x260] ss:$8 sps:$4 sm:$0xff]   ;;  %v8434_v14 = vld [vmem:[%s10607_s5 + $0x274] ss:$8 sps:$4 sm:$0xff]  }
 0x5c2   : > { %4656 = vmatpush1.bf16.msra.mxu1 %v8703_v12  ;;  %4687 = vmatprep.mubr.bf16.mxu1 %v8759_v20  ;;  %v8431_v12 = vld [vmem:[%s10607_s5 + $0x264] ss:$8 sps:$4 sm:$0xff]  }
 0x5c3   : > { %4657 = vmatprep.subr.bf16.mxu1 %v8711_v15 }
 0x5c4   : > { %v9793_v21 = vpop.f32.mrb[36].mxu1 }
 0x5c5   : > { %v4293_v23 = vpop.f32.mrb[37].mxu1 }
 0x5c6   : > { %v9795_v24 = vpop.f32.mrb[38].mxu1  ;;  %4658 = vmatpush1.bf16.msra.mxu1 %v8709_v17 }
 0x5c7   : > { %v4407_v26 = vpack.c.bf16 %v9795_v24, %v9793_v21  ;;  %v4296_v27 = vpop.f32.mrb[39].mxu1  ;;  %4659 = vmatprep.subr.bf16.mxu1 %v8717_v19  ;;  %v8437_v19 = vld [vmem:[%s10607_s5 + $0x284] ss:$8 sps:$4 sm:$0xff]  }
 0x5c8   : > { %v4406_v28 = vpack.c.bf16 %v4296_v27, %v4293_v23  ;;  %v8440_v27 = vld [vmem:[%s10607_s5 + $0x294] ss:$8 sps:$4 sm:$0xff]  }
 0x5ca   : > { %4827 = vmatmul.mubr.bf16.vlgmr.msra.gmra.mrb[8].mxu0 %v4406_v28  ;;  %4660 = vmatpush1.bf16.msra.mxu1 %v8715_v25  ;;  %v8443_v28 = vld [vmem:[%s10607_s5 + $0x2a4] ss:$8 sps:$4 sm:$0xff]  }
 0x5cb   : > { %4938 = vmatpush1.bf16.msra.mxu0 %v8385_v18  ;;  %4969 = vmatprep.mubr.bf16.mxu0 %v8759_v20  ;;  %v8438_v18 = vld [vmem:[%s10607_s5 + $0x290] ss:$8 sps:$4 sm:$0xff]  }
 0x5cc   : > { %4939 = vmatprep.subr.bf16.mxu0 %v8390_v29  ;;  %v9824_v35 = vpop.f32.mrb[40].mxu1  ;;  %4661 = vmatprep.subr.bf16.mxu1 %v8723_v30  ;;  %v8441_v29 = vld [vmem:[%s10607_s5 + $0x2a0] ss:$8 sps:$4 sm:$0xff]   ;;  %v8446_v30 = vld [vmem:[%s10607_s5 + $0x2b4] ss:$8 sps:$4 sm:$0xff]  }
 0x5cd   : > { %v9826_v36 = vpop.f32.mrb[41].mxu1 }
 0x5ce   : > { %v9828_v37 = vpop.f32.mrb[42].mxu1  ;;  %4662 = vmatpush1.bf16.msra.mxu1 %v8721_v31  ;;  %v8444_v31 = vld [vmem:[%s10607_s5 + $0x2b0] ss:$8 sps:$4 sm:$0xff]  }
 0x5cf   : > { %4940 = vmatpush1.bf16.msra.mxu0 %v8388_v32  ;;  %v4409_v41 = vpack.c.bf16 %v9828_v37, %v9824_v35  ;;  %v9838_v22 = vpop.f32.mrb[43].mxu1  ;;  %4663 = vmatprep.subr.bf16.mxu1 %v8729_v33  ;;  %v8449_v32 = vld [vmem:[%s10607_s5 + $0x2c4] ss:$8 sps:$4 sm:$0xff]   ;;  %v8447_v33 = vld [vmem:[%s10607_s5 + $0x2c0] ss:$8 sps:$4 sm:$0xff]  }
 0x5d0   : > { %4941 = vmatprep.subr.bf16.mxu0 %v8393_v34  ;;  %v4408_v42 = vpack.c.bf16 %v9838_v22, %v9826_v36  ;;  %v8452_v34 = vld [vmem:[%s10607_s5 + $0x2d4] ss:$8 sps:$4 sm:$0xff]   ;;  %v8450_v36 = vld [vmem:[%s10607_s5 + $0x2d0] ss:$8 sps:$4 sm:$0xff]  }
 0x5d1   : > { %v8458_v22 = vld [vmem:[%s10607_s5 + $0x2f4] ss:$8 sps:$4 sm:$0xff]  }
 0x5d2   : > { %4664 = vmatpush1.bf16.msra.mxu1 %v8727_v38  ;;  %v8455_v38 = vld [vmem:[%s10607_s5 + $0x2e4] ss:$8 sps:$4 sm:$0xff]  }
 0x5d3   : > { %4942 = vmatpush1.bf16.msra.mxu0 %v8391_v40  ;;  %4665 = vmatprep.subr.bf16.mxu1 %v8735_v44  ;;  %v8453_v40 = vld [vmem:[%s10607_s5 + $0x2e0] ss:$8 sps:$4 sm:$0xff]   ;;  %v8456_v44 = vld [vmem:[%s10607_s5 + $0x2f0] ss:$8 sps:$4 sm:$0xff]  }
 0x5d4   : > { %4943 = vmatprep.subr.bf16.mxu0 %v8396_v39  ;;  %v9860_v48 = vpop.f32.mrb[44].mxu1  ;;  %v8461_v39 = vld [vmem:[%s10607_s5 + $0x304] ss:$8 sps:$4 sm:$0xff]  }
 0x5d5   : > { %v9862_v49 = vpop.f32.mrb[45].mxu1 }
 0x5d6   : > { %v9864_v50 = vpop.f32.mrb[46].mxu1  ;;  %4666 = vmatpush1.bf16.msra.mxu1 %v8733_v43  ;;  %v8464_v43 = vld [vmem:[%s10607_s5 + $0x314] ss:$8 sps:$4 sm:$0xff]  }
 0x5d7   : > { %4944 = vmatpush1.bf16.msra.mxu0 %v8394_v46  ;;  %v4411_v53 = vpack.c.bf16 %v9864_v50, %v9860_v48  ;;  %v9874_v54 = vpop.f32.mrb[47].mxu1  ;;  %4667 = vmatprep.subr.bf16.mxu1 %v8741_v45  ;;  %v8522_v48 = vld [vmem:[%s10607_s5 + $0x434] ss:$8 sps:$4 sm:$0xff]   ;;  %v8520_v50 = vld [vmem:[%s10607_s5 + $0x430] ss:$8 sps:$4 sm:$0xff]  }
 0x5d8   : > { %4945 = vmatprep.subr.bf16.mxu0 %v8399_v47  ;;  %v4410_v57 = vpack.c.bf16 %v9874_v54, %v9862_v49  ;;  %v8496_v49 = vld [vmem:[%s10607_s5 + $0x3b4] ss:$8 sps:$4 sm:$0xff]   ;;  %v8494_v54 = vld [vmem:[%s10607_s5 + $0x3b0] ss:$8 sps:$4 sm:$0xff]  }
 0x5da   : > { %4668 = vmatpush1.bf16.msra.mxu1 %v8739_v51  ;;  %v8462_v51 = vld [vmem:[%s10607_s5 + $0x310] ss:$8 sps:$4 sm:$0xff]  }
 0x5db   : > { %4946 = vmatpush1.bf16.msra.mxu0 %v8397_v52  ;;  %4669 = vmatprep.subr.bf16.mxu1 %v8747_v55  ;;  %v8469_v55 = vld [vmem:[%s10607_s5 + $0x324] ss:$8 sps:$4 sm:$0xff]  }
 0x5dc   : > { %4947 = vmatprep.subr.bf16.mxu0 %v8402_v56  ;;  %v9954_v15 = vpop.f32.mrb[48].mxu1 }
 0x5dd   : > { %v9959_v17 = vpop.f32.mrb[49].mxu1 }
 0x5de   : > { %4670 = vmatpush1.bf16.msra.mxu1 %v8745_v58  ;;  %v9964_v21 = vpop.f32.mrb[50].mxu1 }
 0x5df   : > { %4948 = vmatpush1.bf16.msra.mxu0 %v8400_v59  ;;  %v4413_v23 = vpack.c.bf16 %v9964_v21, %v9954_v15  ;;  %v9968_v24 = vpop.f32.mrb[51].mxu1  ;;  %v8472_v59 = vld [vmem:[%s10607_s5 + $0x334] ss:$8 sps:$4 sm:$0xff]   ;;  %v8568_v21 = vld [vmem:[%s10607_s5 + $0x530] ss:$8 sps:$4 sm:$0xff]  }
 0x5e0   : > { %4949 = vmatprep.subr.bf16.mxu0 %v8405_v60  ;;  %v4412_v25 = vpack.c.bf16 %v9968_v24, %v9959_v17  ;;  %v8546_v17 = vld [vmem:[%s10607_s5 + $0x4b4] ss:$8 sps:$4 sm:$0xff]   ;;  %v8544_v24 = vld [vmem:[%s10607_s5 + $0x4b0] ss:$8 sps:$4 sm:$0xff]  }
 0x5e1   : > { %4688 = vmatmul.mubr.bf16.vlgmr.msra.gmra.mrb[64].mxu1 %v4404_v16  ;;  %v8432_v16 = vld [vmem:[%s10607_s5 + $0x270] ss:$8 sps:$4 sm:$0xff]   ;;  %v8570_v15 = vld [vmem:[%s10607_s5 + $0x534] ss:$8 sps:$4 sm:$0xff]  }
 0x5e3   : > { %4950 = vmatpush1.bf16.msra.mxu0 %v8403_v61 }
 0x5e4   : > { %4951 = vmatprep.subr.bf16.mxu0 %v8408_v62  ;;  %v10030_v46 = vpop.f32.mrb[52].mxu1 }
 0x5e5   : > { %v10032_v45 = vpop.f32.mrb[53].mxu1 }
 0x5e6   : > { %v10037_v47 = vpop.f32.mrb[54].mxu1 }
 0x5e7   : > { %4952 = vmatpush1.bf16.msra.mxu0 %v8406_v63  ;;  %v10043_v52 = vpop.f32.mrb[55].mxu1  ;;  %v8470_v63 = vld [vmem:[%s10607_s5 + $0x330] ss:$8 sps:$4 sm:$0xff]  }
 0x5e8   : > { %5080 = vmatprep.subr.bf16.mxu0 %v8411_v0 }
 0x5ea   : > { %4970 = vmatmul.mubr.bf16.vlgmr.msra.gmra.mrb[8].mxu0 %v4407_v26  ;;  %v8435_v26 = vld [vmem:[%s10607_s5 + $0x280] ss:$8 sps:$4 sm:$0xff]  }
 0x5eb   : > { %5081 = vmatpush1.bf16.msra.mxu0 %v8409_v1  ;;  %5112 = vmatprep.mubr.bf16.mxu0 %v8759_v20  ;;  %v8475_v1 = vld [vmem:[%s10607_s5 + $0x344] ss:$8 sps:$4 sm:$0xff]  }
 0x5ec   : > { %5082 = vmatprep.subr.bf16.mxu0 %v8414_v2  ;;  %v10048_v56 = vpop.f32.mrb[56].mxu1  ;;  %v8473_v2 = vld [vmem:[%s10607_s5 + $0x340] ss:$8 sps:$4 sm:$0xff]  }
 0x5ed   : > { %v10050_v35 = vpop.f32.mrb[57].mxu1 }
 0x5ee   : > { %v10052_v37 = vpop.f32.mrb[58].mxu1 }
 0x5ef   : > { %5083 = vmatpush1.bf16.msra.mxu0 %v8412_v3  ;;  %v10057_v58 = vpop.f32.mrb[59].mxu1  ;;  %v8478_v3 = vld [vmem:[%s10607_s5 + $0x354] ss:$8 sps:$4 sm:$0xff]  }
 0x5f0   : > { %5084 = vmatprep.subr.bf16.mxu0 %v8419_v4  ;;  %v8476_v4 = vld [vmem:[%s10607_s5 + $0x350] ss:$8 sps:$4 sm:$0xff]  }
 0x5f3   : > { %5085 = vmatpush1.bf16.msra.mxu0 %v8417_v5  ;;  %v8481_v5 = vld [vmem:[%s10607_s5 + $0x364] ss:$8 sps:$4 sm:$0xff]  }
 0x5f4   : > { %5086 = vmatprep.subr.bf16.mxu0 %v8422_v6  ;;  %v10062_v60 = vpop.f32.mrb[60].mxu1  ;;  %v8479_v6 = vld [vmem:[%s10607_s5 + $0x360] ss:$8 sps:$4 sm:$0xff]  }
 0x5f5   : > { %v10064_v61 = vpop.f32.mrb[61].mxu1 }
 0x5f6   : > { %v10066_v62 = vpop.f32.mrb[62].mxu1 }
 0x5f7   : > { %5087 = vmatpush1.bf16.msra.mxu0 %v8420_v7  ;;  %v10071_v0 = vpop.f32.mrb[63].mxu1  ;;  %v8484_v7 = vld [vmem:[%s10607_s5 + $0x374] ss:$8 sps:$4 sm:$0xff]  }
 0x5f8   : > { %5088 = vmatprep.subr.bf16.mxu0 %v8425_v8  ;;  %v8482_v8 = vld [vmem:[%s10607_s5 + $0x370] ss:$8 sps:$4 sm:$0xff]  }
 0x5fb   : > { %5089 = vmatpush1.bf16.msra.mxu0 %v8423_v9  ;;  %v8487_v9 = vld [vmem:[%s10607_s5 + $0x384] ss:$8 sps:$4 sm:$0xff]  }
 0x5fc   : > { %5090 = vmatprep.subr.bf16.mxu0 %v8428_v10  ;;  %v4415_v10 = vpack.c.bf16 %v10037_v47, %v10030_v46  ;;  %v8618_v46 = vld [vmem:[%s10607_s5 + $0x634] ss:$8 sps:$4 sm:$0xff]   ;;  %v8616_v47 = vld [vmem:[%s10607_s5 + $0x630] ss:$8 sps:$4 sm:$0xff]  }
 0x5ff   : > { %5091 = vmatpush1.bf16.msra.mxu0 %v8426_v11  ;;  %v4414_v11 = vpack.c.bf16 %v10043_v52, %v10032_v45  ;;  %v8594_v45 = vld [vmem:[%s10607_s5 + $0x5b4] ss:$8 sps:$4 sm:$0xff]   ;;  %v8592_v52 = vld [vmem:[%s10607_s5 + $0x5b0] ss:$8 sps:$4 sm:$0xff]  }
 0x600   : > { %5092 = vmatprep.subr.bf16.mxu0 %v8431_v12  ;;  %v8485_v12 = vld [vmem:[%s10607_s5 + $0x380] ss:$8 sps:$4 sm:$0xff]  }
 0x603   : > { %5093 = vmatpush1.bf16.msra.mxu0 %v8429_v13  ;;  %v8490_v13 = vld [vmem:[%s10607_s5 + $0x394] ss:$8 sps:$4 sm:$0xff]  }
 0x604   : > { %5094 = vmatprep.subr.bf16.mxu0 %v8434_v14  ;;  %v8488_v14 = vld [vmem:[%s10607_s5 + $0x390] ss:$8 sps:$4 sm:$0xff]  }
 0x607   : > { %5095 = vmatpush1.bf16.msra.mxu0 %v8432_v16  ;;  %v8493_v16 = vld [vmem:[%s10607_s5 + $0x3a4] ss:$8 sps:$4 sm:$0xff]  }
 0x608   : > { %5223 = vmatprep.subr.bf16.mxu0 %v8437_v19  ;;  %v8491_v19 = vld [vmem:[%s10607_s5 + $0x3a0] ss:$8 sps:$4 sm:$0xff]  }
 0x60a   : > { %5113 = vmatmul.mubr.bf16.vlgmr.msra.gmra.mrb[8].mxu0 %v4408_v42  ;;  %v8459_v42 = vld [vmem:[%s10607_s5 + $0x300] ss:$8 sps:$4 sm:$0xff]  }
 0x60b   : > { %5224 = vmatpush1.bf16.msra.mxu0 %v8435_v26  ;;  %5255 = vmatprep.mubr.bf16.mxu0 %v8759_v20  ;;  %v8497_v26 = vld [vmem:[%s10607_s5 + $0x3c0] ss:$8 sps:$4 sm:$0xff]  }
 0x60c   : > { %5225 = vmatprep.subr.bf16.mxu0 %v8440_v27  ;;  %v8502_v27 = vld [vmem:[%s10607_s5 + $0x3d4] ss:$8 sps:$4 sm:$0xff]  }
 0x60f   : > { %5226 = vmatpush1.bf16.msra.mxu0 %v8438_v18  ;;  %v8500_v18 = vld [vmem:[%s10607_s5 + $0x3d0] ss:$8 sps:$4 sm:$0xff]  }
 0x610   : > { %5227 = vmatprep.subr.bf16.mxu0 %v8443_v28  ;;  %v8505_v28 = vld [vmem:[%s10607_s5 + $0x3e4] ss:$8 sps:$4 sm:$0xff]  }
 0x613   : > { %5228 = vmatpush1.bf16.msra.mxu0 %v8441_v29  ;;  %v8503_v29 = vld [vmem:[%s10607_s5 + $0x3e0] ss:$8 sps:$4 sm:$0xff]  }
 0x614   : > { %5229 = vmatprep.subr.bf16.mxu0 %v8446_v30  ;;  %v8508_v30 = vld [vmem:[%s10607_s5 + $0x3f4] ss:$8 sps:$4 sm:$0xff]  }
 0x617   : > { %5230 = vmatpush1.bf16.msra.mxu0 %v8444_v31  ;;  %v8506_v31 = vld [vmem:[%s10607_s5 + $0x3f0] ss:$8 sps:$4 sm:$0xff]  }
 0x618   : > { %5231 = vmatprep.subr.bf16.mxu0 %v8449_v32  ;;  %v8511_v32 = vld [vmem:[%s10607_s5 + $0x404] ss:$8 sps:$4 sm:$0xff]  }
 0x61b   : > { %5232 = vmatpush1.bf16.msra.mxu0 %v8447_v33  ;;  %v8509_v33 = vld [vmem:[%s10607_s5 + $0x400] ss:$8 sps:$4 sm:$0xff]  }
 0x61c   : > { %5233 = vmatprep.subr.bf16.mxu0 %v8452_v34  ;;  %v8514_v34 = vld [vmem:[%s10607_s5 + $0x414] ss:$8 sps:$4 sm:$0xff]  }
 0x61f   : > { %5234 = vmatpush1.bf16.msra.mxu0 %v8450_v36  ;;  %v8512_v36 = vld [vmem:[%s10607_s5 + $0x410] ss:$8 sps:$4 sm:$0xff]  }
 0x620   : > { %5235 = vmatprep.subr.bf16.mxu0 %v8455_v38  ;;  %v8519_v38 = vld [vmem:[%s10607_s5 + $0x424] ss:$8 sps:$4 sm:$0xff]  }
 0x623   : > { %5236 = vmatpush1.bf16.msra.mxu0 %v8453_v40  ;;  %v8517_v40 = vld [vmem:[%s10607_s5 + $0x420] ss:$8 sps:$4 sm:$0xff]  }
 0x624   : > { %5237 = vmatprep.subr.bf16.mxu0 %v8458_v22  ;;  %v8523_v22 = vld [vmem:[%s10607_s5 + $0x440] ss:$8 sps:$4 sm:$0xff]  }
 0x627   : > { %5238 = vmatpush1.bf16.msra.mxu0 %v8456_v44  ;;  %v8528_v44 = vld [vmem:[%s10607_s5 + $0x454] ss:$8 sps:$4 sm:$0xff]  }
 0x628   : > { %5366 = vmatprep.subr.bf16.mxu0 %v8461_v39  ;;  %v8526_v39 = vld [vmem:[%s10607_s5 + $0x450] ss:$8 sps:$4 sm:$0xff]  }
 0x62a   : > { %5256 = vmatmul.mubr.bf16.vlgmr.msra.gmra.mrb[8].mxu0 %v4409_v41  ;;  %v8467_v41 = vld [vmem:[%s10607_s5 + $0x320] ss:$8 sps:$4 sm:$0xff]  }
 0x62b   : > { %5367 = vmatpush1.bf16.msra.mxu0 %v8459_v42  ;;  %5398 = vmatprep.mubr.bf16.mxu0 %v8759_v20  ;;  %v8531_v42 = vld [vmem:[%s10607_s5 + $0x464] ss:$8 sps:$4 sm:$0xff]  }
 0x62c   : > { %5368 = vmatprep.subr.bf16.mxu0 %v8464_v43  ;;  %v8529_v43 = vld [vmem:[%s10607_s5 + $0x460] ss:$8 sps:$4 sm:$0xff]  }
 0x62f   : > { %5369 = vmatpush1.bf16.msra.mxu0 %v8462_v51  ;;  %v8534_v51 = vld [vmem:[%s10607_s5 + $0x474] ss:$8 sps:$4 sm:$0xff]  }
 0x630   : > { %5370 = vmatprep.subr.bf16.mxu0 %v8469_v55  ;;  %v8532_v55 = vld [vmem:[%s10607_s5 + $0x470] ss:$8 sps:$4 sm:$0xff]  }
 0x633   : > { %5371 = vmatpush1.bf16.msra.mxu0 %v8467_v41  ;;  %v8537_v41 = vld [vmem:[%s10607_s5 + $0x484] ss:$8 sps:$4 sm:$0xff]  }
 0x634   : > { %5372 = vmatprep.subr.bf16.mxu0 %v8472_v59  ;;  %v4417_v59 = vpack.c.bf16 %v10052_v37, %v10048_v56  ;;  %v8678_v56 = vld [vmem:[%s10607_s5 + $0x734] ss:$8 sps:$4 sm:$0xff]   ;;  %v8676_v37 = vld [vmem:[%s10607_s5 + $0x730] ss:$8 sps:$4 sm:$0xff]  }
 0x637   : > { %5373 = vmatpush1.bf16.msra.mxu0 %v8470_v63  ;;  %v4416_v63 = vpack.c.bf16 %v10057_v58, %v10050_v35  ;;  %v8642_v35 = vld [vmem:[%s10607_s5 + $0x6b4] ss:$8 sps:$4 sm:$0xff]   ;;  %v8640_v58 = vld [vmem:[%s10607_s5 + $0x6b0] ss:$8 sps:$4 sm:$0xff]  }
 0x638   : > { %5374 = vmatprep.subr.bf16.mxu0 %v8475_v1  ;;  %v8535_v1 = vld [vmem:[%s10607_s5 + $0x480] ss:$8 sps:$4 sm:$0xff]  }
 0x63b   : > { %5375 = vmatpush1.bf16.msra.mxu0 %v8473_v2  ;;  %v8540_v2 = vld [vmem:[%s10607_s5 + $0x494] ss:$8 sps:$4 sm:$0xff]  }
 0x63c   : > { %5376 = vmatprep.subr.bf16.mxu0 %v8478_v3  ;;  %v8538_v3 = vld [vmem:[%s10607_s5 + $0x490] ss:$8 sps:$4 sm:$0xff]  }
 0x63f   : > { %5377 = vmatpush1.bf16.msra.mxu0 %v8476_v4  ;;  %v8543_v4 = vld [vmem:[%s10607_s5 + $0x4a4] ss:$8 sps:$4 sm:$0xff]  }
 0x640   : > { %5378 = vmatprep.subr.bf16.mxu0 %v8481_v5  ;;  %v8541_v5 = vld [vmem:[%s10607_s5 + $0x4a0] ss:$8 sps:$4 sm:$0xff]  }
 0x643   : > { %5379 = vmatpush1.bf16.msra.mxu0 %v8479_v6  ;;  %v8547_v6 = vld [vmem:[%s10607_s5 + $0x4c0] ss:$8 sps:$4 sm:$0xff]  }
 0x644   : > { %5380 = vmatprep.subr.bf16.mxu0 %v8484_v7  ;;  %v8552_v7 = vld [vmem:[%s10607_s5 + $0x4d4] ss:$8 sps:$4 sm:$0xff]  }
 0x647   : > { %5381 = vmatpush1.bf16.msra.mxu0 %v8482_v8  ;;  %v8550_v8 = vld [vmem:[%s10607_s5 + $0x4d0] ss:$8 sps:$4 sm:$0xff]  }
 0x648   : > { %5509 = vmatprep.subr.bf16.mxu0 %v8487_v9  ;;  %v8555_v9 = vld [vmem:[%s10607_s5 + $0x4e4] ss:$8 sps:$4 sm:$0xff]  }
 0x64a   : > { %5399 = vmatmul.mubr.bf16.vlgmr.msra.gmra.mrb[8].mxu0 %v4410_v57  ;;  %v8499_v57 = vld [vmem:[%s10607_s5 + $0x3c4] ss:$8 sps:$4 sm:$0xff]  }
 0x64b   : > { %5510 = vmatpush1.bf16.msra.mxu0 %v8485_v12  ;;  %5541 = vmatprep.mubr.bf16.mxu0 %v8759_v20  ;;  %v8553_v12 = vld [vmem:[%s10607_s5 + $0x4e0] ss:$8 sps:$4 sm:$0xff]  }
 0x64c   : > { %5511 = vmatprep.subr.bf16.mxu0 %v8490_v13  ;;  %v8558_v13 = vld [vmem:[%s10607_s5 + $0x4f4] ss:$8 sps:$4 sm:$0xff]  }
 0x64f   : > { %5512 = vmatpush1.bf16.msra.mxu0 %v8488_v14  ;;  %v8556_v14 = vld [vmem:[%s10607_s5 + $0x4f0] ss:$8 sps:$4 sm:$0xff]  }
 0x650   : > { %5513 = vmatprep.subr.bf16.mxu0 %v8493_v16  ;;  %v8561_v16 = vld [vmem:[%s10607_s5 + $0x504] ss:$8 sps:$4 sm:$0xff]  }
 0x653   : > { %5514 = vmatpush1.bf16.msra.mxu0 %v8491_v19  ;;  %v8559_v19 = vld [vmem:[%s10607_s5 + $0x500] ss:$8 sps:$4 sm:$0xff]  }
 0x654   : > { %5515 = vmatprep.subr.bf16.mxu0 %v8496_v49  ;;  %v8564_v49 = vld [vmem:[%s10607_s5 + $0x514] ss:$8 sps:$4 sm:$0xff]  }
 0x657   : > { %5516 = vmatpush1.bf16.msra.mxu0 %v8494_v54  ;;  %v8562_v54 = vld [vmem:[%s10607_s5 + $0x510] ss:$8 sps:$4 sm:$0xff]  }
 0x658   : > { %5517 = vmatprep.subr.bf16.mxu0 %v8499_v57  ;;  %v8567_v57 = vld [vmem:[%s10607_s5 + $0x524] ss:$8 sps:$4 sm:$0xff]  }
 0x65b   : > { %5518 = vmatpush1.bf16.msra.mxu0 %v8497_v26  ;;  %v8565_v26 = vld [vmem:[%s10607_s5 + $0x520] ss:$8 sps:$4 sm:$0xff]  }
 0x65c   : > { %5519 = vmatprep.subr.bf16.mxu0 %v8502_v27 }
 0x65f   : > { %5520 = vmatpush1.bf16.msra.mxu0 %v8500_v18 }
 0x660   : > { %5521 = vmatprep.subr.bf16.mxu0 %v8505_v28 }
 0x663   : > { %5522 = vmatpush1.bf16.msra.mxu0 %v8503_v29  ;;  %v8571_v29 = vld [vmem:[%s10607_s5 + $0x540] ss:$8 sps:$4 sm:$0xff]  }
 0x664   : > { %5523 = vmatprep.subr.bf16.mxu0 %v8508_v30 }
 0x667   : > { %5524 = vmatpush1.bf16.msra.mxu0 %v8506_v31  ;;  %v8576_v31 = vld [vmem:[%s10607_s5 + $0x554] ss:$8 sps:$4 sm:$0xff]  }
 0x668   : > { %5652 = vmatprep.subr.bf16.mxu0 %v8511_v32  ;;  %v8574_v32 = vld [vmem:[%s10607_s5 + $0x550] ss:$8 sps:$4 sm:$0xff]  }
 0x66a   : > { %5542 = vmatmul.mubr.bf16.vlgmr.msra.gmra.mrb[8].mxu0 %v4411_v53  ;;  %v8525_v53 = vld [vmem:[%s10607_s5 + $0x444] ss:$8 sps:$4 sm:$0xff]  }
 0x66b   : > { %5653 = vmatpush1.bf16.msra.mxu0 %v8509_v33  ;;  %5684 = vmatprep.mubr.bf16.mxu0 %v8759_v20  ;;  %v8579_v33 = vld [vmem:[%s10607_s5 + $0x564] ss:$8 sps:$4 sm:$0xff]  }
 0x66c   : > { %5654 = vmatprep.subr.bf16.mxu0 %v8514_v34  ;;  %v8577_v34 = vld [vmem:[%s10607_s5 + $0x560] ss:$8 sps:$4 sm:$0xff]  }
 0x66f   : > { %5655 = vmatpush1.bf16.msra.mxu0 %v8512_v36  ;;  %v8582_v36 = vld [vmem:[%s10607_s5 + $0x574] ss:$8 sps:$4 sm:$0xff]  }
 0x670   : > { %5656 = vmatprep.subr.bf16.mxu0 %v8519_v38  ;;  %v8580_v38 = vld [vmem:[%s10607_s5 + $0x570] ss:$8 sps:$4 sm:$0xff]  }
 0x673   : > { %5657 = vmatpush1.bf16.msra.mxu0 %v8517_v40  ;;  %v8585_v40 = vld [vmem:[%s10607_s5 + $0x584] ss:$8 sps:$4 sm:$0xff]  }
 0x674   : > { %5658 = vmatprep.subr.bf16.mxu0 %v8522_v48  ;;  %v4419_v48 = vpack.c.bf16 %v10066_v62, %v10062_v60 }
 0x677   : > { %5659 = vmatpush1.bf16.msra.mxu0 %v8520_v50  ;;  %v4418_v50 = vpack.c.bf16 %v10071_v0, %v10064_v61  ;;  %v8726_v61 = vld [vmem:[%s10607_s5 + $0x7b4] ss:$8 sps:$4 sm:$0xff]   ;;  %v8732_v0 = vld [vmem:[%s10607_s5 + $0x7c4] ss:$8 sps:$4 sm:$0xff]  }
 0x678   : > { %5660 = vmatprep.subr.bf16.mxu0 %v8525_v53  ;;  %v8583_v53 = vld [vmem:[%s10607_s5 + $0x580] ss:$8 sps:$4 sm:$0xff]  }
 0x67b   : > { %5661 = vmatpush1.bf16.msra.mxu0 %v8523_v22  ;;  %v8588_v22 = vld [vmem:[%s10607_s5 + $0x594] ss:$8 sps:$4 sm:$0xff]  }
 0x67c   : > { %5662 = vmatprep.subr.bf16.mxu0 %v8528_v44  ;;  %v8586_v44 = vld [vmem:[%s10607_s5 + $0x590] ss:$8 sps:$4 sm:$0xff]  }
 0x67f   : > { %5663 = vmatpush1.bf16.msra.mxu0 %v8526_v39  ;;  %v8591_v39 = vld [vmem:[%s10607_s5 + $0x5a4] ss:$8 sps:$4 sm:$0xff]  }
 0x680   : > { %5664 = vmatprep.subr.bf16.mxu0 %v8531_v42  ;;  %v8589_v42 = vld [vmem:[%s10607_s5 + $0x5a0] ss:$8 sps:$4 sm:$0xff]  }
 0x683   : > { %5665 = vmatpush1.bf16.msra.mxu0 %v8529_v43  ;;  %v8595_v43 = vld [vmem:[%s10607_s5 + $0x5c0] ss:$8 sps:$4 sm:$0xff]  }
 0x684   : > { %5666 = vmatprep.subr.bf16.mxu0 %v8534_v51  ;;  %v8600_v51 = vld [vmem:[%s10607_s5 + $0x5d4] ss:$8 sps:$4 sm:$0xff]  }
 0x687   : > { %5667 = vmatpush1.bf16.msra.mxu0 %v8532_v55  ;;  %v8598_v55 = vld [vmem:[%s10607_s5 + $0x5d0] ss:$8 sps:$4 sm:$0xff]  }
 0x688   : > { %5795 = vmatprep.subr.bf16.mxu0 %v8537_v41  ;;  %v8603_v41 = vld [vmem:[%s10607_s5 + $0x5e4] ss:$8 sps:$4 sm:$0xff]  }
 0x68a   : > { %5685 = vmatmul.mubr.bf16.vlgmr.msra.gmra.mrb[8].mxu0 %v4412_v25  ;;  %v8549_v25 = vld [vmem:[%s10607_s5 + $0x4c4] ss:$8 sps:$4 sm:$0xff]  }
 0x68b   : > { %5796 = vmatpush1.bf16.msra.mxu0 %v8535_v1  ;;  %5827 = vmatprep.mubr.bf16.mxu0 %v8759_v20  ;;  %v8601_v1 = vld [vmem:[%s10607_s5 + $0x5e0] ss:$8 sps:$4 sm:$0xff]  }
 0x68c   : > { %5797 = vmatprep.subr.bf16.mxu0 %v8540_v2  ;;  %v8606_v2 = vld [vmem:[%s10607_s5 + $0x5f4] ss:$8 sps:$4 sm:$0xff]  }
 0x68f   : > { %5798 = vmatpush1.bf16.msra.mxu0 %v8538_v3  ;;  %v8604_v3 = vld [vmem:[%s10607_s5 + $0x5f0] ss:$8 sps:$4 sm:$0xff]  }
 0x690   : > { %5799 = vmatprep.subr.bf16.mxu0 %v8543_v4  ;;  %v8609_v4 = vld [vmem:[%s10607_s5 + $0x604] ss:$8 sps:$4 sm:$0xff]  }
 0x693   : > { %5800 = vmatpush1.bf16.msra.mxu0 %v8541_v5  ;;  %v8607_v5 = vld [vmem:[%s10607_s5 + $0x600] ss:$8 sps:$4 sm:$0xff]  }
 0x694   : > { %5801 = vmatprep.subr.bf16.mxu0 %v8546_v17  ;;  %v8612_v17 = vld [vmem:[%s10607_s5 + $0x614] ss:$8 sps:$4 sm:$0xff]  }
 0x697   : > { %5802 = vmatpush1.bf16.msra.mxu0 %v8544_v24  ;;  %v8610_v24 = vld [vmem:[%s10607_s5 + $0x610] ss:$8 sps:$4 sm:$0xff]  }
 0x698   : > { %5803 = vmatprep.subr.bf16.mxu0 %v8549_v25  ;;  %v8615_v25 = vld [vmem:[%s10607_s5 + $0x624] ss:$8 sps:$4 sm:$0xff]  }
 0x69b   : > { %5804 = vmatpush1.bf16.msra.mxu0 %v8547_v6  ;;  %v8613_v6 = vld [vmem:[%s10607_s5 + $0x620] ss:$8 sps:$4 sm:$0xff]  }
 0x69c   : > { %5805 = vmatprep.subr.bf16.mxu0 %v8552_v7  ;;  %v8619_v7 = vld [vmem:[%s10607_s5 + $0x640] ss:$8 sps:$4 sm:$0xff]  }
 0x69f   : > { %5806 = vmatpush1.bf16.msra.mxu0 %v8550_v8  ;;  %v8624_v8 = vld [vmem:[%s10607_s5 + $0x654] ss:$8 sps:$4 sm:$0xff]  }
 0x6a0   : > { %5807 = vmatprep.subr.bf16.mxu0 %v8555_v9  ;;  %v8622_v9 = vld [vmem:[%s10607_s5 + $0x650] ss:$8 sps:$4 sm:$0xff]  }
 0x6a3   : > { %5808 = vmatpush1.bf16.msra.mxu0 %v8553_v12  ;;  %v8627_v12 = vld [vmem:[%s10607_s5 + $0x664] ss:$8 sps:$4 sm:$0xff]  }
 0x6a4   : > { %5809 = vmatprep.subr.bf16.mxu0 %v8558_v13  ;;  %v8625_v13 = vld [vmem:[%s10607_s5 + $0x660] ss:$8 sps:$4 sm:$0xff]  }
 0x6a7   : > { %5810 = vmatpush1.bf16.msra.mxu0 %v8556_v14  ;;  %v8630_v14 = vld [vmem:[%s10607_s5 + $0x674] ss:$8 sps:$4 sm:$0xff]  }
 0x6a8   : > { %5938 = vmatprep.subr.bf16.mxu0 %v8561_v16  ;;  %v8628_v16 = vld [vmem:[%s10607_s5 + $0x670] ss:$8 sps:$4 sm:$0xff]  }
 0x6aa   : > { %5828 = vmatmul.mubr.bf16.vlgmr.msra.gmra.mrb[8].mxu0 %v4413_v23  ;;  %v8573_v23 = vld [vmem:[%s10607_s5 + $0x544] ss:$8 sps:$4 sm:$0xff]  }
 0x6ab   : > { %5939 = vmatpush1.bf16.msra.mxu0 %v8559_v19  ;;  %5970 = vmatprep.mubr.bf16.mxu0 %v8759_v20  ;;  %v8633_v19 = vld [vmem:[%s10607_s5 + $0x684] ss:$8 sps:$4 sm:$0xff]  }
 0x6ac   : > { %5940 = vmatprep.subr.bf16.mxu0 %v8564_v49  ;;  %v8631_v49 = vld [vmem:[%s10607_s5 + $0x680] ss:$8 sps:$4 sm:$0xff]  }
 0x6af   : > { %5941 = vmatpush1.bf16.msra.mxu0 %v8562_v54  ;;  %v8636_v54 = vld [vmem:[%s10607_s5 + $0x694] ss:$8 sps:$4 sm:$0xff]  }
 0x6b0   : > { %5942 = vmatprep.subr.bf16.mxu0 %v8567_v57  ;;  %v8634_v57 = vld [vmem:[%s10607_s5 + $0x690] ss:$8 sps:$4 sm:$0xff]  }
 0x6b3   : > { %5943 = vmatpush1.bf16.msra.mxu0 %v8565_v26  ;;  %v8639_v26 = vld [vmem:[%s10607_s5 + $0x6a4] ss:$8 sps:$4 sm:$0xff]  }
 0x6b4   : > { %5944 = vmatprep.subr.bf16.mxu0 %v8570_v15  ;;  %v10292_v27 = vpop.f32.mrb[64].mxu1  ;;  %v8637_v15 = vld [vmem:[%s10607_s5 + $0x6a0] ss:$8 sps:$4 sm:$0xff]  }
 0x6b5   : > { %v10294_v18 = vpop.f32.mrb[65].mxu1 }
 0x6b6   : > { %v10296_v28 = vpop.f32.mrb[66].mxu1 }
 0x6b7   : > { %5945 = vmatpush1.bf16.msra.mxu0 %v8568_v21  ;;  %v10301_v30 = vpop.f32.mrb[67].mxu1  ;;  %v8643_v21 = vld [vmem:[%s10607_s5 + $0x6c0] ss:$8 sps:$4 sm:$0xff]  }
 0x6b8   : > { %5946 = vmatprep.subr.bf16.mxu0 %v8573_v23  ;;  %v8648_v23 = vld [vmem:[%s10607_s5 + $0x6d4] ss:$8 sps:$4 sm:$0xff]  }
 0x6bb   : > { %5947 = vmatpush1.bf16.msra.mxu0 %v8571_v29  ;;  %v8646_v29 = vld [vmem:[%s10607_s5 + $0x6d0] ss:$8 sps:$4 sm:$0xff]  }
 0x6bc   : > { %5948 = vmatprep.subr.bf16.mxu0 %v8576_v31  ;;  %v8651_v31 = vld [vmem:[%s10607_s5 + $0x6e4] ss:$8 sps:$4 sm:$0xff]  }
 0x6bf   : > { %5949 = vmatpush1.bf16.msra.mxu0 %v8574_v32  ;;  %v8649_v32 = vld [vmem:[%s10607_s5 + $0x6e0] ss:$8 sps:$4 sm:$0xff]  }
 0x6c0   : > { %5950 = vmatprep.subr.bf16.mxu0 %v8579_v33  ;;  %v8654_v33 = vld [vmem:[%s10607_s5 + $0x6f4] ss:$8 sps:$4 sm:$0xff]  }
 0x6c3   : > { %5951 = vmatpush1.bf16.msra.mxu0 %v8577_v34  ;;  %v8652_v34 = vld [vmem:[%s10607_s5 + $0x6f0] ss:$8 sps:$4 sm:$0xff]  }
 0x6c4   : > { %5952 = vmatprep.subr.bf16.mxu0 %v8582_v36  ;;  %v8660_v36 = vld [vmem:[%s10607_s5 + $0x704] ss:$8 sps:$4 sm:$0xff]  }
 0x6c7   : > { %5953 = vmatpush1.bf16.msra.mxu0 %v8580_v38  ;;  %v8658_v38 = vld [vmem:[%s10607_s5 + $0x700] ss:$8 sps:$4 sm:$0xff]  }
 0x6c8   : > { %6081 = vmatprep.subr.bf16.mxu0 %v8585_v40  ;;  %v8666_v40 = vld [vmem:[%s10607_s5 + $0x714] ss:$8 sps:$4 sm:$0xff]  }
 0x6ca   : > { %5971 = vmatmul.mubr.bf16.vlgmr.msra.gmra.mrb[8].mxu0 %v4414_v11  ;;  %v8597_v11 = vld [vmem:[%s10607_s5 + $0x5c4] ss:$8 sps:$4 sm:$0xff]  }
 0x6cb   : > { %6082 = vmatpush1.bf16.msra.mxu0 %v8583_v53  ;;  %6113 = vmatprep.mubr.bf16.mxu0 %v8759_v20  ;;  %v8664_v53 = vld [vmem:[%s10607_s5 + $0x710] ss:$8 sps:$4 sm:$0xff]  }
 0x6cc   : > { %6083 = vmatprep.subr.bf16.mxu0 %v8588_v22  ;;  %v8672_v22 = vld [vmem:[%s10607_s5 + $0x724] ss:$8 sps:$4 sm:$0xff]  }
 0x6cf   : > { %6084 = vmatpush1.bf16.msra.mxu0 %v8586_v44  ;;  %v8670_v44 = vld [vmem:[%s10607_s5 + $0x720] ss:$8 sps:$4 sm:$0xff]  }
 0x6d0   : > { %6085 = vmatprep.subr.bf16.mxu0 %v8591_v39  ;;  %v8682_v39 = vld [vmem:[%s10607_s5 + $0x740] ss:$8 sps:$4 sm:$0xff]  }
 0x6d3   : > { %6086 = vmatpush1.bf16.msra.mxu0 %v8589_v42  ;;  %v8690_v42 = vld [vmem:[%s10607_s5 + $0x754] ss:$8 sps:$4 sm:$0xff]  }
 0x6d4   : > { %6087 = vmatprep.subr.bf16.mxu0 %v8594_v45  ;;  %v8688_v45 = vld [vmem:[%s10607_s5 + $0x750] ss:$8 sps:$4 sm:$0xff]  }
 0x6d7   : > { %6088 = vmatpush1.bf16.msra.mxu0 %v8592_v52  ;;  %v8696_v52 = vld [vmem:[%s10607_s5 + $0x764] ss:$8 sps:$4 sm:$0xff]  }
 0x6d8   : > { %6089 = vmatprep.subr.bf16.mxu0 %v8597_v11  ;;  %v8694_v11 = vld [vmem:[%s10607_s5 + $0x760] ss:$8 sps:$4 sm:$0xff]  }
 0x6db   : > { %6090 = vmatpush1.bf16.msra.mxu0 %v8595_v43  ;;  %v8702_v43 = vld [vmem:[%s10607_s5 + $0x774] ss:$8 sps:$4 sm:$0xff]  }
 0x6dc   : > { %6091 = vmatprep.subr.bf16.mxu0 %v8600_v51  ;;  %v8700_v51 = vld [vmem:[%s10607_s5 + $0x770] ss:$8 sps:$4 sm:$0xff]  }
 0x6df   : > { %6092 = vmatpush1.bf16.msra.mxu0 %v8598_v55  ;;  %v8708_v55 = vld [vmem:[%s10607_s5 + $0x784] ss:$8 sps:$4 sm:$0xff]  }
 0x6e0   : > { %6093 = vmatprep.subr.bf16.mxu0 %v8603_v41  ;;  %v8706_v41 = vld [vmem:[%s10607_s5 + $0x780] ss:$8 sps:$4 sm:$0xff]  }
 0x6e3   : > { %6094 = vmatpush1.bf16.msra.mxu0 %v8601_v1  ;;  %v8714_v1 = vld [vmem:[%s10607_s5 + $0x794] ss:$8 sps:$4 sm:$0xff]  }
 0x6e4   : > { %6095 = vmatprep.subr.bf16.mxu0 %v8606_v2  ;;  %v8712_v2 = vld [vmem:[%s10607_s5 + $0x790] ss:$8 sps:$4 sm:$0xff]  }
 0x6e7   : > { %6096 = vmatpush1.bf16.msra.mxu0 %v8604_v3  ;;  %v8720_v3 = vld [vmem:[%s10607_s5 + $0x7a4] ss:$8 sps:$4 sm:$0xff]  }
 0x6e8   : > { %6224 = vmatprep.subr.bf16.mxu0 %v8609_v4  ;;  %v8718_v4 = vld [vmem:[%s10607_s5 + $0x7a0] ss:$8 sps:$4 sm:$0xff]  }
 0x6ea   : > { %6114 = vmatmul.mubr.bf16.vlgmr.msra.gmra.mrb[8].mxu0 %v4415_v10  ;;  %v8621_v10 = vld [vmem:[%s10607_s5 + $0x644] ss:$8 sps:$4 sm:$0xff]  }
 0x6eb   : > { %6225 = vmatpush1.bf16.msra.mxu0 %v8607_v5  ;;  %6256 = vmatprep.mubr.bf16.mxu0 %v8759_v20  ;;  %v8738_v5 = vld [vmem:[%s10607_s5 + $0x7d4] ss:$8 sps:$4 sm:$0xff]  }
 0x6ec   : > { %6226 = vmatprep.subr.bf16.mxu0 %v8612_v17  ;;  %v8736_v17 = vld [vmem:[%s10607_s5 + $0x7d0] ss:$8 sps:$4 sm:$0xff]  }
 0x6ef   : > { %6227 = vmatpush1.bf16.msra.mxu0 %v8610_v24  ;;  %v8744_v24 = vld [vmem:[%s10607_s5 + $0x7e4] ss:$8 sps:$4 sm:$0xff]  }
 0x6f0   : > { %6228 = vmatprep.subr.bf16.mxu0 %v8615_v25  ;;  %v8742_v25 = vld [vmem:[%s10607_s5 + $0x7e0] ss:$8 sps:$4 sm:$0xff]  }
 0x6f3   : > { %6229 = vmatpush1.bf16.msra.mxu0 %v8613_v6  ;;  %v8750_v6 = vld [vmem:[%s10607_s5 + $0x7f4] ss:$8 sps:$4 sm:$0xff]  }
 0x6f4   : > { %6230 = vmatprep.subr.bf16.mxu0 %v8618_v46  ;;  %v8748_v46 = vld [vmem:[%s10607_s5 + $0x7f0] ss:$8 sps:$4 sm:$0xff]  }
 0x6f7   : > { %6231 = vmatpush1.bf16.msra.mxu0 %v8616_v47  ;;  %v6702_v47 = vlaneseq }
 0x6f8   : > { %6232 = vmatprep.subr.bf16.mxu0 %v8621_v10 }
 0x6f9   : > { %v6703_v10 = vshrl.u32 %v6702_v47, 7 }
 0x6fb   : > { %6233 = vmatpush1.bf16.msra.mxu0 %v8619_v7  ;;  %v6704_v7 = vsub.s32 0, %v6703_v10 }
 0x6fc   : > { %6234 = vmatprep.subr.bf16.mxu0 %v8624_v8  ;;  %v6700_v8 = vld [vmem:[%s10610_s8] sm:$0x3] }
 0x6ff   : > { %6235 = vmatpush1.bf16.msra.mxu0 %v8622_v9  ;;  %v6708_v9 = vsub.s32 1, %v6703_v10 }
 0x700   : > { %6236 = vmatprep.subr.bf16.mxu0 %v8627_v12  ;;  %v6705_v12 = vrot.slane %v6700_v8, %v6704_v7 }
 0x703   : > { %6237 = vmatpush1.bf16.msra.mxu0 %v8625_v13 }
 0x704   : > { %6238 = vmatprep.subr.bf16.mxu0 %v8630_v14  ;;  %v6709_v14 = vrot.slane %v6700_v8, %v6708_v9 }
 0x707   : > { %6239 = vmatpush1.bf16.msra.mxu0 %v8628_v16 }
 0x708   : > { %6367 = vmatprep.subr.bf16.mxu0 %v8633_v19 }
 0x70a   : > { %6257 = vmatmul.mubr.bf16.vlgmr.msra.gmra.mrb[8].mxu0 %v4416_v63  ;;  %v8645_v63 = vld [vmem:[%s10607_s5 + $0x6c4] ss:$8 sps:$4 sm:$0xff]  }
 0x70b   : > { %6368 = vmatpush1.bf16.msra.mxu0 %v8631_v49  ;;  %6399 = vmatprep.mubr.bf16.mxu0 %v8759_v20 }
 0x70c   : > { %6369 = vmatprep.subr.bf16.mxu0 %v8636_v54 }
 0x70f   : > { %6370 = vmatpush1.bf16.msra.mxu0 %v8634_v57 }
 0x710   : > { %6371 = vmatprep.subr.bf16.mxu0 %v8639_v26 }
 0x713   : > { %6372 = vmatpush1.bf16.msra.mxu0 %v8637_v15 }
 0x714   : > { %6373 = vmatprep.subr.bf16.mxu0 %v8642_v35 }
 0x717   : > { %6374 = vmatpush1.bf16.msra.mxu0 %v8640_v58 }
 0x718   : > { %6375 = vmatprep.subr.bf16.mxu0 %v8645_v63 }
 0x71b   : > { %6376 = vmatpush1.bf16.msra.mxu0 %v8643_v21 }
 0x71c   : > { %6377 = vmatprep.subr.bf16.mxu0 %v8648_v23 }
 0x71f   : > { %6378 = vmatpush1.bf16.msra.mxu0 %v8646_v29 }
 0x720   : > { %6379 = vmatprep.subr.bf16.mxu0 %v8651_v31 }
 0x723   : > { %6380 = vmatpush1.bf16.msra.mxu0 %v8649_v32 }
 0x724   : > { %6381 = vmatprep.subr.bf16.mxu0 %v8654_v33 }
 0x727   : > { %6382 = vmatpush1.bf16.msra.mxu0 %v8652_v34 }
 0x728   : > { %6510 = vmatprep.subr.bf16.mxu0 %v8660_v36 }
 0x72a   : > { %6400 = vmatmul.mubr.bf16.vlgmr.msra.gmra.mrb[8].mxu0 %v4417_v59  ;;  %v8684_v59 = vld [vmem:[%s10607_s5 + $0x744] ss:$8 sps:$4 sm:$0xff]  }
 0x72b   : > { %6511 = vmatpush1.bf16.msra.mxu0 %v8658_v38  ;;  %6542 = vmatprep.mubr.bf16.mxu0 %v8759_v20 }
 0x72c   : > { %6512 = vmatprep.subr.bf16.mxu0 %v8666_v40 }
 0x72f   : > { %6513 = vmatpush1.bf16.msra.mxu0 %v8664_v53 }
 0x730   : > { %6514 = vmatprep.subr.bf16.mxu0 %v8672_v22 }
 0x733   : > { %6515 = vmatpush1.bf16.msra.mxu0 %v8670_v44 }
 0x734   : > { %6516 = vmatprep.subr.bf16.mxu0 %v8678_v56 }
 0x737   : > { %6517 = vmatpush1.bf16.msra.mxu0 %v8676_v37 }
 0x738   : > { %6518 = vmatprep.subr.bf16.mxu0 %v8684_v59 }
 0x73b   : > { %6519 = vmatpush1.bf16.msra.mxu0 %v8682_v39 }
 0x73c   : > { %6520 = vmatprep.subr.bf16.mxu0 %v8690_v42 }
 0x73f   : > { %6521 = vmatpush1.bf16.msra.mxu0 %v8688_v45 }
 0x740   : > { %6522 = vmatprep.subr.bf16.mxu0 %v8696_v52 }
 0x743   : > { %6523 = vmatpush1.bf16.msra.mxu0 %v8694_v11 }
 0x744   : > { %6524 = vmatprep.subr.bf16.mxu0 %v8702_v43 }
 0x747   : > { %6525 = vmatpush1.bf16.msra.mxu0 %v8700_v51 }
 0x748   : > { %6653 = vmatprep.subr.bf16.mxu0 %v8708_v55 }
 0x74a   : > { %6543 = vmatmul.mubr.bf16.vlgmr.msra.gmra.mrb[8].mxu0 %v4418_v50  ;;  %v8730_v50 = vld [vmem:[%s10607_s5 + $0x7c0] ss:$8 sps:$4 sm:$0xff]  }
 0x74b   : > { %6654 = vmatpush1.bf16.msra.mxu0 %v8706_v41  ;;  %6685 = vmatprep.mubr.bf16.mxu0 %v8759_v20  ;;  %v8724_v20 = vld [vmem:[%s10607_s5 + $0x7b0] ss:$8 sps:$4 sm:$0xff]  }
 0x74c   : > { %6655 = vmatprep.subr.bf16.mxu0 %v8714_v1 }
 0x74f   : > { %6656 = vmatpush1.bf16.msra.mxu0 %v8712_v2 }
 0x750   : > { %6657 = vmatprep.subr.bf16.mxu0 %v8720_v3 }
 0x753   : > { %6658 = vmatpush1.bf16.msra.mxu0 %v8718_v4 }
 0x754   : > { %6659 = vmatprep.subr.bf16.mxu0 %v8726_v61 }
 0x757   : > { %6660 = vmatpush1.bf16.msra.mxu0 %v8724_v20 }
 0x758   : > { %6661 = vmatprep.subr.bf16.mxu0 %v8732_v0 }
 0x75b   : > { %6662 = vmatpush1.bf16.msra.mxu0 %v8730_v50 }
 0x75c   : > { %6663 = vmatprep.subr.bf16.mxu0 %v8738_v5 }
 0x75f   : > { %6664 = vmatpush1.bf16.msra.mxu0 %v8736_v17 }
 0x760   : > { %6665 = vmatprep.subr.bf16.mxu0 %v8744_v24 }
 0x763   : > { %6666 = vmatpush1.bf16.msra.mxu0 %v8742_v25 }
 0x764   : > { %6667 = vmatprep.subr.bf16.mxu0 %v8750_v6 }
 0x767   : > { %6668 = vmatpush1.bf16.msra.mxu0 %v8748_v46 }
 0x76a   : > { %6686 = vmatmul.mubr.bf16.vlgmr.msra.gmra.mrb[8].mxu0 %v4419_v48 }
 0x83d   : > { %v6687_v13 = vpop.f32.mrb[8].mxu0 }
 0x83e   : > { %v7886_v16 = vadd.f32 %v6687_v13, %v10292_v27  ;;  %v6689_v19 = vpop.f32.mrb[9].mxu0 }
 0x83f   : > { %v7887_v49 = vadd.f32 %v6689_v19, %v10294_v18  ;;  %v6691_v54 = vpop.f32.mrb[10].mxu0 }
 0x840   : > { %v6712_v60 = vadd.f32 %v7886_v16, %v6705_v12  ;;  %v7888_v62 = vadd.f32 %v6691_v54, %v10296_v28  ;;  %v6693_v48 = vpop.f32.mrb[11].mxu0 }
 0x841   : > { %v6713_v57 = vadd.f32 %v7887_v49, %v6709_v14  ;;  %v7889_v26 = vadd.f32 %v6693_v48, %v10301_v30 }
 0x842   : > { %vm6716_vm0 = vcmp.gt.f32.partialorder %v6712_v60, 0.0  ;;  %v6720_v15 = vmul.f32 0.2, %v6712_v60  ;;  %v6714_v35 = vadd.f32 %v7888_v62, %v6705_v12 }
 0x843   : > { %vm6717_vm11 = vcmp.gt.f32.partialorder %v6713_v57, 0.0  ;;  %v6721_v27 = vmul.f32 0.2, %v6713_v57  ;;  %v6715_v58 = vadd.f32 %v7889_v26, %v6709_v14 }
 0x844   : > { %v6724_v63 = vsel %vm6716_vm0, %v6712_v60, %v6720_v15  ;;  %vm6718_vm12 = vcmp.gt.f32.partialorder %v6714_v35, 0.0  ;;  %v6722_v18 = vmul.f32 0.2, %v6714_v35 }
 0x845   : > { %6728 = vst [vmem:[%s332_s29] sm:$0xff] %v6724_v63  ;;  %v6725_v21 = vsel %vm6717_vm11, %v6713_v57, %v6721_v27  ;;  %vm6719_vm13 = vcmp.gt.f32.partialorder %v6715_v58, 0.0  ;;  %v6723_v28 = vmul.f32 0.2, %v6715_v58 }
 0x846   : > { %6729 = vst [vmem:[%s332_s29 + $0x8] sm:$0xff] %v6725_v21  ;;  %v6726_v23 = vsel %vm6718_vm12, %v6714_v35, %v6722_v18 }
 0x847   : > { %6730 = vst [vmem:[%s332_s29 + $0x10] sm:$0xff] %v6726_v23  ;;  %v6727_v30 = vsel %vm6719_vm13, %v6715_v58, %v6723_v28 }
 0x848   : > { %6731 = vst [vmem:[%s332_s29 + $0x18] sm:$0xff] %v6727_v30 }
 0x849 PF: > { %s19_s30 = sadd.s32 1, %s8757_s30  }
 0x84a   : > { %p16_p4 = scmp.ge.s32.totalorder %s19_s30, 4  }
 0x84c   :  { %18 = sbr.rel (!%p16_p4) target bundleno = 1 (0x1), region = 86 }

</bundles_post_ra>
